<compile_context>
chip_gen: v7x
topology: tpu7x:2x2x1
jax: 0.10.0
libtpu: 0.0.40
codegen_flags: <defaults>
</compile_context>

<pallas_src>
import functools

import numpy as np
import jax
import jax.numpy as jnp
from jax.experimental import pallas as pl
from jax.experimental.pallas import tpu as pltpu


def _vmem_limit_bytes():
    """Generation-aware scoped-VMEM limit (v7x: 64 MiB phys, v5e/v6e: 128 MiB)."""
    try:
        cap = int(pltpu.get_tpu_info().vmem_capacity_bytes)
        return min(cap * 3 // 4, 96 * 1024 * 1024)
    except Exception:
        return 32 * 1024 * 1024


_VMEM_LIMIT = _vmem_limit_bytes()


def _rup(x, m):
    return (x + m - 1) // m * m


# ---------------------------------------------------------------------------
# Fused per-layer kernel: GEMM + two-pass BN(train) + [residual] + LeakyReLU
# ---------------------------------------------------------------------------
def _bn_act(y, g, b, r, *, m, eps, slope):
    # y: (cp, mp) f32 pre-activation.  Padded columns of y are exactly zero
    # (zero-padded P^T), so the plain sum is already the sum over the m real
    # columns; the (y - mean)^2 term must be masked.
    mean = jnp.sum(y, axis=1, keepdims=True) / m
    valid = jax.lax.broadcasted_iota(jnp.int32, y.shape, 1) < m
    d = jnp.where(valid, y - mean, 0.0)
    var = jnp.sum(d * d, axis=1, keepdims=True) / m        # two-pass variance
    inv_std = jax.lax.rsqrt(var + eps)
    yn = (y - mean) * inv_std * g + b
    if r is not None:
        yn = yn + r
    act = jnp.where(yn >= 0.0, yn, slope * yn)
    return jnp.where(valid, act, 0.0)                       # keep pad columns clean


def _conv_bn_lrelu_kernel(w_ref, p_ref, g_ref, b_ref, o_ref, *, m, eps, slope):
    y = jnp.dot(w_ref[...], p_ref[...], preferred_element_type=jnp.float32)
    o_ref[...] = _bn_act(y, g_ref[...], b_ref[...], None, m=m, eps=eps, slope=slope)


def _conv_bn_res_lrelu_kernel(w_ref, p_ref, g_ref, b_ref, r_ref, o_ref, *,
                              m, eps, slope):
    y = jnp.dot(w_ref[...], p_ref[...], preferred_element_type=jnp.float32)
    o_ref[...] = _bn_act(y, g_ref[...], b_ref[...], r_ref[...],
                         m=m, eps=eps, slope=slope)


# ---------------------------------------------------------------------------
# Glue: reflect pad + channel-major im2col (plain JAX), ONE pallas_call / layer
# ---------------------------------------------------------------------------
def _im2col_cnhw(xp, kh, kw, stride, dilation, ho, wo):
    # xp: (C, N, Hp, Wp) -> P^T: (C*kh*kw, N*Ho*Wo).  K ordering is C-major,
    # (kh,kw)-minor, matching w.reshape(Cout, Cin*kh*kw); no layout transposes.
    c, n = xp.shape[0], xp.shape[1]
    cols = []
    for i in range(kh):
        for j in range(kw):
            di, dj = i * dilation, j * dilation
            cols.append(xp[:, :,
                           di: di + (ho - 1) * stride + 1: stride,
                           dj: dj + (wo - 1) * stride + 1: stride])
    p = jnp.stack(cols, axis=1)                     # (C, kh*kw, N, Ho, Wo)
    return p.reshape(c * kh * kw, n * ho * wo)      # (K, M)


def pallas_conv_bn_lrelu(x_cnhw, layer, residual_padded=None, eps=1e-5, slope=0.2):
    """Conv(reflect, no bias) + BatchNorm(train) + [residual] + LeakyReLU(0.2).

    x_cnhw: (Cin, N, H, W) f32.  residual_padded: previous layer's padded (cp, mp)
    output reused directly (no re-padding copy).  Returns (y_cnhw, y_padded).
    """
    w, gamma, beta = layer["w"], layer["gamma"], layer["beta"]
    stride, dilation, pad = layer["stride"], layer["dilation"], layer["pad"]

    cin, n, _, _ = x_cnhw.shape
    cout, _, kh, kw = w.shape
    xp = jnp.pad(x_cnhw, ((0, 0), (0, 0), (pad, pad), (pad, pad)), mode="reflect")
    xp = xp.astype(jnp.bfloat16)                    # bf16 operands, f32 accumulation
    hp, wp = xp.shape[2], xp.shape[3]
    ho = (hp - dilation * (kh - 1) - 1) // stride + 1
    wo = (wp - dilation * (kw - 1) - 1) // stride + 1

    k = cin * kh * kw
    m = n * ho * wo
    kp = _rup(k, 16)                                # bf16 sublane packing on K
    cp = _rup(cout, 16)                             # bf16 sublane packing on Cout
    mp = _rup(m, 128)                               # lane-dense M (whole layer fits VMEM)

    pT = _im2col_cnhw(xp, kh, kw, stride, dilation, ho, wo)          # (K, M) bf16
    pT = jnp.pad(pT, ((0, kp - k), (0, mp - m)))                     # exact zero pad
    w2 = jnp.pad(w.reshape(cout, k).astype(jnp.bfloat16),
                 ((0, cp - cout), (0, kp - k)))                      # (Cp, Kp)
    g2 = jnp.pad(gamma, (0, cp - cout)).reshape(cp, 1)
    b2 = jnp.pad(beta, (0, cp - cout)).reshape(cp, 1)

    inputs = [w2, pT, g2, b2]
    in_specs = [pl.BlockSpec((cp, kp), lambda i: (0, 0)),
                pl.BlockSpec((kp, mp), lambda i: (0, 0)),
                pl.BlockSpec((cp, 1), lambda i: (0, 0)),
                pl.BlockSpec((cp, 1), lambda i: (0, 0))]
    if residual_padded is not None:
        # mp/cp depend only on (m, cout), which match the ResBlock input's by
        # construction (same spatial size and channel count).
        assert residual_padded.shape == (cp, mp), residual_padded.shape
        inputs.append(residual_padded)
        in_specs.append(pl.BlockSpec((cp, mp), lambda i: (0, 0)))
        kernel = functools.partial(_conv_bn_res_lrelu_kernel, m=m, eps=eps, slope=slope)
    else:
        kernel = functools.partial(_conv_bn_lrelu_kernel, m=m, eps=eps, slope=slope)

    out = pl.pallas_call(
        kernel,
        grid=(1,),                                   # whole layer in one VMEM block
        in_specs=in_specs,
        out_specs=pl.BlockSpec((cp, mp), lambda i: (0, 0)),
        out_shape=jax.ShapeDtypeStruct((cp, mp), jnp.float32),
        compiler_params=pltpu.CompilerParams(
            dimension_semantics=("arbitrary",),
            vmem_limit_bytes=_VMEM_LIMIT),
    )(*inputs)

    return out[:cout, :m].reshape(cout, n, ho, wo), out


# ---------------------------------------------------------------------------
# Per-layer semantic reference (lax.conv, NCHW) — independent of the im2col path
# ---------------------------------------------------------------------------
def lax_conv_bn_lrelu(x_cnhw, layer, residual_cnhw=None, eps=1e-5, slope=0.2):
    w, gamma, beta = layer["w"], layer["gamma"], layer["beta"]
    stride, dilation, pad = layer["stride"], layer["dilation"], layer["pad"]
    x = jnp.transpose(x_cnhw, (1, 0, 2, 3))
    xp = jnp.pad(x, ((0, 0), (0, 0), (pad, pad), (pad, pad)), mode="reflect")
    y = jax.lax.conv_general_dilated(
        xp.astype(jnp.bfloat16), w.astype(jnp.bfloat16),
        (stride, stride), "VALID",
        rhs_dilation=(dilation, dilation),
        dimension_numbers=("NCHW", "OIHW", "NCHW"),
        preferred_element_type=jnp.float32)
    mean = y.mean(axis=(0, 2, 3), keepdims=True)
    var = ((y - mean) ** 2).mean(axis=(0, 2, 3), keepdims=True)
    yn = (y - mean) * jax.lax.rsqrt(var + eps) * gamma.reshape(1, -1, 1, 1) \
        + beta.reshape(1, -1, 1, 1)
    if residual_cnhw is not None:
        yn = yn + jnp.transpose(residual_cnhw, (1, 0, 2, 3))
    act = jnp.where(yn >= 0.0, yn, slope * yn)
    return jnp.transpose(act, (1, 0, 2, 3))


# ---------------------------------------------------------------------------
# Forward pass (CNHW internally); optionally also returns per-layer lax refs
# computed from the SAME chained inputs (single-layer error only, no chaos).
# ---------------------------------------------------------------------------
def pallas_forward(layers, x_nchw, *, with_layer_refs=False):
    x = jnp.transpose(x_nchw, (1, 0, 2, 3))          # single NCHW -> CNHW transpose
    x_pad = None
    pairs = []
    for kind, p in layers:
        if kind == "conv":
            y_lx = lax_conv_bn_lrelu(x, p) if with_layer_refs else None
            x, x_pad = pallas_conv_bn_lrelu(x, p)
            if with_layer_refs:
                pairs.append((x, y_lx))
        else:
            p1, p2 = p
            h_lx = lax_conv_bn_lrelu(x, p1) if with_layer_refs else None
            h, _ = pallas_conv_bn_lrelu(x, p1)
            if with_layer_refs:
                pairs.append((h, h_lx))
            y_lx = lax_conv_bn_lrelu(h, p2, residual_cnhw=x) if with_layer_refs else None
            x_new, x_pad = pallas_conv_bn_lrelu(h, p2, residual_padded=x_pad)
            if with_layer_refs:
                pairs.append((x_new, y_lx))
            x = x_new
    out = jnp.transpose(x, (1, 0, 2, 3))             # back to NCHW
    return (out, pairs) if with_layer_refs else out


# ---------------------------------------------------------------------------
# End-to-end pure-JAX reference, numerically congruent with the kernel
# (same im2col decomposition, bf16 operands / f32 accumulation, same two-pass
#  BN statistics and op ordering) — keeps the 13-layer comparison well inside
# tolerance despite the model's chaotic error amplification.
# ---------------------------------------------------------------------------
def ref_conv_bn_lrelu(x_cnhw, layer, residual_flat=None, eps=1e-5, slope=0.2):
    w, gamma, beta = layer["w"], layer["gamma"], layer["beta"]
    stride, dilation, pad = layer["stride"], layer["dilation"], layer["pad"]
    cin, n, _, _ = x_cnhw.shape
    cout, _, kh, kw = w.shape
    xp = jnp.pad(x_cnhw, ((0, 0), (0, 0), (pad, pad), (pad, pad)), mode="reflect")
    xp = xp.astype(jnp.bfloat16)
    hp, wp = xp.shape[2], xp.shape[3]
    ho = (hp - dilation * (kh - 1) - 1) // stride + 1
    wo = (wp - dilation * (kw - 1) - 1) // stride + 1
    m = n * ho * wo
    pT = _im2col_cnhw(xp, kh, kw, stride, dilation, ho, wo)
    w2 = w.reshape(cout, cin * kh * kw).astype(jnp.bfloat16)
    y = jnp.dot(w2, pT, preferred_element_type=jnp.float32)
    mean = jnp.sum(y, axis=1, keepdims=True) / m
    d = y - mean
    var = jnp.sum(d * d, axis=1, keepdims=True) / m
    yn = (y - mean) * jax.lax.rsqrt(var + eps) * gamma.reshape(-1, 1) \
        + beta.reshape(-1, 1)
    if residual_flat is not None:
        yn = yn + residual_flat
    act = jnp.where(yn >= 0.0, yn, slope * yn)
    return act.reshape(cout, n, ho, wo)


def ref_forward(layers, x_nchw):
    x = jnp.transpose(x_nchw, (1, 0, 2, 3))
    for kind, p in layers:
        if kind == "conv":
            x = ref_conv_bn_lrelu(x, p)
        else:
            p1, p2 = p
            h = ref_conv_bn_lrelu(x, p1)
            c, n, hh, ww = x.shape
            x = ref_conv_bn_lrelu(h, p2, residual_flat=x.reshape(c, n * hh * ww))
    return jnp.transpose(x, (1, 0, 2, 3))


# ---------------------------------------------------------------------------
# Model: parameter construction (mirrors the nn.Sequential structure)
# ---------------------------------------------------------------------------
def build_model(nf, factors, key):
    keys = iter(jax.random.split(key, 128))

    def conv(cin, cout, ksz, stride, dilation, pad):
        fan_in = cin * ksz * ksz
        w = jax.random.normal(next(keys), (cout, cin, ksz, ksz), jnp.float32) \
            / np.sqrt(fan_in)
        return dict(w=w,
                    gamma=jnp.ones((cout,), jnp.float32),   # PyTorch BN defaults
                    beta=jnp.zeros((cout,), jnp.float32),
                    stride=stride, dilation=dilation, pad=pad)

    layers = [("conv", conv(1, nf, 5, 1, 1, 2))]             # initial 5x5, pad=2
    for f in factors:
        ksz = f + 1
        layers.append(("conv", conv(nf, 2 * nf, ksz, f, 1, ksz // 2)))  # Down
        nf *= 2
        for d in (1, 3):                                     # ResBlocks dil=1, dil=3
            layers.append(("res", (conv(nf, nf, 3, 1, d, d),
                                   conv(nf, nf, 3, 1, 1, 1))))
    return layers


if __name__ == "__main__":
    key = jax.random.PRNGKey(0)
    kx, kparams = jax.random.split(key)
    # batch=2, 1 input channel (Conv2d(1, nf, ...)), 32x32 spatial, nf=4
    x = jax.random.normal(kx, (2, 1, 32, 32), jnp.float32)
    layers = build_model(nf=4, factors=(2, 2, 2), key=kparams)

    run = jax.jit(lambda inp: pallas_forward(layers, inp, with_layer_refs=True))
    y, pairs = run(x)
    y = jax.block_until_ready(y)
    assert y.shape == (2, 32, 4, 4), y.shape

    # Per-layer semantic check against lax.conv (single-layer numerical error only).
    for idx, (y_pl, y_lx) in enumerate(pairs):
        a, b = np.asarray(y_pl), np.asarray(y_lx)
        if not np.allclose(a, b, rtol=1e-2, atol=1e-2):
            err = float(np.max(np.abs(a - b)))
            raise AssertionError(
                f"layer {idx}: Pallas vs lax.conv reference mismatch (max err {err})")

    # End-to-end check against the numerically congruent pure-JAX reference.
    y_ref = jax.block_until_ready(jax.jit(lambda inp: ref_forward(layers, inp))(x))
    a, b = np.asarray(y), np.asarray(y_ref)
    if not np.allclose(a, b, rtol=2e-2, atol=2e-2):
        err = float(np.max(np.abs(a - b)))
        raise AssertionError(
            f"Pallas output does not match JAX reference (max err {err})")

    print("KERNEL_OK")
</pallas_src>

<mosaic_0001>
module attributes {stable_mosaic.version = 11 : i64} {
  func.func @_conv_bn_lrelu_kernel(%arg0: i32, %arg1: memref<16x32xbf16, #tpu.memory_space<vmem>>, %arg2: memref<32x2048xbf16, #tpu.memory_space<vmem>>, %arg3: memref<16x1xf32, #tpu.memory_space<vmem>>, %arg4: memref<16x1xf32, #tpu.memory_space<vmem>>, %arg5: memref<16x2048xf32, #tpu.memory_space<vmem>>) attributes {dimension_semantics = [#tpu.dimension_semantics<arbitrary>], iteration_bounds = array<i64: 1>, scalar_prefetch = 0 : i64, scratch_operands = 0 : i64, tpu.core_type = #tpu.core_type<tc>, window_params = [{pipeline_mode = #tpu.pipeline_mode<synchronous>, transform_indices = @transform_0, window_bounds = array<i64: 16, 32>}, {pipeline_mode = #tpu.pipeline_mode<synchronous>, transform_indices = @transform_1, window_bounds = array<i64: 32, 2048>}, {pipeline_mode = #tpu.pipeline_mode<synchronous>, transform_indices = @transform_2, window_bounds = array<i64: 16, 1>}, {pipeline_mode = #tpu.pipeline_mode<synchronous>, transform_indices = @transform_3, window_bounds = array<i64: 16, 1>}, {pipeline_mode = #tpu.pipeline_mode<synchronous>, transform_indices = @transform_4, window_bounds = array<i64: 16, 2048>}]} {
    %c0 = arith.constant 0 : index
    %c0_0 = arith.constant 0 : index
    %0 = vector.load %arg1[%c0, %c0_0] : memref<16x32xbf16, #tpu.memory_space<vmem>>, vector<16x32xbf16>
    %c0_1 = arith.constant 0 : index
    %c0_2 = arith.constant 0 : index
    %1 = vector.load %arg2[%c0_1, %c0_2] : memref<32x2048xbf16, #tpu.memory_space<vmem>>, vector<32x2048xbf16>
    %cst = arith.constant dense<0.000000e+00> : vector<16x2048xf32>
    %2 = tpu.matmul %0, %1, %cst {dimension_numbers = #tpu.dot_dimension_numbers<[1], [0], [0], [1], [0, 0, 1, 1], [], []>} : vector<16x32xbf16>, vector<32x2048xbf16>, vector<16x2048xf32> -> vector<16x2048xf32>
    %c0_3 = arith.constant 0 : index
    %c0_4 = arith.constant 0 : index
    %3 = vector.load %arg3[%c0_3, %c0_4] : memref<16x1xf32, #tpu.memory_space<vmem>>, vector<16x1xf32>
    %c0_5 = arith.constant 0 : index
    %c0_6 = arith.constant 0 : index
    %4 = vector.load %arg4[%c0_5, %c0_6] : memref<16x1xf32, #tpu.memory_space<vmem>>, vector<16x1xf32>
    %cst_7 = arith.constant dense<0.000000e+00> : vector<16xf32>
    %5 = vector.multi_reduction <add>, %2, %cst_7 [1] : vector<16x2048xf32> to vector<16xf32>
    %6 = vector.shape_cast %5 : vector<16xf32> to vector<16x1xf32>
    %cst_8 = arith.constant 2.048000e+03 : f32
    %7 = vector.broadcast %cst_8 : f32 to vector<16x1xf32>
    %8 = arith.divf %6, %7 : vector<16x1xf32>
    %9 = tpu.iota {dimensions = array<i32: 1>} : vector<16x2048xi32>
    %c2048_i32 = arith.constant 2048 : i32
    %10 = vector.broadcast %c2048_i32 : i32 to vector<16x2048xi32>
    %11 = arith.cmpi slt, %9, %10 : vector<16x2048xi32>
    %12 = vector.broadcast %8 : vector<16x1xf32> to vector<16x2048xf32>
    %13 = arith.subf %2, %12 : vector<16x2048xf32>
    %cst_9 = arith.constant 0.000000e+00 : f32
    %14 = vector.broadcast %cst_9 : f32 to vector<16x2048xf32>
    %15 = arith.select %11, %13, %14 : vector<16x2048xi1>, vector<16x2048xf32>
    %16 = arith.mulf %15, %15 : vector<16x2048xf32>
    %cst_10 = arith.constant dense<0.000000e+00> : vector<16xf32>
    %17 = vector.multi_reduction <add>, %16, %cst_10 [1] : vector<16x2048xf32> to vector<16xf32>
    %18 = vector.shape_cast %17 : vector<16xf32> to vector<16x1xf32>
    %cst_11 = arith.constant 2.048000e+03 : f32
    %19 = vector.broadcast %cst_11 : f32 to vector<16x1xf32>
    %20 = arith.divf %18, %19 : vector<16x1xf32>
    %cst_12 = arith.constant 9.99999974E-6 : f32
    %21 = vector.broadcast %cst_12 : f32 to vector<16x1xf32>
    %22 = arith.addf %20, %21 : vector<16x1xf32>
    %23 = math.rsqrt %22 : vector<16x1xf32>
    %24 = vector.broadcast %8 : vector<16x1xf32> to vector<16x2048xf32>
    %25 = arith.subf %2, %24 : vector<16x2048xf32>
    %26 = vector.broadcast %23 : vector<16x1xf32> to vector<16x2048xf32>
    %27 = arith.mulf %25, %26 : vector<16x2048xf32>
    %28 = vector.broadcast %3 : vector<16x1xf32> to vector<16x2048xf32>
    %29 = arith.mulf %27, %28 : vector<16x2048xf32>
    %30 = vector.broadcast %4 : vector<16x1xf32> to vector<16x2048xf32>
    %31 = arith.addf %29, %30 : vector<16x2048xf32>
    %cst_13 = arith.constant 0.000000e+00 : f32
    %32 = vector.broadcast %cst_13 : f32 to vector<16x2048xf32>
    %33 = arith.cmpf oge, %31, %32 : vector<16x2048xf32>
    %cst_14 = arith.constant 2.000000e-01 : f32
    %34 = vector.broadcast %cst_14 : f32 to vector<16x2048xf32>
    %35 = arith.mulf %34, %31 : vector<16x2048xf32>
    %36 = arith.select %33, %31, %35 : vector<16x2048xi1>, vector<16x2048xf32>
    %cst_15 = arith.constant 0.000000e+00 : f32
    %37 = vector.broadcast %cst_15 : f32 to vector<16x2048xf32>
    %38 = arith.select %11, %36, %37 : vector<16x2048xi1>, vector<16x2048xf32>
    %c0_16 = arith.constant 0 : index
    %c0_17 = arith.constant 0 : index
    %39 = vector.load %arg5[%c0_16, %c0_17] : memref<16x2048xf32, #tpu.memory_space<vmem>>, vector<16x2048xf32>
    tpu.vector_store %arg5[%c0_16, %c0_17], %38 {strides = array<i32>} : memref<16x2048xf32, #tpu.memory_space<vmem>>, vector<16x2048xf32>,
    return
  }
  func.func @transform_0(%arg0: i32) -> (i32, i32) {
    %c0_i32 = arith.constant 0 : i32
    %c0_i32_0 = arith.constant 0 : i32
    %c0_i32_1 = arith.constant 0 : i32
    return %c0_i32, %c0_i32_0 : i32, i32
  }
  func.func @transform_1(%arg0: i32) -> (i32, i32) {
    %c0_i32 = arith.constant 0 : i32
    %c0_i32_0 = arith.constant 0 : i32
    %c0_i32_1 = arith.constant 0 : i32
    return %c0_i32, %c0_i32_0 : i32, i32
  }
  func.func @transform_2(%arg0: i32) -> (i32, i32) {
    %c0_i32 = arith.constant 0 : i32
    %c0_i32_0 = arith.constant 0 : i32
    %c0_i32_1 = arith.constant 0 : i32
    return %c0_i32, %c0_i32_0 : i32, i32
  }
  func.func @transform_3(%arg0: i32) -> (i32, i32) {
    %c0_i32 = arith.constant 0 : i32
    %c0_i32_0 = arith.constant 0 : i32
    %c0_i32_1 = arith.constant 0 : i32
    return %c0_i32, %c0_i32_0 : i32, i32
  }
  func.func @transform_4(%arg0: i32) -> (i32, i32) {
    %c0_i32 = arith.constant 0 : i32
    %c0_i32_0 = arith.constant 0 : i32
    %c0_i32_1 = arith.constant 0 : i32
    return %c0_i32, %c0_i32_0 : i32, i32
  }
}

module attributes {stable_mosaic.version = 11 : i64} {
  func.func @_conv_bn_lrelu_kernel(%arg0: i32, %arg1: memref<16x48xbf16, #tpu.memory_space<vmem>>, %arg2: memref<48x512xbf16, #tpu.memory_space<vmem>>, %arg3: memref<16x1xf32, #tpu.memory_space<vmem>>, %arg4: memref<16x1xf32, #tpu.memory_space<vmem>>, %arg5: memref<16x512xf32, #tpu.memory_space<vmem>>) attributes {dimension_semantics = [#tpu.dimension_semantics<arbitrary>], iteration_bounds = array<i64: 1>, scalar_prefetch = 0 : i64, scratch_operands = 0 : i64, tpu.core_type = #tpu.core_type<tc>, window_params = [{pipeline_mode = #tpu.pipeline_mode<synchronous>, transform_indices = @transform_0, window_bounds = array<i64: 16, 48>}, {pipeline_mode = #tpu.pipeline_mode<synchronous>, transform_indices = @transform_1, window_bounds = array<i64: 48, 512>}, {pipeline_mode = #tpu.pipeline_mode<synchronous>, transform_indices = @transform_2, window_bounds = array<i64: 16, 1>}, {pipeline_mode = #tpu.pipeline_mode<synchronous>, transform_indices = @transform_3, window_bounds = array<i64: 16, 1>}, {pipeline_mode = #tpu.pipeline_mode<synchronous>, transform_indices = @transform_4, window_bounds = array<i64: 16, 512>}]} {
    %c0 = arith.constant 0 : index
    %c0_0 = arith.constant 0 : index
    %0 = vector.load %arg1[%c0, %c0_0] : memref<16x48xbf16, #tpu.memory_space<vmem>>, vector<16x48xbf16>
    %c0_1 = arith.constant 0 : index
    %c0_2 = arith.constant 0 : index
    %1 = vector.load %arg2[%c0_1, %c0_2] : memref<48x512xbf16, #tpu.memory_space<vmem>>, vector<48x512xbf16>
    %cst = arith.constant dense<0.000000e+00> : vector<16x512xf32>
    %2 = tpu.matmul %0, %1, %cst {dimension_numbers = #tpu.dot_dimension_numbers<[1], [0], [0], [1], [0, 0, 1, 1], [], []>} : vector<16x48xbf16>, vector<48x512xbf16>, vector<16x512xf32> -> vector<16x512xf32>
    %c0_3 = arith.constant 0 : index
    %c0_4 = arith.constant 0 : index
    %3 = vector.load %arg3[%c0_3, %c0_4] : memref<16x1xf32, #tpu.memory_space<vmem>>, vector<16x1xf32>
    %c0_5 = arith.constant 0 : index
    %c0_6 = arith.constant 0 : index
    %4 = vector.load %arg4[%c0_5, %c0_6] : memref<16x1xf32, #tpu.memory_space<vmem>>, vector<16x1xf32>
    %cst_7 = arith.constant dense<0.000000e+00> : vector<16xf32>
    %5 = vector.multi_reduction <add>, %2, %cst_7 [1] : vector<16x512xf32> to vector<16xf32>
    %6 = vector.shape_cast %5 : vector<16xf32> to vector<16x1xf32>
    %cst_8 = arith.constant 5.120000e+02 : f32
    %7 = vector.broadcast %cst_8 : f32 to vector<16x1xf32>
    %8 = arith.divf %6, %7 : vector<16x1xf32>
    %9 = tpu.iota {dimensions = array<i32: 1>} : vector<16x512xi32>
    %c512_i32 = arith.constant 512 : i32
    %10 = vector.broadcast %c512_i32 : i32 to vector<16x512xi32>
    %11 = arith.cmpi slt, %9, %10 : vector<16x512xi32>
    %12 = vector.broadcast %8 : vector<16x1xf32> to vector<16x512xf32>
    %13 = arith.subf %2, %12 : vector<16x512xf32>
    %cst_9 = arith.constant 0.000000e+00 : f32
    %14 = vector.broadcast %cst_9 : f32 to vector<16x512xf32>
    %15 = arith.select %11, %13, %14 : vector<16x512xi1>, vector<16x512xf32>
    %16 = arith.mulf %15, %15 : vector<16x512xf32>
    %cst_10 = arith.constant dense<0.000000e+00> : vector<16xf32>
    %17 = vector.multi_reduction <add>, %16, %cst_10 [1] : vector<16x512xf32> to vector<16xf32>
    %18 = vector.shape_cast %17 : vector<16xf32> to vector<16x1xf32>
    %cst_11 = arith.constant 5.120000e+02 : f32
    %19 = vector.broadcast %cst_11 : f32 to vector<16x1xf32>
    %20 = arith.divf %18, %19 : vector<16x1xf32>
    %cst_12 = arith.constant 9.99999974E-6 : f32
    %21 = vector.broadcast %cst_12 : f32 to vector<16x1xf32>
    %22 = arith.addf %20, %21 : vector<16x1xf32>
    %23 = math.rsqrt %22 : vector<16x1xf32>
    %24 = vector.broadcast %8 : vector<16x1xf32> to vector<16x512xf32>
    %25 = arith.subf %2, %24 : vector<16x512xf32>
    %26 = vector.broadcast %23 : vector<16x1xf32> to vector<16x512xf32>
    %27 = arith.mulf %25, %26 : vector<16x512xf32>
    %28 = vector.broadcast %3 : vector<16x1xf32> to vector<16x512xf32>
    %29 = arith.mulf %27, %28 : vector<16x512xf32>
    %30 = vector.broadcast %4 : vector<16x1xf32> to vector<16x512xf32>
    %31 = arith.addf %29, %30 : vector<16x512xf32>
    %cst_13 = arith.constant 0.000000e+00 : f32
    %32 = vector.broadcast %cst_13 : f32 to vector<16x512xf32>
    %33 = arith.cmpf oge, %31, %32 : vector<16x512xf32>
    %cst_14 = arith.constant 2.000000e-01 : f32
    %34 = vector.broadcast %cst_14 : f32 to vector<16x512xf32>
    %35 = arith.mulf %34, %31 : vector<16x512xf32>
    %36 = arith.select %33, %31, %35 : vector<16x512xi1>, vector<16x512xf32>
    %cst_15 = arith.constant 0.000000e+00 : f32
    %37 = vector.broadcast %cst_15 : f32 to vector<16x512xf32>
    %38 = arith.select %11, %36, %37 : vector<16x512xi1>, vector<16x512xf32>
    %c0_16 = arith.constant 0 : index
    %c0_17 = arith.constant 0 : index
    %39 = vector.load %arg5[%c0_16, %c0_17] : memref<16x512xf32, #tpu.memory_space<vmem>>, vector<16x512xf32>
    tpu.vector_store %arg5[%c0_16, %c0_17], %38 {strides = array<i32>} : memref<16x512xf32, #tpu.memory_space<vmem>>, vector<16x512xf32>,
    return
  }
  func.func @transform_0(%arg0: i32) -> (i32, i32) {
    %c0_i32 = arith.constant 0 : i32
    %c0_i32_0 = arith.constant 0 : i32
    %c0_i32_1 = arith.constant 0 : i32
    return %c0_i32, %c0_i32_0 : i32, i32
  }
  func.func @transform_1(%arg0: i32) -> (i32, i32) {
    %c0_i32 = arith.constant 0 : i32
    %c0_i32_0 = arith.constant 0 : i32
    %c0_i32_1 = arith.constant 0 : i32
    return %c0_i32, %c0_i32_0 : i32, i32
  }
  func.func @transform_2(%arg0: i32) -> (i32, i32) {
    %c0_i32 = arith.constant 0 : i32
    %c0_i32_0 = arith.constant 0 : i32
    %c0_i32_1 = arith.constant 0 : i32
    return %c0_i32, %c0_i32_0 : i32, i32
  }
  func.func @transform_3(%arg0: i32) -> (i32, i32) {
    %c0_i32 = arith.constant 0 : i32
    %c0_i32_0 = arith.constant 0 : i32
    %c0_i32_1 = arith.constant 0 : i32
    return %c0_i32, %c0_i32_0 : i32, i32
  }
  func.func @transform_4(%arg0: i32) -> (i32, i32) {
    %c0_i32 = arith.constant 0 : i32
    %c0_i32_0 = arith.constant 0 : i32
    %c0_i32_1 = arith.constant 0 : i32
    return %c0_i32, %c0_i32_0 : i32, i32
  }
}

module attributes {stable_mosaic.version = 11 : i64} {
  func.func @_conv_bn_res_lrelu_kernel(%arg0: i32, %arg1: memref<16x80xbf16, #tpu.memory_space<vmem>>, %arg2: memref<80x512xbf16, #tpu.memory_space<vmem>>, %arg3: memref<16x1xf32, #tpu.memory_space<vmem>>, %arg4: memref<16x1xf32, #tpu.memory_space<vmem>>, %arg5: memref<16x512xf32, #tpu.memory_space<vmem>>, %arg6: memref<16x512xf32, #tpu.memory_space<vmem>>) attributes {dimension_semantics = [#tpu.dimension_semantics<arbitrary>], iteration_bounds = array<i64: 1>, scalar_prefetch = 0 : i64, scratch_operands = 0 : i64, tpu.core_type = #tpu.core_type<tc>, window_params = [{pipeline_mode = #tpu.pipeline_mode<synchronous>, transform_indices = @transform_0, window_bounds = array<i64: 16, 80>}, {pipeline_mode = #tpu.pipeline_mode<synchronous>, transform_indices = @transform_1, window_bounds = array<i64: 80, 512>}, {pipeline_mode = #tpu.pipeline_mode<synchronous>, transform_indices = @transform_2, window_bounds = array<i64: 16, 1>}, {pipeline_mode = #tpu.pipeline_mode<synchronous>, transform_indices = @transform_3, window_bounds = array<i64: 16, 1>}, {pipeline_mode = #tpu.pipeline_mode<synchronous>, transform_indices = @transform_4, window_bounds = array<i64: 16, 512>}, {pipeline_mode = #tpu.pipeline_mode<synchronous>, transform_indices = @transform_5, window_bounds = array<i64: 16, 512>}]} {
    %c0 = arith.constant 0 : index
    %c0_0 = arith.constant 0 : index
    %0 = vector.load %arg1[%c0, %c0_0] : memref<16x80xbf16, #tpu.memory_space<vmem>>, vector<16x80xbf16>
    %c0_1 = arith.constant 0 : index
    %c0_2 = arith.constant 0 : index
    %1 = vector.load %arg2[%c0_1, %c0_2] : memref<80x512xbf16, #tpu.memory_space<vmem>>, vector<80x512xbf16>
    %cst = arith.constant dense<0.000000e+00> : vector<16x512xf32>
    %2 = tpu.matmul %0, %1, %cst {dimension_numbers = #tpu.dot_dimension_numbers<[1], [0], [0], [1], [0, 0, 1, 1], [], []>} : vector<16x80xbf16>, vector<80x512xbf16>, vector<16x512xf32> -> vector<16x512xf32>
    %c0_3 = arith.constant 0 : index
    %c0_4 = arith.constant 0 : index
    %3 = vector.load %arg3[%c0_3, %c0_4] : memref<16x1xf32, #tpu.memory_space<vmem>>, vector<16x1xf32>
    %c0_5 = arith.constant 0 : index
    %c0_6 = arith.constant 0 : index
    %4 = vector.load %arg4[%c0_5, %c0_6] : memref<16x1xf32, #tpu.memory_space<vmem>>, vector<16x1xf32>
    %c0_7 = arith.constant 0 : index
    %c0_8 = arith.constant 0 : index
    %5 = vector.load %arg5[%c0_7, %c0_8] : memref<16x512xf32, #tpu.memory_space<vmem>>, vector<16x512xf32>
    %cst_9 = arith.constant dense<0.000000e+00> : vector<16xf32>
    %6 = vector.multi_reduction <add>, %2, %cst_9 [1] : vector<16x512xf32> to vector<16xf32>
    %7 = vector.shape_cast %6 : vector<16xf32> to vector<16x1xf32>
    %cst_10 = arith.constant 5.120000e+02 : f32
    %8 = vector.broadcast %cst_10 : f32 to vector<16x1xf32>
    %9 = arith.divf %7, %8 : vector<16x1xf32>
    %10 = tpu.iota {dimensions = array<i32: 1>} : vector<16x512xi32>
    %c512_i32 = arith.constant 512 : i32
    %11 = vector.broadcast %c512_i32 : i32 to vector<16x512xi32>
    %12 = arith.cmpi slt, %10, %11 : vector<16x512xi32>
    %13 = vector.broadcast %9 : vector<16x1xf32> to vector<16x512xf32>
    %14 = arith.subf %2, %13 : vector<16x512xf32>
    %cst_11 = arith.constant 0.000000e+00 : f32
    %15 = vector.broadcast %cst_11 : f32 to vector<16x512xf32>
    %16 = arith.select %12, %14, %15 : vector<16x512xi1>, vector<16x512xf32>
    %17 = arith.mulf %16, %16 : vector<16x512xf32>
    %cst_12 = arith.constant dense<0.000000e+00> : vector<16xf32>
    %18 = vector.multi_reduction <add>, %17, %cst_12 [1] : vector<16x512xf32> to vector<16xf32>
    %19 = vector.shape_cast %18 : vector<16xf32> to vector<16x1xf32>
    %cst_13 = arith.constant 5.120000e+02 : f32
    %20 = vector.broadcast %cst_13 : f32 to vector<16x1xf32>
    %21 = arith.divf %19, %20 : vector<16x1xf32>
    %cst_14 = arith.constant 9.99999974E-6 : f32
    %22 = vector.broadcast %cst_14 : f32 to vector<16x1xf32>
    %23 = arith.addf %21, %22 : vector<16x1xf32>
    %24 = math.rsqrt %23 : vector<16x1xf32>
    %25 = vector.broadcast %9 : vector<16x1xf32> to vector<16x512xf32>
    %26 = arith.subf %2, %25 : vector<16x512xf32>
    %27 = vector.broadcast %24 : vector<16x1xf32> to vector<16x512xf32>
    %28 = arith.mulf %26, %27 : vector<16x512xf32>
    %29 = vector.broadcast %3 : vector<16x1xf32> to vector<16x512xf32>
    %30 = arith.mulf %28, %29 : vector<16x512xf32>
    %31 = vector.broadcast %4 : vector<16x1xf32> to vector<16x512xf32>
    %32 = arith.addf %30, %31 : vector<16x512xf32>
    %33 = arith.addf %32, %5 : vector<16x512xf32>
    %cst_15 = arith.constant 0.000000e+00 : f32
    %34 = vector.broadcast %cst_15 : f32 to vector<16x512xf32>
    %35 = arith.cmpf oge, %33, %34 : vector<16x512xf32>
    %cst_16 = arith.constant 2.000000e-01 : f32
    %36 = vector.broadcast %cst_16 : f32 to vector<16x512xf32>
    %37 = arith.mulf %36, %33 : vector<16x512xf32>
    %38 = arith.select %35, %33, %37 : vector<16x512xi1>, vector<16x512xf32>
    %cst_17 = arith.constant 0.000000e+00 : f32
    %39 = vector.broadcast %cst_17 : f32 to vector<16x512xf32>
    %40 = arith.select %12, %38, %39 : vector<16x512xi1>, vector<16x512xf32>
    %c0_18 = arith.constant 0 : index
    %c0_19 = arith.constant 0 : index
    %41 = vector.load %arg6[%c0_18, %c0_19] : memref<16x512xf32, #tpu.memory_space<vmem>>, vector<16x512xf32>
    tpu.vector_store %arg6[%c0_18, %c0_19], %40 {strides = array<i32>} : memref<16x512xf32, #tpu.memory_space<vmem>>, vector<16x512xf32>,
    return
  }
  func.func @transform_0(%arg0: i32) -> (i32, i32) {
    %c0_i32 = arith.constant 0 : i32
    %c0_i32_0 = arith.constant 0 : i32
    %c0_i32_1 = arith.constant 0 : i32
    return %c0_i32, %c0_i32_0 : i32, i32
  }
  func.func @transform_1(%arg0: i32) -> (i32, i32) {
    %c0_i32 = arith.constant 0 : i32
    %c0_i32_0 = arith.constant 0 : i32
    %c0_i32_1 = arith.constant 0 : i32
    return %c0_i32, %c0_i32_0 : i32, i32
  }
  func.func @transform_2(%arg0: i32) -> (i32, i32) {
    %c0_i32 = arith.constant 0 : i32
    %c0_i32_0 = arith.constant 0 : i32
    %c0_i32_1 = arith.constant 0 : i32
    return %c0_i32, %c0_i32_0 : i32, i32
  }
  func.func @transform_3(%arg0: i32) -> (i32, i32) {
    %c0_i32 = arith.constant 0 : i32
    %c0_i32_0 = arith.constant 0 : i32
    %c0_i32_1 = arith.constant 0 : i32
    return %c0_i32, %c0_i32_0 : i32, i32
  }
  func.func @transform_4(%arg0: i32) -> (i32, i32) {
    %c0_i32 = arith.constant 0 : i32
    %c0_i32_0 = arith.constant 0 : i32
    %c0_i32_1 = arith.constant 0 : i32
    return %c0_i32, %c0_i32_0 : i32, i32
  }
  func.func @transform_5(%arg0: i32) -> (i32, i32) {
    %c0_i32 = arith.constant 0 : i32
    %c0_i32_0 = arith.constant 0 : i32
    %c0_i32_1 = arith.constant 0 : i32
    return %c0_i32, %c0_i32_0 : i32, i32
  }
}

module attributes {stable_mosaic.version = 11 : i64} {
  func.func @_conv_bn_lrelu_kernel(%arg0: i32, %arg1: memref<16x80xbf16, #tpu.memory_space<vmem>>, %arg2: memref<80x512xbf16, #tpu.memory_space<vmem>>, %arg3: memref<16x1xf32, #tpu.memory_space<vmem>>, %arg4: memref<16x1xf32, #tpu.memory_space<vmem>>, %arg5: memref<16x512xf32, #tpu.memory_space<vmem>>) attributes {dimension_semantics = [#tpu.dimension_semantics<arbitrary>], iteration_bounds = array<i64: 1>, scalar_prefetch = 0 : i64, scratch_operands = 0 : i64, tpu.core_type = #tpu.core_type<tc>, window_params = [{pipeline_mode = #tpu.pipeline_mode<synchronous>, transform_indices = @transform_0, window_bounds = array<i64: 16, 80>}, {pipeline_mode = #tpu.pipeline_mode<synchronous>, transform_indices = @transform_1, window_bounds = array<i64: 80, 512>}, {pipeline_mode = #tpu.pipeline_mode<synchronous>, transform_indices = @transform_2, window_bounds = array<i64: 16, 1>}, {pipeline_mode = #tpu.pipeline_mode<synchronous>, transform_indices = @transform_3, window_bounds = array<i64: 16, 1>}, {pipeline_mode = #tpu.pipeline_mode<synchronous>, transform_indices = @transform_4, window_bounds = array<i64: 16, 512>}]} {
    %c0 = arith.constant 0 : index
    %c0_0 = arith.constant 0 : index
    %0 = vector.load %arg1[%c0, %c0_0] : memref<16x80xbf16, #tpu.memory_space<vmem>>, vector<16x80xbf16>
    %c0_1 = arith.constant 0 : index
    %c0_2 = arith.constant 0 : index
    %1 = vector.load %arg2[%c0_1, %c0_2] : memref<80x512xbf16, #tpu.memory_space<vmem>>, vector<80x512xbf16>
    %cst = arith.constant dense<0.000000e+00> : vector<16x512xf32>
    %2 = tpu.matmul %0, %1, %cst {dimension_numbers = #tpu.dot_dimension_numbers<[1], [0], [0], [1], [0, 0, 1, 1], [], []>} : vector<16x80xbf16>, vector<80x512xbf16>, vector<16x512xf32> -> vector<16x512xf32>
    %c0_3 = arith.constant 0 : index
    %c0_4 = arith.constant 0 : index
    %3 = vector.load %arg3[%c0_3, %c0_4] : memref<16x1xf32, #tpu.memory_space<vmem>>, vector<16x1xf32>
    %c0_5 = arith.constant 0 : index
    %c0_6 = arith.constant 0 : index
    %4 = vector.load %arg4[%c0_5, %c0_6] : memref<16x1xf32, #tpu.memory_space<vmem>>, vector<16x1xf32>
    %cst_7 = arith.constant dense<0.000000e+00> : vector<16xf32>
    %5 = vector.multi_reduction <add>, %2, %cst_7 [1] : vector<16x512xf32> to vector<16xf32>
    %6 = vector.shape_cast %5 : vector<16xf32> to vector<16x1xf32>
    %cst_8 = arith.constant 5.120000e+02 : f32
    %7 = vector.broadcast %cst_8 : f32 to vector<16x1xf32>
    %8 = arith.divf %6, %7 : vector<16x1xf32>
    %9 = tpu.iota {dimensions = array<i32: 1>} : vector<16x512xi32>
    %c512_i32 = arith.constant 512 : i32
    %10 = vector.broadcast %c512_i32 : i32 to vector<16x512xi32>
    %11 = arith.cmpi slt, %9, %10 : vector<16x512xi32>
    %12 = vector.broadcast %8 : vector<16x1xf32> to vector<16x512xf32>
    %13 = arith.subf %2, %12 : vector<16x512xf32>
    %cst_9 = arith.constant 0.000000e+00 : f32
    %14 = vector.broadcast %cst_9 : f32 to vector<16x512xf32>
    %15 = arith.select %11, %13, %14 : vector<16x512xi1>, vector<16x512xf32>
    %16 = arith.mulf %15, %15 : vector<16x512xf32>
    %cst_10 = arith.constant dense<0.000000e+00> : vector<16xf32>
    %17 = vector.multi_reduction <add>, %16, %cst_10 [1] : vector<16x512xf32> to vector<16xf32>
    %18 = vector.shape_cast %17 : vector<16xf32> to vector<16x1xf32>
    %cst_11 = arith.constant 5.120000e+02 : f32
    %19 = vector.broadcast %cst_11 : f32 to vector<16x1xf32>
    %20 = arith.divf %18, %19 : vector<16x1xf32>
    %cst_12 = arith.constant 9.99999974E-6 : f32
    %21 = vector.broadcast %cst_12 : f32 to vector<16x1xf32>
    %22 = arith.addf %20, %21 : vector<16x1xf32>
    %23 = math.rsqrt %22 : vector<16x1xf32>
    %24 = vector.broadcast %8 : vector<16x1xf32> to vector<16x512xf32>
    %25 = arith.subf %2, %24 : vector<16x512xf32>
    %26 = vector.broadcast %23 : vector<16x1xf32> to vector<16x512xf32>
    %27 = arith.mulf %25, %26 : vector<16x512xf32>
    %28 = vector.broadcast %3 : vector<16x1xf32> to vector<16x512xf32>
    %29 = arith.mulf %27, %28 : vector<16x512xf32>
    %30 = vector.broadcast %4 : vector<16x1xf32> to vector<16x512xf32>
    %31 = arith.addf %29, %30 : vector<16x512xf32>
    %cst_13 = arith.constant 0.000000e+00 : f32
    %32 = vector.broadcast %cst_13 : f32 to vector<16x512xf32>
    %33 = arith.cmpf oge, %31, %32 : vector<16x512xf32>
    %cst_14 = arith.constant 2.000000e-01 : f32
    %34 = vector.broadcast %cst_14 : f32 to vector<16x512xf32>
    %35 = arith.mulf %34, %31 : vector<16x512xf32>
    %36 = arith.select %33, %31, %35 : vector<16x512xi1>, vector<16x512xf32>
    %cst_15 = arith.constant 0.000000e+00 : f32
    %37 = vector.broadcast %cst_15 : f32 to vector<16x512xf32>
    %38 = arith.select %11, %36, %37 : vector<16x512xi1>, vector<16x512xf32>
    %c0_16 = arith.constant 0 : index
    %c0_17 = arith.constant 0 : index
    %39 = vector.load %arg5[%c0_16, %c0_17] : memref<16x512xf32, #tpu.memory_space<vmem>>, vector<16x512xf32>
    tpu.vector_store %arg5[%c0_16, %c0_17], %38 {strides = array<i32>} : memref<16x512xf32, #tpu.memory_space<vmem>>, vector<16x512xf32>,
    return
  }
  func.func @transform_0(%arg0: i32) -> (i32, i32) {
    %c0_i32 = arith.constant 0 : i32
    %c0_i32_0 = arith.constant 0 : i32
    %c0_i32_1 = arith.constant 0 : i32
    return %c0_i32, %c0_i32_0 : i32, i32
  }
  func.func @transform_1(%arg0: i32) -> (i32, i32) {
    %c0_i32 = arith.constant 0 : i32
    %c0_i32_0 = arith.constant 0 : i32
    %c0_i32_1 = arith.constant 0 : i32
    return %c0_i32, %c0_i32_0 : i32, i32
  }
  func.func @transform_2(%arg0: i32) -> (i32, i32) {
    %c0_i32 = arith.constant 0 : i32
    %c0_i32_0 = arith.constant 0 : i32
    %c0_i32_1 = arith.constant 0 : i32
    return %c0_i32, %c0_i32_0 : i32, i32
  }
  func.func @transform_3(%arg0: i32) -> (i32, i32) {
    %c0_i32 = arith.constant 0 : i32
    %c0_i32_0 = arith.constant 0 : i32
    %c0_i32_1 = arith.constant 0 : i32
    return %c0_i32, %c0_i32_0 : i32, i32
  }
  func.func @transform_4(%arg0: i32) -> (i32, i32) {
    %c0_i32 = arith.constant 0 : i32
    %c0_i32_0 = arith.constant 0 : i32
    %c0_i32_1 = arith.constant 0 : i32
    return %c0_i32, %c0_i32_0 : i32, i32
  }
}

module attributes {stable_mosaic.version = 11 : i64} {
  func.func @_conv_bn_lrelu_kernel(%arg0: i32, %arg1: memref<16x80xbf16, #tpu.memory_space<vmem>>, %arg2: memref<80x128xbf16, #tpu.memory_space<vmem>>, %arg3: memref<16x1xf32, #tpu.memory_space<vmem>>, %arg4: memref<16x1xf32, #tpu.memory_space<vmem>>, %arg5: memref<16x128xf32, #tpu.memory_space<vmem>>) attributes {dimension_semantics = [#tpu.dimension_semantics<arbitrary>], iteration_bounds = array<i64: 1>, scalar_prefetch = 0 : i64, scratch_operands = 0 : i64, tpu.core_type = #tpu.core_type<tc>, window_params = [{pipeline_mode = #tpu.pipeline_mode<synchronous>, transform_indices = @transform_0, window_bounds = array<i64: 16, 80>}, {pipeline_mode = #tpu.pipeline_mode<synchronous>, transform_indices = @transform_1, window_bounds = array<i64: 80, 128>}, {pipeline_mode = #tpu.pipeline_mode<synchronous>, transform_indices = @transform_2, window_bounds = array<i64: 16, 1>}, {pipeline_mode = #tpu.pipeline_mode<synchronous>, transform_indices = @transform_3, window_bounds = array<i64: 16, 1>}, {pipeline_mode = #tpu.pipeline_mode<synchronous>, transform_indices = @transform_4, window_bounds = array<i64: 16, 128>}]} {
    %c0 = arith.constant 0 : index
    %c0_0 = arith.constant 0 : index
    %0 = vector.load %arg1[%c0, %c0_0] : memref<16x80xbf16, #tpu.memory_space<vmem>>, vector<16x80xbf16>
    %c0_1 = arith.constant 0 : index
    %c0_2 = arith.constant 0 : index
    %1 = vector.load %arg2[%c0_1, %c0_2] : memref<80x128xbf16, #tpu.memory_space<vmem>>, vector<80x128xbf16>
    %cst = arith.constant dense<0.000000e+00> : vector<16x128xf32>
    %2 = tpu.matmul %0, %1, %cst {dimension_numbers = #tpu.dot_dimension_numbers<[1], [0], [0], [1], [0, 0, 1, 1], [], []>} : vector<16x80xbf16>, vector<80x128xbf16>, vector<16x128xf32> -> vector<16x128xf32>
    %c0_3 = arith.constant 0 : index
    %c0_4 = arith.constant 0 : index
    %3 = vector.load %arg3[%c0_3, %c0_4] : memref<16x1xf32, #tpu.memory_space<vmem>>, vector<16x1xf32>
    %c0_5 = arith.constant 0 : index
    %c0_6 = arith.constant 0 : index
    %4 = vector.load %arg4[%c0_5, %c0_6] : memref<16x1xf32, #tpu.memory_space<vmem>>, vector<16x1xf32>
    %cst_7 = arith.constant dense<0.000000e+00> : vector<16xf32>
    %5 = vector.multi_reduction <add>, %2, %cst_7 [1] : vector<16x128xf32> to vector<16xf32>
    %6 = vector.shape_cast %5 : vector<16xf32> to vector<16x1xf32>
    %cst_8 = arith.constant 1.280000e+02 : f32
    %7 = vector.broadcast %cst_8 : f32 to vector<16x1xf32>
    %8 = arith.divf %6, %7 : vector<16x1xf32>
    %9 = tpu.iota {dimensions = array<i32: 1>} : vector<16x128xi32>
    %c128_i32 = arith.constant 128 : i32
    %10 = vector.broadcast %c128_i32 : i32 to vector<16x128xi32>
    %11 = arith.cmpi slt, %9, %10 : vector<16x128xi32>
    %12 = vector.broadcast %8 : vector<16x1xf32> to vector<16x128xf32>
    %13 = arith.subf %2, %12 : vector<16x128xf32>
    %cst_9 = arith.constant 0.000000e+00 : f32
    %14 = vector.broadcast %cst_9 : f32 to vector<16x128xf32>
    %15 = arith.select %11, %13, %14 : vector<16x128xi1>, vector<16x128xf32>
    %16 = arith.mulf %15, %15 : vector<16x128xf32>
    %cst_10 = arith.constant dense<0.000000e+00> : vector<16xf32>
    %17 = vector.multi_reduction <add>, %16, %cst_10 [1] : vector<16x128xf32> to vector<16xf32>
    %18 = vector.shape_cast %17 : vector<16xf32> to vector<16x1xf32>
    %cst_11 = arith.constant 1.280000e+02 : f32
    %19 = vector.broadcast %cst_11 : f32 to vector<16x1xf32>
    %20 = arith.divf %18, %19 : vector<16x1xf32>
    %cst_12 = arith.constant 9.99999974E-6 : f32
    %21 = vector.broadcast %cst_12 : f32 to vector<16x1xf32>
    %22 = arith.addf %20, %21 : vector<16x1xf32>
    %23 = math.rsqrt %22 : vector<16x1xf32>
    %24 = vector.broadcast %8 : vector<16x1xf32> to vector<16x128xf32>
    %25 = arith.subf %2, %24 : vector<16x128xf32>
    %26 = vector.broadcast %23 : vector<16x1xf32> to vector<16x128xf32>
    %27 = arith.mulf %25, %26 : vector<16x128xf32>
    %28 = vector.broadcast %3 : vector<16x1xf32> to vector<16x128xf32>
    %29 = arith.mulf %27, %28 : vector<16x128xf32>
    %30 = vector.broadcast %4 : vector<16x1xf32> to vector<16x128xf32>
    %31 = arith.addf %29, %30 : vector<16x128xf32>
    %cst_13 = arith.constant 0.000000e+00 : f32
    %32 = vector.broadcast %cst_13 : f32 to vector<16x128xf32>
    %33 = arith.cmpf oge, %31, %32 : vector<16x128xf32>
    %cst_14 = arith.constant 2.000000e-01 : f32
    %34 = vector.broadcast %cst_14 : f32 to vector<16x128xf32>
    %35 = arith.mulf %34, %31 : vector<16x128xf32>
    %36 = arith.select %33, %31, %35 : vector<16x128xi1>, vector<16x128xf32>
    %cst_15 = arith.constant 0.000000e+00 : f32
    %37 = vector.broadcast %cst_15 : f32 to vector<16x128xf32>
    %38 = arith.select %11, %36, %37 : vector<16x128xi1>, vector<16x128xf32>
    %c0_16 = arith.constant 0 : index
    %c0_17 = arith.constant 0 : index
    %39 = vector.load %arg5[%c0_16, %c0_17] : memref<16x128xf32, #tpu.memory_space<vmem>>, vector<16x128xf32>
    tpu.vector_store %arg5[%c0_16, %c0_17], %38 {strides = array<i32>} : memref<16x128xf32, #tpu.memory_space<vmem>>, vector<16x128xf32>,
    return
  }
  func.func @transform_0(%arg0: i32) -> (i32, i32) {
    %c0_i32 = arith.constant 0 : i32
    %c0_i32_0 = arith.constant 0 : i32
    %c0_i32_1 = arith.constant 0 : i32
    return %c0_i32, %c0_i32_0 : i32, i32
  }
  func.func @transform_1(%arg0: i32) -> (i32, i32) {
    %c0_i32 = arith.constant 0 : i32
    %c0_i32_0 = arith.constant 0 : i32
    %c0_i32_1 = arith.constant 0 : i32
    return %c0_i32, %c0_i32_0 : i32, i32
  }
  func.func @transform_2(%arg0: i32) -> (i32, i32) {
    %c0_i32 = arith.constant 0 : i32
    %c0_i32_0 = arith.constant 0 : i32
    %c0_i32_1 = arith.constant 0 : i32
    return %c0_i32, %c0_i32_0 : i32, i32
  }
  func.func @transform_3(%arg0: i32) -> (i32, i32) {
    %c0_i32 = arith.constant 0 : i32
    %c0_i32_0 = arith.constant 0 : i32
    %c0_i32_1 = arith.constant 0 : i32
    return %c0_i32, %c0_i32_0 : i32, i32
  }
  func.func @transform_4(%arg0: i32) -> (i32, i32) {
    %c0_i32 = arith.constant 0 : i32
    %c0_i32_0 = arith.constant 0 : i32
    %c0_i32_1 = arith.constant 0 : i32
    return %c0_i32, %c0_i32_0 : i32, i32
  }
}

module attributes {stable_mosaic.version = 11 : i64} {
  func.func @_conv_bn_lrelu_kernel(%arg0: i32, %arg1: memref<16x144xbf16, #tpu.memory_space<vmem>>, %arg2: memref<144x128xbf16, #tpu.memory_space<vmem>>, %arg3: memref<16x1xf32, #tpu.memory_space<vmem>>, %arg4: memref<16x1xf32, #tpu.memory_space<vmem>>, %arg5: memref<16x128xf32, #tpu.memory_space<vmem>>) attributes {dimension_semantics = [#tpu.dimension_semantics<arbitrary>], iteration_bounds = array<i64: 1>, scalar_prefetch = 0 : i64, scratch_operands = 0 : i64, tpu.core_type = #tpu.core_type<tc>, window_params = [{pipeline_mode = #tpu.pipeline_mode<synchronous>, transform_indices = @transform_0, window_bounds = array<i64: 16, 144>}, {pipeline_mode = #tpu.pipeline_mode<synchronous>, transform_indices = @transform_1, window_bounds = array<i64: 144, 128>}, {pipeline_mode = #tpu.pipeline_mode<synchronous>, transform_indices = @transform_2, window_bounds = array<i64: 16, 1>}, {pipeline_mode = #tpu.pipeline_mode<synchronous>, transform_indices = @transform_3, window_bounds = array<i64: 16, 1>}, {pipeline_mode = #tpu.pipeline_mode<synchronous>, transform_indices = @transform_4, window_bounds = array<i64: 16, 128>}]} {
    %c0 = arith.constant 0 : index
    %c0_0 = arith.constant 0 : index
    %0 = vector.load %arg1[%c0, %c0_0] : memref<16x144xbf16, #tpu.memory_space<vmem>>, vector<16x144xbf16>
    %c0_1 = arith.constant 0 : index
    %c0_2 = arith.constant 0 : index
    %1 = vector.load %arg2[%c0_1, %c0_2] : memref<144x128xbf16, #tpu.memory_space<vmem>>, vector<144x128xbf16>
    %cst = arith.constant dense<0.000000e+00> : vector<16x128xf32>
    %2 = tpu.matmul %0, %1, %cst {dimension_numbers = #tpu.dot_dimension_numbers<[1], [0], [0], [1], [0, 0, 1, 1], [], []>} : vector<16x144xbf16>, vector<144x128xbf16>, vector<16x128xf32> -> vector<16x128xf32>
    %c0_3 = arith.constant 0 : index
    %c0_4 = arith.constant 0 : index
    %3 = vector.load %arg3[%c0_3, %c0_4] : memref<16x1xf32, #tpu.memory_space<vmem>>, vector<16x1xf32>
    %c0_5 = arith.constant 0 : index
    %c0_6 = arith.constant 0 : index
    %4 = vector.load %arg4[%c0_5, %c0_6] : memref<16x1xf32, #tpu.memory_space<vmem>>, vector<16x1xf32>
    %cst_7 = arith.constant dense<0.000000e+00> : vector<16xf32>
    %5 = vector.multi_reduction <add>, %2, %cst_7 [1] : vector<16x128xf32> to vector<16xf32>
    %6 = vector.shape_cast %5 : vector<16xf32> to vector<16x1xf32>
    %cst_8 = arith.constant 1.280000e+02 : f32
    %7 = vector.broadcast %cst_8 : f32 to vector<16x1xf32>
    %8 = arith.divf %6, %7 : vector<16x1xf32>
    %9 = tpu.iota {dimensions = array<i32: 1>} : vector<16x128xi32>
    %c128_i32 = arith.constant 128 : i32
    %10 = vector.broadcast %c128_i32 : i32 to vector<16x128xi32>
    %11 = arith.cmpi slt, %9, %10 : vector<16x128xi32>
    %12 = vector.broadcast %8 : vector<16x1xf32> to vector<16x128xf32>
    %13 = arith.subf %2, %12 : vector<16x128xf32>
    %cst_9 = arith.constant 0.000000e+00 : f32
    %14 = vector.broadcast %cst_9 : f32 to vector<16x128xf32>
    %15 = arith.select %11, %13, %14 : vector<16x128xi1>, vector<16x128xf32>
    %16 = arith.mulf %15, %15 : vector<16x128xf32>
    %cst_10 = arith.constant dense<0.000000e+00> : vector<16xf32>
    %17 = vector.multi_reduction <add>, %16, %cst_10 [1] : vector<16x128xf32> to vector<16xf32>
    %18 = vector.shape_cast %17 : vector<16xf32> to vector<16x1xf32>
    %cst_11 = arith.constant 1.280000e+02 : f32
    %19 = vector.broadcast %cst_11 : f32 to vector<16x1xf32>
    %20 = arith.divf %18, %19 : vector<16x1xf32>
    %cst_12 = arith.constant 9.99999974E-6 : f32
    %21 = vector.broadcast %cst_12 : f32 to vector<16x1xf32>
    %22 = arith.addf %20, %21 : vector<16x1xf32>
    %23 = math.rsqrt %22 : vector<16x1xf32>
    %24 = vector.broadcast %8 : vector<16x1xf32> to vector<16x128xf32>
    %25 = arith.subf %2, %24 : vector<16x128xf32>
    %26 = vector.broadcast %23 : vector<16x1xf32> to vector<16x128xf32>
    %27 = arith.mulf %25, %26 : vector<16x128xf32>
    %28 = vector.broadcast %3 : vector<16x1xf32> to vector<16x128xf32>
    %29 = arith.mulf %27, %28 : vector<16x128xf32>
    %30 = vector.broadcast %4 : vector<16x1xf32> to vector<16x128xf32>
    %31 = arith.addf %29, %30 : vector<16x128xf32>
    %cst_13 = arith.constant 0.000000e+00 : f32
    %32 = vector.broadcast %cst_13 : f32 to vector<16x128xf32>
    %33 = arith.cmpf oge, %31, %32 : vector<16x128xf32>
    %cst_14 = arith.constant 2.000000e-01 : f32
    %34 = vector.broadcast %cst_14 : f32 to vector<16x128xf32>
    %35 = arith.mulf %34, %31 : vector<16x128xf32>
    %36 = arith.select %33, %31, %35 : vector<16x128xi1>, vector<16x128xf32>
    %cst_15 = arith.constant 0.000000e+00 : f32
    %37 = vector.broadcast %cst_15 : f32 to vector<16x128xf32>
    %38 = arith.select %11, %36, %37 : vector<16x128xi1>, vector<16x128xf32>
    %c0_16 = arith.constant 0 : index
    %c0_17 = arith.constant 0 : index
    %39 = vector.load %arg5[%c0_16, %c0_17] : memref<16x128xf32, #tpu.memory_space<vmem>>, vector<16x128xf32>
    tpu.vector_store %arg5[%c0_16, %c0_17], %38 {strides = array<i32>} : memref<16x128xf32, #tpu.memory_space<vmem>>, vector<16x128xf32>,
    return
  }
  func.func @transform_0(%arg0: i32) -> (i32, i32) {
    %c0_i32 = arith.constant 0 : i32
    %c0_i32_0 = arith.constant 0 : i32
    %c0_i32_1 = arith.constant 0 : i32
    return %c0_i32, %c0_i32_0 : i32, i32
  }
  func.func @transform_1(%arg0: i32) -> (i32, i32) {
    %c0_i32 = arith.constant 0 : i32
    %c0_i32_0 = arith.constant 0 : i32
    %c0_i32_1 = arith.constant 0 : i32
    return %c0_i32, %c0_i32_0 : i32, i32
  }
  func.func @transform_2(%arg0: i32) -> (i32, i32) {
    %c0_i32 = arith.constant 0 : i32
    %c0_i32_0 = arith.constant 0 : i32
    %c0_i32_1 = arith.constant 0 : i32
    return %c0_i32, %c0_i32_0 : i32, i32
  }
  func.func @transform_3(%arg0: i32) -> (i32, i32) {
    %c0_i32 = arith.constant 0 : i32
    %c0_i32_0 = arith.constant 0 : i32
    %c0_i32_1 = arith.constant 0 : i32
    return %c0_i32, %c0_i32_0 : i32, i32
  }
  func.func @transform_4(%arg0: i32) -> (i32, i32) {
    %c0_i32 = arith.constant 0 : i32
    %c0_i32_0 = arith.constant 0 : i32
    %c0_i32_1 = arith.constant 0 : i32
    return %c0_i32, %c0_i32_0 : i32, i32
  }
}

module attributes {stable_mosaic.version = 11 : i64} {
  func.func @_conv_bn_res_lrelu_kernel(%arg0: i32, %arg1: memref<16x144xbf16, #tpu.memory_space<vmem>>, %arg2: memref<144x128xbf16, #tpu.memory_space<vmem>>, %arg3: memref<16x1xf32, #tpu.memory_space<vmem>>, %arg4: memref<16x1xf32, #tpu.memory_space<vmem>>, %arg5: memref<16x128xf32, #tpu.memory_space<vmem>>, %arg6: memref<16x128xf32, #tpu.memory_space<vmem>>) attributes {dimension_semantics = [#tpu.dimension_semantics<arbitrary>], iteration_bounds = array<i64: 1>, scalar_prefetch = 0 : i64, scratch_operands = 0 : i64, tpu.core_type = #tpu.core_type<tc>, window_params = [{pipeline_mode = #tpu.pipeline_mode<synchronous>, transform_indices = @transform_0, window_bounds = array<i64: 16, 144>}, {pipeline_mode = #tpu.pipeline_mode<synchronous>, transform_indices = @transform_1, window_bounds = array<i64: 144, 128>}, {pipeline_mode = #tpu.pipeline_mode<synchronous>, transform_indices = @transform_2, window_bounds = array<i64: 16, 1>}, {pipeline_mode = #tpu.pipeline_mode<synchronous>, transform_indices = @transform_3, window_bounds = array<i64: 16, 1>}, {pipeline_mode = #tpu.pipeline_mode<synchronous>, transform_indices = @transform_4, window_bounds = array<i64: 16, 128>}, {pipeline_mode = #tpu.pipeline_mode<synchronous>, transform_indices = @transform_5, window_bounds = array<i64: 16, 128>}]} {
    %c0 = arith.constant 0 : index
    %c0_0 = arith.constant 0 : index
    %0 = vector.load %arg1[%c0, %c0_0] : memref<16x144xbf16, #tpu.memory_space<vmem>>, vector<16x144xbf16>
    %c0_1 = arith.constant 0 : index
    %c0_2 = arith.constant 0 : index
    %1 = vector.load %arg2[%c0_1, %c0_2] : memref<144x128xbf16, #tpu.memory_space<vmem>>, vector<144x128xbf16>
    %cst = arith.constant dense<0.000000e+00> : vector<16x128xf32>
    %2 = tpu.matmul %0, %1, %cst {dimension_numbers = #tpu.dot_dimension_numbers<[1], [0], [0], [1], [0, 0, 1, 1], [], []>} : vector<16x144xbf16>, vector<144x128xbf16>, vector<16x128xf32> -> vector<16x128xf32>
    %c0_3 = arith.constant 0 : index
    %c0_4 = arith.constant 0 : index
    %3 = vector.load %arg3[%c0_3, %c0_4] : memref<16x1xf32, #tpu.memory_space<vmem>>, vector<16x1xf32>
    %c0_5 = arith.constant 0 : index
    %c0_6 = arith.constant 0 : index
    %4 = vector.load %arg4[%c0_5, %c0_6] : memref<16x1xf32, #tpu.memory_space<vmem>>, vector<16x1xf32>
    %c0_7 = arith.constant 0 : index
    %c0_8 = arith.constant 0 : index
    %5 = vector.load %arg5[%c0_7, %c0_8] : memref<16x128xf32, #tpu.memory_space<vmem>>, vector<16x128xf32>
    %cst_9 = arith.constant dense<0.000000e+00> : vector<16xf32>
    %6 = vector.multi_reduction <add>, %2, %cst_9 [1] : vector<16x128xf32> to vector<16xf32>
    %7 = vector.shape_cast %6 : vector<16xf32> to vector<16x1xf32>
    %cst_10 = arith.constant 1.280000e+02 : f32
    %8 = vector.broadcast %cst_10 : f32 to vector<16x1xf32>
    %9 = arith.divf %7, %8 : vector<16x1xf32>
    %10 = tpu.iota {dimensions = array<i32: 1>} : vector<16x128xi32>
    %c128_i32 = arith.constant 128 : i32
    %11 = vector.broadcast %c128_i32 : i32 to vector<16x128xi32>
    %12 = arith.cmpi slt, %10, %11 : vector<16x128xi32>
    %13 = vector.broadcast %9 : vector<16x1xf32> to vector<16x128xf32>
    %14 = arith.subf %2, %13 : vector<16x128xf32>
    %cst_11 = arith.constant 0.000000e+00 : f32
    %15 = vector.broadcast %cst_11 : f32 to vector<16x128xf32>
    %16 = arith.select %12, %14, %15 : vector<16x128xi1>, vector<16x128xf32>
    %17 = arith.mulf %16, %16 : vector<16x128xf32>
    %cst_12 = arith.constant dense<0.000000e+00> : vector<16xf32>
    %18 = vector.multi_reduction <add>, %17, %cst_12 [1] : vector<16x128xf32> to vector<16xf32>
    %19 = vector.shape_cast %18 : vector<16xf32> to vector<16x1xf32>
    %cst_13 = arith.constant 1.280000e+02 : f32
    %20 = vector.broadcast %cst_13 : f32 to vector<16x1xf32>
    %21 = arith.divf %19, %20 : vector<16x1xf32>
    %cst_14 = arith.constant 9.99999974E-6 : f32
    %22 = vector.broadcast %cst_14 : f32 to vector<16x1xf32>
    %23 = arith.addf %21, %22 : vector<16x1xf32>
    %24 = math.rsqrt %23 : vector<16x1xf32>
    %25 = vector.broadcast %9 : vector<16x1xf32> to vector<16x128xf32>
    %26 = arith.subf %2, %25 : vector<16x128xf32>
    %27 = vector.broadcast %24 : vector<16x1xf32> to vector<16x128xf32>
    %28 = arith.mulf %26, %27 : vector<16x128xf32>
    %29 = vector.broadcast %3 : vector<16x1xf32> to vector<16x128xf32>
    %30 = arith.mulf %28, %29 : vector<16x128xf32>
    %31 = vector.broadcast %4 : vector<16x1xf32> to vector<16x128xf32>
    %32 = arith.addf %30, %31 : vector<16x128xf32>
    %33 = arith.addf %32, %5 : vector<16x128xf32>
    %cst_15 = arith.constant 0.000000e+00 : f32
    %34 = vector.broadcast %cst_15 : f32 to vector<16x128xf32>
    %35 = arith.cmpf oge, %33, %34 : vector<16x128xf32>
    %cst_16 = arith.constant 2.000000e-01 : f32
    %36 = vector.broadcast %cst_16 : f32 to vector<16x128xf32>
    %37 = arith.mulf %36, %33 : vector<16x128xf32>
    %38 = arith.select %35, %33, %37 : vector<16x128xi1>, vector<16x128xf32>
    %cst_17 = arith.constant 0.000000e+00 : f32
    %39 = vector.broadcast %cst_17 : f32 to vector<16x128xf32>
    %40 = arith.select %12, %38, %39 : vector<16x128xi1>, vector<16x128xf32>
    %c0_18 = arith.constant 0 : index
    %c0_19 = arith.constant 0 : index
    %41 = vector.load %arg6[%c0_18, %c0_19] : memref<16x128xf32, #tpu.memory_space<vmem>>, vector<16x128xf32>
    tpu.vector_store %arg6[%c0_18, %c0_19], %40 {strides = array<i32>} : memref<16x128xf32, #tpu.memory_space<vmem>>, vector<16x128xf32>,
    return
  }
  func.func @transform_0(%arg0: i32) -> (i32, i32) {
    %c0_i32 = arith.constant 0 : i32
    %c0_i32_0 = arith.constant 0 : i32
    %c0_i32_1 = arith.constant 0 : i32
    return %c0_i32, %c0_i32_0 : i32, i32
  }
  func.func @transform_1(%arg0: i32) -> (i32, i32) {
    %c0_i32 = arith.constant 0 : i32
    %c0_i32_0 = arith.constant 0 : i32
    %c0_i32_1 = arith.constant 0 : i32
    return %c0_i32, %c0_i32_0 : i32, i32
  }
  func.func @transform_2(%arg0: i32) -> (i32, i32) {
    %c0_i32 = arith.constant 0 : i32
    %c0_i32_0 = arith.constant 0 : i32
    %c0_i32_1 = arith.constant 0 : i32
    return %c0_i32, %c0_i32_0 : i32, i32
  }
  func.func @transform_3(%arg0: i32) -> (i32, i32) {
    %c0_i32 = arith.constant 0 : i32
    %c0_i32_0 = arith.constant 0 : i32
    %c0_i32_1 = arith.constant 0 : i32
    return %c0_i32, %c0_i32_0 : i32, i32
  }
  func.func @transform_4(%arg0: i32) -> (i32, i32) {
    %c0_i32 = arith.constant 0 : i32
    %c0_i32_0 = arith.constant 0 : i32
    %c0_i32_1 = arith.constant 0 : i32
    return %c0_i32, %c0_i32_0 : i32, i32
  }
  func.func @transform_5(%arg0: i32) -> (i32, i32) {
    %c0_i32 = arith.constant 0 : i32
    %c0_i32_0 = arith.constant 0 : i32
    %c0_i32_1 = arith.constant 0 : i32
    return %c0_i32, %c0_i32_0 : i32, i32
  }
}

module attributes {stable_mosaic.version = 11 : i64} {
  func.func @_conv_bn_lrelu_kernel(%arg0: i32, %arg1: memref<32x144xbf16, #tpu.memory_space<vmem>>, %arg2: memref<144x128xbf16, #tpu.memory_space<vmem>>, %arg3: memref<32x1xf32, #tpu.memory_space<vmem>>, %arg4: memref<32x1xf32, #tpu.memory_space<vmem>>, %arg5: memref<32x128xf32, #tpu.memory_space<vmem>>) attributes {dimension_semantics = [#tpu.dimension_semantics<arbitrary>], iteration_bounds = array<i64: 1>, scalar_prefetch = 0 : i64, scratch_operands = 0 : i64, tpu.core_type = #tpu.core_type<tc>, window_params = [{pipeline_mode = #tpu.pipeline_mode<synchronous>, transform_indices = @transform_0, window_bounds = array<i64: 32, 144>}, {pipeline_mode = #tpu.pipeline_mode<synchronous>, transform_indices = @transform_1, window_bounds = array<i64: 144, 128>}, {pipeline_mode = #tpu.pipeline_mode<synchronous>, transform_indices = @transform_2, window_bounds = array<i64: 32, 1>}, {pipeline_mode = #tpu.pipeline_mode<synchronous>, transform_indices = @transform_3, window_bounds = array<i64: 32, 1>}, {pipeline_mode = #tpu.pipeline_mode<synchronous>, transform_indices = @transform_4, window_bounds = array<i64: 32, 128>}]} {
    %c0 = arith.constant 0 : index
    %c0_0 = arith.constant 0 : index
    %0 = vector.load %arg1[%c0, %c0_0] : memref<32x144xbf16, #tpu.memory_space<vmem>>, vector<32x144xbf16>
    %c0_1 = arith.constant 0 : index
    %c0_2 = arith.constant 0 : index
    %1 = vector.load %arg2[%c0_1, %c0_2] : memref<144x128xbf16, #tpu.memory_space<vmem>>, vector<144x128xbf16>
    %cst = arith.constant dense<0.000000e+00> : vector<32x128xf32>
    %2 = tpu.matmul %0, %1, %cst {dimension_numbers = #tpu.dot_dimension_numbers<[1], [0], [0], [1], [0, 0, 1, 1], [], []>} : vector<32x144xbf16>, vector<144x128xbf16>, vector<32x128xf32> -> vector<32x128xf32>
    %c0_3 = arith.constant 0 : index
    %c0_4 = arith.constant 0 : index
    %3 = vector.load %arg3[%c0_3, %c0_4] : memref<32x1xf32, #tpu.memory_space<vmem>>, vector<32x1xf32>
    %c0_5 = arith.constant 0 : index
    %c0_6 = arith.constant 0 : index
    %4 = vector.load %arg4[%c0_5, %c0_6] : memref<32x1xf32, #tpu.memory_space<vmem>>, vector<32x1xf32>
    %cst_7 = arith.constant dense<0.000000e+00> : vector<32xf32>
    %5 = vector.multi_reduction <add>, %2, %cst_7 [1] : vector<32x128xf32> to vector<32xf32>
    %6 = vector.shape_cast %5 : vector<32xf32> to vector<32x1xf32>
    %cst_8 = arith.constant 3.200000e+01 : f32
    %7 = vector.broadcast %cst_8 : f32 to vector<32x1xf32>
    %8 = arith.divf %6, %7 : vector<32x1xf32>
    %9 = tpu.iota {dimensions = array<i32: 1>} : vector<32x128xi32>
    %c32_i32 = arith.constant 32 : i32
    %10 = vector.broadcast %c32_i32 : i32 to vector<32x128xi32>
    %11 = arith.cmpi slt, %9, %10 : vector<32x128xi32>
    %12 = vector.broadcast %8 : vector<32x1xf32> to vector<32x128xf32>
    %13 = arith.subf %2, %12 : vector<32x128xf32>
    %cst_9 = arith.constant 0.000000e+00 : f32
    %14 = vector.broadcast %cst_9 : f32 to vector<32x128xf32>
    %15 = arith.select %11, %13, %14 : vector<32x128xi1>, vector<32x128xf32>
    %16 = arith.mulf %15, %15 : vector<32x128xf32>
    %cst_10 = arith.constant dense<0.000000e+00> : vector<32xf32>
    %17 = vector.multi_reduction <add>, %16, %cst_10 [1] : vector<32x128xf32> to vector<32xf32>
    %18 = vector.shape_cast %17 : vector<32xf32> to vector<32x1xf32>
    %cst_11 = arith.constant 3.200000e+01 : f32
    %19 = vector.broadcast %cst_11 : f32 to vector<32x1xf32>
    %20 = arith.divf %18, %19 : vector<32x1xf32>
    %cst_12 = arith.constant 9.99999974E-6 : f32
    %21 = vector.broadcast %cst_12 : f32 to vector<32x1xf32>
    %22 = arith.addf %20, %21 : vector<32x1xf32>
    %23 = math.rsqrt %22 : vector<32x1xf32>
    %24 = vector.broadcast %8 : vector<32x1xf32> to vector<32x128xf32>
    %25 = arith.subf %2, %24 : vector<32x128xf32>
    %26 = vector.broadcast %23 : vector<32x1xf32> to vector<32x128xf32>
    %27 = arith.mulf %25, %26 : vector<32x128xf32>
    %28 = vector.broadcast %3 : vector<32x1xf32> to vector<32x128xf32>
    %29 = arith.mulf %27, %28 : vector<32x128xf32>
    %30 = vector.broadcast %4 : vector<32x1xf32> to vector<32x128xf32>
    %31 = arith.addf %29, %30 : vector<32x128xf32>
    %cst_13 = arith.constant 0.000000e+00 : f32
    %32 = vector.broadcast %cst_13 : f32 to vector<32x128xf32>
    %33 = arith.cmpf oge, %31, %32 : vector<32x128xf32>
    %cst_14 = arith.constant 2.000000e-01 : f32
    %34 = vector.broadcast %cst_14 : f32 to vector<32x128xf32>
    %35 = arith.mulf %34, %31 : vector<32x128xf32>
    %36 = arith.select %33, %31, %35 : vector<32x128xi1>, vector<32x128xf32>
    %cst_15 = arith.constant 0.000000e+00 : f32
    %37 = vector.broadcast %cst_15 : f32 to vector<32x128xf32>
    %38 = arith.select %11, %36, %37 : vector<32x128xi1>, vector<32x128xf32>
    %c0_16 = arith.constant 0 : index
    %c0_17 = arith.constant 0 : index
    %39 = vector.load %arg5[%c0_16, %c0_17] : memref<32x128xf32, #tpu.memory_space<vmem>>, vector<32x128xf32>
    tpu.vector_store %arg5[%c0_16, %c0_17], %38 {strides = array<i32>} : memref<32x128xf32, #tpu.memory_space<vmem>>, vector<32x128xf32>,
    return
  }
  func.func @transform_0(%arg0: i32) -> (i32, i32) {
    %c0_i32 = arith.constant 0 : i32
    %c0_i32_0 = arith.constant 0 : i32
    %c0_i32_1 = arith.constant 0 : i32
    return %c0_i32, %c0_i32_0 : i32, i32
  }
  func.func @transform_1(%arg0: i32) -> (i32, i32) {
    %c0_i32 = arith.constant 0 : i32
    %c0_i32_0 = arith.constant 0 : i32
    %c0_i32_1 = arith.constant 0 : i32
    return %c0_i32, %c0_i32_0 : i32, i32
  }
  func.func @transform_2(%arg0: i32) -> (i32, i32) {
    %c0_i32 = arith.constant 0 : i32
    %c0_i32_0 = arith.constant 0 : i32
    %c0_i32_1 = arith.constant 0 : i32
    return %c0_i32, %c0_i32_0 : i32, i32
  }
  func.func @transform_3(%arg0: i32) -> (i32, i32) {
    %c0_i32 = arith.constant 0 : i32
    %c0_i32_0 = arith.constant 0 : i32
    %c0_i32_1 = arith.constant 0 : i32
    return %c0_i32, %c0_i32_0 : i32, i32
  }
  func.func @transform_4(%arg0: i32) -> (i32, i32) {
    %c0_i32 = arith.constant 0 : i32
    %c0_i32_0 = arith.constant 0 : i32
    %c0_i32_1 = arith.constant 0 : i32
    return %c0_i32, %c0_i32_0 : i32, i32
  }
}

module attributes {stable_mosaic.version = 11 : i64} {
  func.func @_conv_bn_lrelu_kernel(%arg0: i32, %arg1: memref<32x288xbf16, #tpu.memory_space<vmem>>, %arg2: memref<288x128xbf16, #tpu.memory_space<vmem>>, %arg3: memref<32x1xf32, #tpu.memory_space<vmem>>, %arg4: memref<32x1xf32, #tpu.memory_space<vmem>>, %arg5: memref<32x128xf32, #tpu.memory_space<vmem>>) attributes {dimension_semantics = [#tpu.dimension_semantics<arbitrary>], iteration_bounds = array<i64: 1>, scalar_prefetch = 0 : i64, scratch_operands = 0 : i64, tpu.core_type = #tpu.core_type<tc>, window_params = [{pipeline_mode = #tpu.pipeline_mode<synchronous>, transform_indices = @transform_0, window_bounds = array<i64: 32, 288>}, {pipeline_mode = #tpu.pipeline_mode<synchronous>, transform_indices = @transform_1, window_bounds = array<i64: 288, 128>}, {pipeline_mode = #tpu.pipeline_mode<synchronous>, transform_indices = @transform_2, window_bounds = array<i64: 32, 1>}, {pipeline_mode = #tpu.pipeline_mode<synchronous>, transform_indices = @transform_3, window_bounds = array<i64: 32, 1>}, {pipeline_mode = #tpu.pipeline_mode<synchronous>, transform_indices = @transform_4, window_bounds = array<i64: 32, 128>}]} {
    %c0 = arith.constant 0 : index
    %c0_0 = arith.constant 0 : index
    %0 = vector.load %arg1[%c0, %c0_0] : memref<32x288xbf16, #tpu.memory_space<vmem>>, vector<32x288xbf16>
    %c0_1 = arith.constant 0 : index
    %c0_2 = arith.constant 0 : index
    %1 = vector.load %arg2[%c0_1, %c0_2] : memref<288x128xbf16, #tpu.memory_space<vmem>>, vector<288x128xbf16>
    %cst = arith.constant dense<0.000000e+00> : vector<32x128xf32>
    %2 = tpu.matmul %0, %1, %cst {dimension_numbers = #tpu.dot_dimension_numbers<[1], [0], [0], [1], [0, 0, 1, 1], [], []>} : vector<32x288xbf16>, vector<288x128xbf16>, vector<32x128xf32> -> vector<32x128xf32>
    %c0_3 = arith.constant 0 : index
    %c0_4 = arith.constant 0 : index
    %3 = vector.load %arg3[%c0_3, %c0_4] : memref<32x1xf32, #tpu.memory_space<vmem>>, vector<32x1xf32>
    %c0_5 = arith.constant 0 : index
    %c0_6 = arith.constant 0 : index
    %4 = vector.load %arg4[%c0_5, %c0_6] : memref<32x1xf32, #tpu.memory_space<vmem>>, vector<32x1xf32>
    %cst_7 = arith.constant dense<0.000000e+00> : vector<32xf32>
    %5 = vector.multi_reduction <add>, %2, %cst_7 [1] : vector<32x128xf32> to vector<32xf32>
    %6 = vector.shape_cast %5 : vector<32xf32> to vector<32x1xf32>
    %cst_8 = arith.constant 3.200000e+01 : f32
    %7 = vector.broadcast %cst_8 : f32 to vector<32x1xf32>
    %8 = arith.divf %6, %7 : vector<32x1xf32>
    %9 = tpu.iota {dimensions = array<i32: 1>} : vector<32x128xi32>
    %c32_i32 = arith.constant 32 : i32
    %10 = vector.broadcast %c32_i32 : i32 to vector<32x128xi32>
    %11 = arith.cmpi slt, %9, %10 : vector<32x128xi32>
    %12 = vector.broadcast %8 : vector<32x1xf32> to vector<32x128xf32>
    %13 = arith.subf %2, %12 : vector<32x128xf32>
    %cst_9 = arith.constant 0.000000e+00 : f32
    %14 = vector.broadcast %cst_9 : f32 to vector<32x128xf32>
    %15 = arith.select %11, %13, %14 : vector<32x128xi1>, vector<32x128xf32>
    %16 = arith.mulf %15, %15 : vector<32x128xf32>
    %cst_10 = arith.constant dense<0.000000e+00> : vector<32xf32>
    %17 = vector.multi_reduction <add>, %16, %cst_10 [1] : vector<32x128xf32> to vector<32xf32>
    %18 = vector.shape_cast %17 : vector<32xf32> to vector<32x1xf32>
    %cst_11 = arith.constant 3.200000e+01 : f32
    %19 = vector.broadcast %cst_11 : f32 to vector<32x1xf32>
    %20 = arith.divf %18, %19 : vector<32x1xf32>
    %cst_12 = arith.constant 9.99999974E-6 : f32
    %21 = vector.broadcast %cst_12 : f32 to vector<32x1xf32>
    %22 = arith.addf %20, %21 : vector<32x1xf32>
    %23 = math.rsqrt %22 : vector<32x1xf32>
    %24 = vector.broadcast %8 : vector<32x1xf32> to vector<32x128xf32>
    %25 = arith.subf %2, %24 : vector<32x128xf32>
    %26 = vector.broadcast %23 : vector<32x1xf32> to vector<32x128xf32>
    %27 = arith.mulf %25, %26 : vector<32x128xf32>
    %28 = vector.broadcast %3 : vector<32x1xf32> to vector<32x128xf32>
    %29 = arith.mulf %27, %28 : vector<32x128xf32>
    %30 = vector.broadcast %4 : vector<32x1xf32> to vector<32x128xf32>
    %31 = arith.addf %29, %30 : vector<32x128xf32>
    %cst_13 = arith.constant 0.000000e+00 : f32
    %32 = vector.broadcast %cst_13 : f32 to vector<32x128xf32>
    %33 = arith.cmpf oge, %31, %32 : vector<32x128xf32>
    %cst_14 = arith.constant 2.000000e-01 : f32
    %34 = vector.broadcast %cst_14 : f32 to vector<32x128xf32>
    %35 = arith.mulf %34, %31 : vector<32x128xf32>
    %36 = arith.select %33, %31, %35 : vector<32x128xi1>, vector<32x128xf32>
    %cst_15 = arith.constant 0.000000e+00 : f32
    %37 = vector.broadcast %cst_15 : f32 to vector<32x128xf32>
    %38 = arith.select %11, %36, %37 : vector<32x128xi1>, vector<32x128xf32>
    %c0_16 = arith.constant 0 : index
    %c0_17 = arith.constant 0 : index
    %39 = vector.load %arg5[%c0_16, %c0_17] : memref<32x128xf32, #tpu.memory_space<vmem>>, vector<32x128xf32>
    tpu.vector_store %arg5[%c0_16, %c0_17], %38 {strides = array<i32>} : memref<32x128xf32, #tpu.memory_space<vmem>>, vector<32x128xf32>,
    return
  }
  func.func @transform_0(%arg0: i32) -> (i32, i32) {
    %c0_i32 = arith.constant 0 : i32
    %c0_i32_0 = arith.constant 0 : i32
    %c0_i32_1 = arith.constant 0 : i32
    return %c0_i32, %c0_i32_0 : i32, i32
  }
  func.func @transform_1(%arg0: i32) -> (i32, i32) {
    %c0_i32 = arith.constant 0 : i32
    %c0_i32_0 = arith.constant 0 : i32
    %c0_i32_1 = arith.constant 0 : i32
    return %c0_i32, %c0_i32_0 : i32, i32
  }
  func.func @transform_2(%arg0: i32) -> (i32, i32) {
    %c0_i32 = arith.constant 0 : i32
    %c0_i32_0 = arith.constant 0 : i32
    %c0_i32_1 = arith.constant 0 : i32
    return %c0_i32, %c0_i32_0 : i32, i32
  }
  func.func @transform_3(%arg0: i32) -> (i32, i32) {
    %c0_i32 = arith.constant 0 : i32
    %c0_i32_0 = arith.constant 0 : i32
    %c0_i32_1 = arith.constant 0 : i32
    return %c0_i32, %c0_i32_0 : i32, i32
  }
  func.func @transform_4(%arg0: i32) -> (i32, i32) {
    %c0_i32 = arith.constant 0 : i32
    %c0_i32_0 = arith.constant 0 : i32
    %c0_i32_1 = arith.constant 0 : i32
    return %c0_i32, %c0_i32_0 : i32, i32
  }
}

module attributes {stable_mosaic.version = 11 : i64} {
  func.func @_conv_bn_res_lrelu_kernel(%arg0: i32, %arg1: memref<32x288xbf16, #tpu.memory_space<vmem>>, %arg2: memref<288x128xbf16, #tpu.memory_space<vmem>>, %arg3: memref<32x1xf32, #tpu.memory_space<vmem>>, %arg4: memref<32x1xf32, #tpu.memory_space<vmem>>, %arg5: memref<32x128xf32, #tpu.memory_space<vmem>>, %arg6: memref<32x128xf32, #tpu.memory_space<vmem>>) attributes {dimension_semantics = [#tpu.dimension_semantics<arbitrary>], iteration_bounds = array<i64: 1>, scalar_prefetch = 0 : i64, scratch_operands = 0 : i64, tpu.core_type = #tpu.core_type<tc>, window_params = [{pipeline_mode = #tpu.pipeline_mode<synchronous>, transform_indices = @transform_0, window_bounds = array<i64: 32, 288>}, {pipeline_mode = #tpu.pipeline_mode<synchronous>, transform_indices = @transform_1, window_bounds = array<i64: 288, 128>}, {pipeline_mode = #tpu.pipeline_mode<synchronous>, transform_indices = @transform_2, window_bounds = array<i64: 32, 1>}, {pipeline_mode = #tpu.pipeline_mode<synchronous>, transform_indices = @transform_3, window_bounds = array<i64: 32, 1>}, {pipeline_mode = #tpu.pipeline_mode<synchronous>, transform_indices = @transform_4, window_bounds = array<i64: 32, 128>}, {pipeline_mode = #tpu.pipeline_mode<synchronous>, transform_indices = @transform_5, window_bounds = array<i64: 32, 128>}]} {
    %c0 = arith.constant 0 : index
    %c0_0 = arith.constant 0 : index
    %0 = vector.load %arg1[%c0, %c0_0] : memref<32x288xbf16, #tpu.memory_space<vmem>>, vector<32x288xbf16>
    %c0_1 = arith.constant 0 : index
    %c0_2 = arith.constant 0 : index
    %1 = vector.load %arg2[%c0_1, %c0_2] : memref<288x128xbf16, #tpu.memory_space<vmem>>, vector<288x128xbf16>
    %cst = arith.constant dense<0.000000e+00> : vector<32x128xf32>
    %2 = tpu.matmul %0, %1, %cst {dimension_numbers = #tpu.dot_dimension_numbers<[1], [0], [0], [1], [0, 0, 1, 1], [], []>} : vector<32x288xbf16>, vector<288x128xbf16>, vector<32x128xf32> -> vector<32x128xf32>
    %c0_3 = arith.constant 0 : index
    %c0_4 = arith.constant 0 : index
    %3 = vector.load %arg3[%c0_3, %c0_4] : memref<32x1xf32, #tpu.memory_space<vmem>>, vector<32x1xf32>
    %c0_5 = arith.constant 0 : index
    %c0_6 = arith.constant 0 : index
    %4 = vector.load %arg4[%c0_5, %c0_6] : memref<32x1xf32, #tpu.memory_space<vmem>>, vector<32x1xf32>
    %c0_7 = arith.constant 0 : index
    %c0_8 = arith.constant 0 : index
    %5 = vector.load %arg5[%c0_7, %c0_8] : memref<32x128xf32, #tpu.memory_space<vmem>>, vector<32x128xf32>
    %cst_9 = arith.constant dense<0.000000e+00> : vector<32xf32>
    %6 = vector.multi_reduction <add>, %2, %cst_9 [1] : vector<32x128xf32> to vector<32xf32>
    %7 = vector.shape_cast %6 : vector<32xf32> to vector<32x1xf32>
    %cst_10 = arith.constant 3.200000e+01 : f32
    %8 = vector.broadcast %cst_10 : f32 to vector<32x1xf32>
    %9 = arith.divf %7, %8 : vector<32x1xf32>
    %10 = tpu.iota {dimensions = array<i32: 1>} : vector<32x128xi32>
    %c32_i32 = arith.constant 32 : i32
    %11 = vector.broadcast %c32_i32 : i32 to vector<32x128xi32>
    %12 = arith.cmpi slt, %10, %11 : vector<32x128xi32>
    %13 = vector.broadcast %9 : vector<32x1xf32> to vector<32x128xf32>
    %14 = arith.subf %2, %13 : vector<32x128xf32>
    %cst_11 = arith.constant 0.000000e+00 : f32
    %15 = vector.broadcast %cst_11 : f32 to vector<32x128xf32>
    %16 = arith.select %12, %14, %15 : vector<32x128xi1>, vector<32x128xf32>
    %17 = arith.mulf %16, %16 : vector<32x128xf32>
    %cst_12 = arith.constant dense<0.000000e+00> : vector<32xf32>
    %18 = vector.multi_reduction <add>, %17, %cst_12 [1] : vector<32x128xf32> to vector<32xf32>
    %19 = vector.shape_cast %18 : vector<32xf32> to vector<32x1xf32>
    %cst_13 = arith.constant 3.200000e+01 : f32
    %20 = vector.broadcast %cst_13 : f32 to vector<32x1xf32>
    %21 = arith.divf %19, %20 : vector<32x1xf32>
    %cst_14 = arith.constant 9.99999974E-6 : f32
    %22 = vector.broadcast %cst_14 : f32 to vector<32x1xf32>
    %23 = arith.addf %21, %22 : vector<32x1xf32>
    %24 = math.rsqrt %23 : vector<32x1xf32>
    %25 = vector.broadcast %9 : vector<32x1xf32> to vector<32x128xf32>
    %26 = arith.subf %2, %25 : vector<32x128xf32>
    %27 = vector.broadcast %24 : vector<32x1xf32> to vector<32x128xf32>
    %28 = arith.mulf %26, %27 : vector<32x128xf32>
    %29 = vector.broadcast %3 : vector<32x1xf32> to vector<32x128xf32>
    %30 = arith.mulf %28, %29 : vector<32x128xf32>
    %31 = vector.broadcast %4 : vector<32x1xf32> to vector<32x128xf32>
    %32 = arith.addf %30, %31 : vector<32x128xf32>
    %33 = arith.addf %32, %5 : vector<32x128xf32>
    %cst_15 = arith.constant 0.000000e+00 : f32
    %34 = vector.broadcast %cst_15 : f32 to vector<32x128xf32>
    %35 = arith.cmpf oge, %33, %34 : vector<32x128xf32>
    %cst_16 = arith.constant 2.000000e-01 : f32
    %36 = vector.broadcast %cst_16 : f32 to vector<32x128xf32>
    %37 = arith.mulf %36, %33 : vector<32x128xf32>
    %38 = arith.select %35, %33, %37 : vector<32x128xi1>, vector<32x128xf32>
    %cst_17 = arith.constant 0.000000e+00 : f32
    %39 = vector.broadcast %cst_17 : f32 to vector<32x128xf32>
    %40 = arith.select %12, %38, %39 : vector<32x128xi1>, vector<32x128xf32>
    %c0_18 = arith.constant 0 : index
    %c0_19 = arith.constant 0 : index
    %41 = vector.load %arg6[%c0_18, %c0_19] : memref<32x128xf32, #tpu.memory_space<vmem>>, vector<32x128xf32>
    tpu.vector_store %arg6[%c0_18, %c0_19], %40 {strides = array<i32>} : memref<32x128xf32, #tpu.memory_space<vmem>>, vector<32x128xf32>,
    return
  }
  func.func @transform_0(%arg0: i32) -> (i32, i32) {
    %c0_i32 = arith.constant 0 : i32
    %c0_i32_0 = arith.constant 0 : i32
    %c0_i32_1 = arith.constant 0 : i32
    return %c0_i32, %c0_i32_0 : i32, i32
  }
  func.func @transform_1(%arg0: i32) -> (i32, i32) {
    %c0_i32 = arith.constant 0 : i32
    %c0_i32_0 = arith.constant 0 : i32
    %c0_i32_1 = arith.constant 0 : i32
    return %c0_i32, %c0_i32_0 : i32, i32
  }
  func.func @transform_2(%arg0: i32) -> (i32, i32) {
    %c0_i32 = arith.constant 0 : i32
    %c0_i32_0 = arith.constant 0 : i32
    %c0_i32_1 = arith.constant 0 : i32
    return %c0_i32, %c0_i32_0 : i32, i32
  }
  func.func @transform_3(%arg0: i32) -> (i32, i32) {
    %c0_i32 = arith.constant 0 : i32
    %c0_i32_0 = arith.constant 0 : i32
    %c0_i32_1 = arith.constant 0 : i32
    return %c0_i32, %c0_i32_0 : i32, i32
  }
  func.func @transform_4(%arg0: i32) -> (i32, i32) {
    %c0_i32 = arith.constant 0 : i32
    %c0_i32_0 = arith.constant 0 : i32
    %c0_i32_1 = arith.constant 0 : i32
    return %c0_i32, %c0_i32_0 : i32, i32
  }
  func.func @transform_5(%arg0: i32) -> (i32, i32) {
    %c0_i32 = arith.constant 0 : i32
    %c0_i32_0 = arith.constant 0 : i32
    %c0_i32_1 = arith.constant 0 : i32
    return %c0_i32, %c0_i32_0 : i32, i32
  }
}

</mosaic_0001>

<bundles_post_ra>
// kernel: _lambda_.16
= control target key start
LH: loop header
LB: loop body
LE: loop exit
PB: predicated region body
PF: predicated region fallthrough
CT: control target
= control target key end

     0   :  { %v1104_v3 = vmov 0   ;;  %vm217_vm0 = vcmask 261120   ;;  %s1820_s1 = inlined_call_operand.vmem [shape: bf16[32,2048], index: 1, kind: input, shape index: {}]   ;;  %s1821_s0 = inlined_call_operand.vmem [shape: bf16[16,32], index: 0, kind: input, shape index: {}]   ;;  %s1822_s2 = inlined_call_operand.vmem [shape: f32[16,1], index: 2, kind: input, shape index: {}]   ;;  %s1823_s3 = inlined_call_operand.vmem [shape: f32[16,1], index: 3, kind: input, shape index: {}]   ;;  %s1824_s4 = inlined_call_operand.vmem [shape: f32[16,2048], index: 4, kind: output, shape index: {}]  }
   0x1   :  { %v20_v0 = vld [vmem:[%s1820_s1] sm:$0xff]  ;;  %v21_v2 = vld [vmem:[%s1820_s1 + $0x8] sm:$0xff]  ;;  %253 = vmatprep.mubr.bf16.mxu0 %v1104_v3  ;;  %296 = vmatprep.mubr.bf16.mxu1 %v1104_v3  ;;  %v22_v15 = vld [vmem:[%s1820_s1 + $0x10] sm:$0xff] }
   0x2   :  { %v28_v1 = vld [vmem:[%s1820_s1 + $0x40] sm:$0xff]  ;;  %v29_v6 = vld [vmem:[%s1820_s1 + $0x48] sm:$0xff]  ;;  %1098 = vset.pattern.permute.xlu1 %v1104_v3  ;;  %1097 = vset.pattern.permute.xlu0 %v1104_v3  ;;  %v30_v17 = vld [vmem:[%s1820_s1 + $0x50] sm:$0xff] }
   0x3   :  { %v1057_v4 = vcombine.high %v20_v0, %v28_v1  ;;  %v1056_v5 = vcombine.low %v20_v0, %v28_v1  ;;  %v36_v7 = vld [vmem:[%s1820_s1 + $0x80] sm:$0xff]  ;;  %v1059_v9 = vcombine.high %v21_v2, %v29_v6  ;;  %v1058_v10 = vcombine.low %v21_v2, %v29_v6  ;;  %v37_v12 = vld [vmem:[%s1820_s1 + $0x88] sm:$0xff]  ;;  %v23_v18 = vld [vmem:[%s1820_s1 + $0x18] sm:$0xff] }
   0x4   :  { %v44_v8 = vld [vmem:[%s1820_s1 + $0xc0] sm:$0xff]  ;;  %v45_v13 = vld [vmem:[%s1820_s1 + $0xc8] sm:$0xff]  ;;  %v31_v19 = vld [vmem:[%s1820_s1 + $0x58] sm:$0xff]  ;;  %v1061_v21 = vcombine.high %v22_v15, %v30_v17  ;;  %v1060_v28 = vcombine.low %v22_v15, %v30_v17 }
   0x5   :  { %v1073_v11 = vcombine.high %v36_v7, %v44_v8  ;;  %221 = vmatprep.subr.bf16.mxu0 %v1057_v4  ;;  %v1075_v14 = vcombine.high %v37_v12, %v45_v13  ;;  %264 = vmatprep.subr.bf16.mxu1 %v1059_v9  ;;  %v1072_v16 = vcombine.low %v36_v7, %v44_v8  ;;  %v38_v23 = vld [vmem:[%s1820_s1 + $0x90] sm:$0xff]  ;;  %v1179_v25 = vld [vmem:[%s1821_s0] sm:$0xff]   ;;  %v39_v26 = vld [vmem:[%s1820_s1 + $0x98] sm:$0xff] }
   0x6   :  { %222 = vmatpush1.bf16.msra.mxu0 %v1056_v5  ;;  %265 = vmatpush1.bf16.msra.mxu1 %v1058_v10  ;;  %v1074_v20 = vcombine.low %v37_v12, %v45_v13  ;;  %v1063_v22 = vcombine.high %v23_v18, %v31_v19  ;;  %v46_v24 = vld [vmem:[%s1820_s1 + $0xd0] sm:$0xff]  ;;  %v47_v27 = vld [vmem:[%s1820_s1 + $0xd8] sm:$0xff]  ;;  %v1062_v29 = vcombine.low %v23_v18, %v31_v19  ;;  %v24_v32 = vld [vmem:[%s1820_s1 + $0x20] sm:$0xff] }
   0x7   :  { %223 = vmatprep.subr.bf16.mxu0 %v1073_v11  ;;  %266 = vmatprep.subr.bf16.mxu1 %v1075_v14  ;;  %v1077_v30 = vcombine.high %v38_v23, %v46_v24  ;;  %v1079_v31 = vcombine.high %v39_v26, %v47_v27  ;;  %v32_v33 = vld [vmem:[%s1820_s1 + $0x60] sm:$0xff]  ;;  %v25_v34 = vld [vmem:[%s1820_s1 + $0x28] sm:$0xff]  ;;  %v1076_v36 = vcombine.low %v38_v23, %v46_v24  ;;  %v26_v48 = vld [vmem:[%s1820_s1 + $0x30] sm:$0xff] }
   0x8   :  { %v33_v35 = vld [vmem:[%s1820_s1 + $0x68] sm:$0xff]  ;;  %v1078_v37 = vcombine.low %v39_v26, %v47_v27  ;;  %v1065_v38 = vcombine.high %v24_v32, %v32_v33  ;;  %v40_v40 = vld [vmem:[%s1820_s1 + $0xa0] sm:$0xff]  ;;  %v1064_v44 = vcombine.low %v24_v32, %v32_v33  ;;  %v34_v49 = vld [vmem:[%s1820_s1 + $0x70] sm:$0xff] }
   0x9   :  { %v1067_v39 = vcombine.high %v25_v34, %v33_v35  ;;  %v48_v41 = vld [vmem:[%s1820_s1 + $0xe0] sm:$0xff]  ;;  %v41_v42 = vld [vmem:[%s1820_s1 + $0xa8] sm:$0xff]  ;;  %v1066_v45 = vcombine.low %v25_v34, %v33_v35  ;;  %v27_v50 = vld [vmem:[%s1820_s1 + $0x38] sm:$0xff]  ;;  %v1069_v54 = vcombine.high %v26_v48, %v34_v49  ;;  %v1068_v60 = vcombine.low %v26_v48, %v34_v49 }
   0xa   :  { %224 = vmatpush1.bf16.msra.mxu0 %v1072_v16  ;;  %267 = vmatpush1.bf16.msra.mxu1 %v1074_v20  ;;  %v49_v43 = vld [vmem:[%s1820_s1 + $0xe8] sm:$0xff]  ;;  %v1081_v46 = vcombine.high %v40_v40, %v48_v41  ;;  %v35_v51 = vld [vmem:[%s1820_s1 + $0x78] sm:$0xff]  ;;  %v1080_v52 = vcombine.low %v40_v40, %v48_v41  ;;  %v42_v56 = vld [vmem:[%s1820_s1 + $0xb0] sm:$0xff] }
   0xb   :  { %307 = vmatprep.subr.bf16.mxu0 %v1061_v21  ;;  %350 = vmatprep.subr.bf16.mxu1 %v1063_v22  ;;  %v1083_v47 = vcombine.high %v41_v42, %v49_v43  ;;  %v1082_v53 = vcombine.low %v41_v42, %v49_v43  ;;  %v1071_v55 = vcombine.high %v27_v50, %v35_v51  ;;  %v50_v57 = vld [vmem:[%s1820_s1 + $0xf0] sm:$0xff]  ;;  %v43_v58 = vld [vmem:[%s1820_s1 + $0xb8] sm:$0xff]  ;;  %v566_v2 = vld [vmem:[%s1822_s2 + $0x8] sm:$0xff] }
   0xc   :  { %v51_v59 = vld [vmem:[%s1820_s1 + $0xf8] sm:$0xff]  ;;  %v1070_v61 = vcombine.low %v27_v50, %v35_v51  ;;  %v1085_v62 = vcombine.high %v42_v56, %v50_v57  ;;  %v1084_v0 = vcombine.low %v42_v56, %v50_v57  ;;  %814 = vperm.xlu1 %1098, %v566_v2   ;;  %v567_v4 = vld [vmem:[%s1823_s3] sm:$0xff] }
   0xd   :  { %1088 = vmatmul.mubr.msk.bf16.vlgmr.msra.gmra.mrb[0].mxu0 %vm217_vm0, %v1179_v25  ;;  %1089 = vmatmul.mubr.msk.bf16.vlgmr.msra.gmra.mrb[0].mxu1 %vm217_vm0, %v1179_v25  ;;  %v1087_v63 = vcombine.high %v43_v58, %v51_v59  ;;  %v1086_v1 = vcombine.low %v43_v58, %v51_v59  ;;  %v565_v2 = vld [vmem:[%s1822_s2] sm:$0xff] }
   0xe   :  { %308 = vmatpush1.bf16.msra.mxu0 %v1060_v28  ;;  %351 = vmatpush1.bf16.msra.mxu1 %v1062_v29 }
   0xf   :  { %309 = vmatprep.subr.bf16.mxu0 %v1077_v30  ;;  %352 = vmatprep.subr.bf16.mxu1 %v1079_v31 }
  0x10   :  { %339 = vmatprep.mubr.bf16.mxu0 %v1104_v3  ;;  %382 = vmatprep.mubr.bf16.mxu1 %v1104_v3 }
  0x11   :  { %851 = vperm.xlu1 %1098, %v567_v4  }
  0x12   :  { %310 = vmatpush1.bf16.msra.mxu0 %v1076_v36  ;;  %353 = vmatpush1.bf16.msra.mxu1 %v1078_v37 }
  0x13   :  { %393 = vmatprep.subr.bf16.mxu0 %v1065_v38  ;;  %436 = vmatprep.subr.bf16.mxu1 %v1067_v39 }
  0x15   :  { %1090 = vmatmul.mubr.msk.bf16.vlgmr.msra.gmra.mrb[4].mxu0 %vm217_vm0, %v1179_v25  ;;  %1091 = vmatmul.mubr.msk.bf16.vlgmr.msra.gmra.mrb[4].mxu1 %vm217_vm0, %v1179_v25 }
  0x16   :  { %394 = vmatpush1.bf16.msra.mxu0 %v1064_v44  ;;  %437 = vmatpush1.bf16.msra.mxu1 %v1066_v45 }
  0x17   :  { %395 = vmatprep.subr.bf16.mxu0 %v1081_v46  ;;  %438 = vmatprep.subr.bf16.mxu1 %v1083_v47 }
  0x18   :  { %425 = vmatprep.mubr.bf16.mxu0 %v1104_v3  ;;  %468 = vmatprep.mubr.bf16.mxu1 %v1104_v3 }
  0x1a   :  { %396 = vmatpush1.bf16.msra.mxu0 %v1080_v52  ;;  %439 = vmatpush1.bf16.msra.mxu1 %v1082_v53 }
  0x1b   :  { %479 = vmatprep.subr.bf16.mxu0 %v1069_v54  ;;  %522 = vmatprep.subr.bf16.mxu1 %v1071_v55 }
  0x1d   :  { %1092 = vmatmul.mubr.msk.bf16.vlgmr.msra.gmra.mrb[8].mxu0 %vm217_vm0, %v1179_v25  ;;  %1093 = vmatmul.mubr.msk.bf16.vlgmr.msra.gmra.mrb[8].mxu1 %vm217_vm0, %v1179_v25 }
  0x1e   :  { %480 = vmatpush1.bf16.msra.mxu0 %v1068_v60  ;;  %523 = vmatpush1.bf16.msra.mxu1 %v1070_v61 }
  0x1f   :  { %481 = vmatprep.subr.bf16.mxu0 %v1085_v62  ;;  %524 = vmatprep.subr.bf16.mxu1 %v1087_v63 }
  0x20   :  { %511 = vmatprep.mubr.bf16.mxu0 %v1104_v3  ;;  %554 = vmatprep.mubr.bf16.mxu1 %v1104_v3 }
  0x22   :  { %482 = vmatpush1.bf16.msra.mxu0 %v1084_v0  ;;  %525 = vmatpush1.bf16.msra.mxu1 %v1086_v1 }
  0x25   :  { %1094 = vmatmul.mubr.msk.bf16.vlgmr.msra.gmra.mrb[12].mxu0 %vm217_vm0, %v1179_v25  ;;  %1095 = vmatmul.mubr.msk.bf16.vlgmr.msra.gmra.mrb[12].mxu1 %vm217_vm0, %v1179_v25 }
  0xe0   :  { %v1263_v5 = vpop.f32.mrb[0].mxu0  ;;  %v1267_v6 = vpop.f32.mrb[0].mxu1 }
  0xe1   :  { %v1265_v3 = vpop.f32.mrb[1].mxu0  ;;  %v1273_v9 = vpop.f32.mrb[1].mxu1 }
  0xe2   :  { %v569_v7 = vadd.f32 %v1265_v3, %v1263_v5  ;;  %v1271_v8 = vpop.f32.mrb[2].mxu0  ;;  %v1277_v11 = vpop.f32.mrb[2].mxu1 }
  0xe3   :  { %v1275_v10 = vpop.f32.mrb[3].mxu0  ;;  %v1282_v14 = vpop.f32.mrb[3].mxu1 }
  0xe4   :  { %v570_v12 = vadd.f32 %v569_v7, %v1267_v6  ;;  %v586_v13 = vadd.f32 %v1275_v10, %v1271_v8 }
  0xe6   :  { %v571_v15 = vadd.f32 %v570_v12, %v1273_v9  ;;  %v587_v16 = vadd.f32 %v586_v13, %v1277_v11 }
  0xe8   :  { %v588_v17 = vadd.f32 %v587_v16, %v1282_v14  ;;  %v341_v18 = vpop.f32.mrb[4].mxu0  ;;  %v1289_v21 = vpop.f32.mrb[4].mxu1 }
  0xe9   :  { %v572_v19 = vadd.f32 %v571_v15, %v341_v18  ;;  %v1287_v20 = vpop.f32.mrb[5].mxu0  ;;  %v1293_v23 = vpop.f32.mrb[5].mxu1 }
  0xea   :  { %v1291_v22 = vpop.f32.mrb[6].mxu0  ;;  %v1299_v27 = vpop.f32.mrb[6].mxu1 }
  0xeb   :  { %v573_v24 = vadd.f32 %v572_v19, %v1287_v20  ;;  %v589_v25 = vadd.f32 %v588_v17, %v1291_v22  ;;  %v1297_v26 = vpop.f32.mrb[7].mxu0  ;;  %v1301_v28 = vpop.f32.mrb[7].mxu1 }
  0xed   :  { %v574_v29 = vadd.f32 %v573_v24, %v1289_v21  ;;  %v590_v30 = vadd.f32 %v589_v25, %v1297_v26 }
  0xef   :  { %v575_v31 = vadd.f32 %v574_v29, %v1293_v23  ;;  %v591_v32 = vadd.f32 %v590_v30, %v1299_v27 }
  0xf0   :  { %v1307_v33 = vpop.f32.mrb[8].mxu0  ;;  %v1313_v37 = vpop.f32.mrb[8].mxu1 }
  0xf1   :  { %v592_v34 = vadd.f32 %v591_v32, %v1301_v28  ;;  %v576_v35 = vadd.f32 %v575_v31, %v1307_v33  ;;  %v1311_v36 = vpop.f32.mrb[9].mxu0  ;;  %v1317_v39 = vpop.f32.mrb[9].mxu1 }
  0xf2   :  { %v1315_v38 = vpop.f32.mrb[10].mxu0  ;;  %v1323_v43 = vpop.f32.mrb[10].mxu1 }
  0xf3   :  { %v577_v40 = vadd.f32 %v576_v35, %v1311_v36  ;;  %v593_v41 = vadd.f32 %v592_v34, %v1315_v38  ;;  %v1321_v42 = vpop.f32.mrb[11].mxu0  ;;  %v1325_v44 = vpop.f32.mrb[11].mxu1 }
  0xf5   :  { %v578_v45 = vadd.f32 %v577_v40, %v1313_v37  ;;  %v594_v46 = vadd.f32 %v593_v41, %v1321_v42 }
  0xf7   :  { %v579_v47 = vadd.f32 %v578_v45, %v1317_v39  ;;  %v595_v48 = vadd.f32 %v594_v46, %v1323_v43 }
  0xf8   :  { %v1331_v49 = vpop.f32.mrb[12].mxu0  ;;  %v1337_v53 = vpop.f32.mrb[12].mxu1 }
  0xf9   :  { %v596_v50 = vadd.f32 %v595_v48, %v1325_v44  ;;  %v580_v51 = vadd.f32 %v579_v47, %v1331_v49  ;;  %v1335_v52 = vpop.f32.mrb[13].mxu0  ;;  %v1341_v55 = vpop.f32.mrb[13].mxu1 }
  0xfa   :  { %v1339_v54 = vpop.f32.mrb[14].mxu0  ;;  %v1347_v59 = vpop.f32.mrb[14].mxu1 }
  0xfb   :  { %v581_v56 = vadd.f32 %v580_v51, %v1335_v52  ;;  %v597_v57 = vadd.f32 %v596_v50, %v1339_v54  ;;  %v1345_v58 = vpop.f32.mrb[15].mxu0  ;;  %v1349_v60 = vpop.f32.mrb[15].mxu1 }
  0xfd   :  { %v582_v61 = vadd.f32 %v581_v56, %v1337_v53  ;;  %v598_v62 = vadd.f32 %v597_v57, %v1345_v58 }
  0xff   :  { %v599_v63 = vadd.f32 %v598_v62, %v1347_v59  ;;  %v583_v0 = vadd.f32 %v582_v61, %v1341_v55 }
 0x101   :  { %v600_v1 = vadd.f32 %v599_v63, %v1349_v60  ;;  %584 = vadd.xlane.f32.xlu0 %v583_v0 }
 0x105   :  { %601 = vadd.xlane.f32.xlu0 %v600_v1 }
 0x11b   :  { %809 = vperm.xlu0 %1097, %v565_v2  }
 0x18e   :  { %v585_v4 = vpop.xlane.xlu0 %584 }
 0x18f   :  { %v1359_v7 = vmul.f32 0.00048828125, %v585_v4 }
 0x191   :  { %v1363_v12 = vsub.f32 %v1263_v5, %v1359_v7  ;;  %v1367_v13 = vsub.f32 %v1265_v3, %v1359_v7  ;;  %v1371_v16 = vsub.f32 %v1267_v6, %v1359_v7  ;;  %v1381_v5 = vsub.f32 %v1273_v9, %v1359_v7 }
 0x192   :  { %v602_v15 = vpop.xlane.xlu0 %601  ;;  %v1384_v3 = vsub.f32 %v341_v18, %v1359_v7  ;;  %v1398_v31 = vsub.f32 %v1287_v20, %v1359_v7  ;;  %v1404_v32 = vsub.f32 %v1289_v21, %v1359_v7  ;;  %v1418_v40 = vsub.f32 %v1293_v23, %v1359_v7 }
 0x193   :  { %v703_v17 = vmul.f32 %v1363_v12, %v1363_v12  ;;  %v704_v19 = vmul.f32 %v1367_v13, %v1367_v13  ;;  %v1377_v24 = vmul.f32 0.00048828125, %v602_v15  ;;  %v705_v25 = vmul.f32 %v1371_v16, %v1371_v16 }
 0x194   :  { %v706_v9 = vmul.f32 %v1381_v5, %v1381_v5  ;;  %v708_v21 = vmul.f32 %v1398_v31, %v1398_v31  ;;  %v709_v46 = vmul.f32 %v1404_v32, %v1404_v32  ;;  %v1452_v61 = vsub.f32 %v1313_v37, %v1359_v7 }
 0x195   :  { %v735_v6 = vadd.f32 %v704_v19, %v703_v17  ;;  %v1390_v29 = vsub.f32 %v1271_v8, %v1377_v24  ;;  %v1394_v30 = vsub.f32 %v1275_v10, %v1377_v24  ;;  %v707_v8 = vmul.f32 %v1384_v3, %v1384_v3 }
 0x196   :  { %v1410_v10 = vsub.f32 %v1277_v11, %v1377_v24  ;;  %v1424_v45 = vsub.f32 %v1282_v14, %v1377_v24  ;;  %v1428_v11 = vsub.f32 %v1307_v33, %v1359_v7  ;;  %v1434_v23 = vsub.f32 %v1291_v22, %v1377_v24 }
 0x197   :  { %v736_v18 = vadd.f32 %v735_v6, %v705_v25  ;;  %v719_v20 = vmul.f32 %v1390_v29, %v1390_v29  ;;  %v720_v35 = vmul.f32 %v1394_v30, %v1394_v30  ;;  %v1440_v14 = vsub.f32 %v1311_v36, %v1359_v7 }
 0x198   :  { %v721_v48 = vmul.f32 %v1410_v10, %v1410_v10  ;;  %v710_v33 = vmul.f32 %v1418_v40, %v1418_v40  ;;  %v1446_v56 = vsub.f32 %v1297_v26, %v1377_v24  ;;  %v722_v22 = vmul.f32 %v1424_v45, %v1424_v45 }
 0x199   :  { %v737_v34 = vadd.f32 %v736_v18, %v706_v9  ;;  %v752_v50 = vadd.f32 %v720_v35, %v719_v20  ;;  %v711_v36 = vmul.f32 %v1428_v11, %v1428_v11  ;;  %v1458_v63 = vsub.f32 %v1299_v27, %v1377_v24 }
 0x19a   :  { %v723_v26 = vmul.f32 %v1434_v23, %v1434_v23  ;;  %v1464_v1 = vsub.f32 %v1317_v39, %v1359_v7  ;;  %v712_v37 = vmul.f32 %v1440_v14, %v1440_v14  ;;  %v1470_v4 = vsub.f32 %v1301_v28, %v1377_v24 }
 0x19b   :  { %v738_v41 = vadd.f32 %v737_v34, %v707_v8  ;;  %v753_v57 = vadd.f32 %v752_v50, %v721_v48  ;;  %v724_v27 = vmul.f32 %v1446_v56, %v1446_v56  ;;  %v1476_v17 = vsub.f32 %v1331_v49, %v1359_v7 }
 0x19c   :  { %v713_v39 = vmul.f32 %v1452_v61, %v1452_v61  ;;  %v1482_v25 = vsub.f32 %v1315_v38, %v1377_v24  ;;  %v725_v28 = vmul.f32 %v1458_v63, %v1458_v63  ;;  %v1488_v9 = vsub.f32 %v1335_v52, %v1359_v7 }
 0x19d   :  { %v739_v47 = vadd.f32 %v738_v41, %v708_v21  ;;  %v754_v0 = vadd.f32 %v753_v57, %v722_v22  ;;  %v714_v49 = vmul.f32 %v1464_v1, %v1464_v1  ;;  %v1494_v8 = vsub.f32 %v1321_v42, %v1377_v24 }
 0x19e   :  { %v726_v38 = vmul.f32 %v1470_v4, %v1470_v4  ;;  %v1500_v20 = vsub.f32 %v1337_v53, %v1359_v7  ;;  %v715_v52 = vmul.f32 %v1476_v17, %v1476_v17  ;;  %v1506_v21 = vsub.f32 %v1323_v43, %v1377_v24 }
 0x19f   :  { %v740_v51 = vadd.f32 %v739_v47, %v709_v46  ;;  %v755_v15 = vadd.f32 %v754_v0, %v723_v26  ;;  %v727_v42 = vmul.f32 %v1482_v25, %v1482_v25  ;;  %v654_v46 = vsub.f32 %v1341_v55, %v1359_v7 }
 0x1a0   :  { %v716_v47 = vmul.f32 %v1488_v9, %v1488_v9  ;;  %v1516_v48 = vsub.f32 %v1325_v44, %v1377_v24  ;;  %v728_v50 = vmul.f32 %v1494_v8, %v1494_v8  ;;  %v1524_v22 = vsub.f32 %v1339_v54, %v1377_v24 }
 0x1a1   :  { %v741_v62 = vadd.f32 %v740_v51, %v710_v33  ;;  %v756_v6 = vadd.f32 %v755_v15, %v724_v27  ;;  %v717_v33 = vmul.f32 %v1500_v20, %v1500_v20  ;;  %v729_v55 = vmul.f32 %v1506_v21, %v1506_v21 }
 0x1a2   :  { %v718_v57 = vmul.f32 %v654_v46, %v654_v46  ;;  %v1530_v44 = vsub.f32 %v1345_v58, %v1377_v24  ;;  %v731_v54 = vmul.f32 %v1524_v22, %v1524_v22  ;;  %v1542_v27 = vsub.f32 %v1349_v60, %v1377_v24  ;;  %v1553_v60 = vpop.permute.xlu1 %814 }
 0x1a3   :  { %v742_v2 = vadd.f32 %v741_v62, %v711_v36  ;;  %v757_v34 = vadd.f32 %v756_v6, %v725_v28  ;;  %v730_v62 = vmul.f32 %v1516_v48, %v1516_v48 }
 0x1a4   :  { %v732_v58 = vmul.f32 %v1530_v44, %v1530_v44 }
 0x1a5   :  { %v743_v19 = vadd.f32 %v742_v2, %v712_v37  ;;  %v758_v41 = vadd.f32 %v757_v34, %v726_v38  ;;  %v1536_v37 = vsub.f32 %v1347_v59, %v1377_v24  ;;  %v734_v59 = vmul.f32 %v1542_v27, %v1542_v27 }
 0x1a6   :  { %v1555_v24 = vpop.permute.xlu1 %851 }
 0x1a7   :  { %v744_v18 = vadd.f32 %v743_v19, %v713_v39  ;;  %v759_v43 = vadd.f32 %v758_v41, %v727_v42  ;;  %v733_v39 = vmul.f32 %v1536_v37, %v1536_v37 }
 0x1a9   :  { %v745_v35 = vadd.f32 %v744_v18, %v714_v49  ;;  %v760_v7 = vadd.f32 %v759_v43, %v728_v50  ;;  %v568_v49 = vld [vmem:[%s1823_s3 + $0x8] sm:$0xff] }
 0x1ab   :  { %v746_v53 = vadd.f32 %v745_v35, %v715_v52  ;;  %v761_v26 = vadd.f32 %v760_v7, %v729_v55 }
 0x1ad   :  { %v747_v51 = vadd.f32 %v746_v53, %v716_v47  ;;  %v762_v2 = vadd.f32 %v761_v26, %v730_v62 }
 0x1af   :  { %v748_v36 = vadd.f32 %v747_v51, %v717_v33  ;;  %v763_v15 = vadd.f32 %v762_v2, %v731_v54 }
 0x1b1   :  { %v749_v0 = vadd.f32 %v748_v36, %v718_v57  ;;  %v764_v19 = vadd.f32 %v763_v15, %v732_v58  ;;  %v810_v57 = vpop.permute.xlu0 %809 }
 0x1b3   :  { %750 = vadd.xlane.f32.xlu1 %v749_v0  ;;  %v765_v28 = vadd.f32 %v764_v19, %v733_v39 }
 0x1b5   :  { %v766_v6 = vadd.f32 %v765_v28, %v734_v59 }
 0x1b7   :  { %767 = vadd.xlane.f32.xlu1 %v766_v6 }
 0x1c8   :  { %856 = vperm.xlu1 %1098, %v568_v49  }
 0x240   :  { %v751_v18 = vpop.xlane.xlu1 %750 }
 0x241   :  { %v769_v38 = vmul.f32 0.00048828125, %v751_v18 }
 0x243   :  { %v771_v34 = vadd.f32 1e-05, %v769_v38 }
 0x244   :  { %v768_v52 = vpop.xlane.xlu1 %767 }
 0x245   :  { %1100 = vrsqrt.f32 %v771_v34  ;;  %v770_v35 = vmul.f32 0.00048828125, %v768_v52 }
 0x247   :  { %v772_v42 = vadd.f32 1e-05, %v770_v35 }
 0x249   :  { %1102 = vrsqrt.f32 %v772_v42 }
 0x24f   :  { %v1101_v41 = vpop.eup %1100 }
 0x250   :  { %v775_v47 = vmul.f32 %v1101_v41, %v1363_v12  ;;  %v776_v53 = vmul.f32 %v1101_v41, %v1367_v13  ;;  %v777_v50 = vmul.f32 %v1101_v41, %v1371_v16  ;;  %v778_v43 = vmul.f32 %v1101_v41, %v1381_v5 }
 0x251   :  { %v779_v33 = vmul.f32 %v1101_v41, %v1384_v3  ;;  %v780_v51 = vmul.f32 %v1101_v41, %v1398_v31  ;;  %v781_v55 = vmul.f32 %v1101_v41, %v1404_v32  ;;  %v782_v7 = vmul.f32 %v1101_v41, %v1418_v40 }
 0x252   :  { %v783_v36 = vmul.f32 %v1101_v41, %v1428_v11  ;;  %v784_v62 = vmul.f32 %v1101_v41, %v1440_v14  ;;  %v785_v12 = vmul.f32 %v1101_v41, %v1452_v61  ;;  %v786_v13 = vmul.f32 %v1101_v41, %v1464_v1 }
 0x253   :  { %v787_v16 = vmul.f32 %v1101_v41, %v1476_v17  ;;  %v788_v5 = vmul.f32 %v1101_v41, %v1488_v9  ;;  %v789_v3 = vmul.f32 %v1101_v41, %v1500_v20  ;;  %v790_v31 = vmul.f32 %v1101_v41, %v654_v46  ;;  %v1103_v39 = vpop.eup %1102 }
 0x254   :  { %v817_v26 = vmul.f32 %v810_v57, %v775_v47  ;;  %v818_v32 = vmul.f32 %v810_v57, %v776_v53  ;;  %v819_v0 = vmul.f32 %v810_v57, %v777_v50  ;;  %v820_v40 = vmul.f32 %v810_v57, %v778_v43 }
 0x255   :  { %v1572_v54 = vmul.f32 %v810_v57, %v779_v33  ;;  %v1574_v11 = vmul.f32 %v810_v57, %v780_v51  ;;  %v1576_v14 = vmul.f32 %v810_v57, %v781_v55  ;;  %v1578_v61 = vmul.f32 %v810_v57, %v782_v7 }
 0x256   :  { %v1580_v1 = vmul.f32 %v810_v57, %v783_v36  ;;  %v1582_v17 = vmul.f32 %v810_v57, %v784_v62  ;;  %v1584_v9 = vmul.f32 %v810_v57, %v785_v12  ;;  %v1586_v20 = vmul.f32 %v810_v57, %v786_v13 }
 0x257   :  { %v1588_v46 = vmul.f32 %v810_v57, %v787_v16  ;;  %v1590_v2 = vmul.f32 %v810_v57, %v788_v5  ;;  %v1592_v58 = vmul.f32 %v810_v57, %v789_v3  ;;  %v1594_v15 = vmul.f32 %v810_v57, %v790_v31  ;;  %v857_v57 = vpop.permute.xlu1 %856 }
 0x258   :  { %v1597_v19 = vadd.f32 %v1555_v24, %v817_v26  ;;  %v1600_v59 = vadd.f32 %v1555_v24, %v818_v32  ;;  %v1603_v28 = vadd.f32 %v1555_v24, %v819_v0  ;;  %v1606_v6 = vadd.f32 %v1555_v24, %v820_v40 }
 0x259   :  { %v791_v49 = vmul.f32 %v1103_v39, %v1390_v29  ;;  %v792_v18 = vmul.f32 %v1103_v39, %v1394_v30  ;;  %v793_v38 = vmul.f32 %v1103_v39, %v1410_v10  ;;  %v794_v34 = vmul.f32 %v1103_v39, %v1424_v45 }
 0x25a   :  { %v795_v52 = vmul.f32 %v1103_v39, %v1434_v23  ;;  %v796_v35 = vmul.f32 %v1103_v39, %v1446_v56  ;;  %v797_v42 = vmul.f32 %v1103_v39, %v1458_v63  ;;  %v798_v41 = vmul.f32 %v1103_v39, %v1470_v4 }
 0x25b   :  { %v799_v47 = vmul.f32 %v1103_v39, %v1482_v25  ;;  %v800_v53 = vmul.f32 %v1103_v39, %v1494_v8  ;;  %v801_v29 = vmul.f32 %v1103_v39, %v1506_v21  ;;  %v802_v30 = vmul.f32 %v1103_v39, %v1516_v48 }
 0x25c   :  { %v803_v10 = vmul.f32 %v1103_v39, %v1524_v22  ;;  %v804_v45 = vmul.f32 %v1103_v39, %v1530_v44  ;;  %v805_v23 = vmul.f32 %v1103_v39, %v1536_v37  ;;  %v806_v56 = vmul.f32 %v1103_v39, %v1542_v27 }
 0x25d   :  { %v833_v63 = vmul.f32 %v1553_v60, %v791_v49  ;;  %v834_v4 = vmul.f32 %v1553_v60, %v792_v18  ;;  %v835_v25 = vmul.f32 %v1553_v60, %v793_v38  ;;  %v836_v8 = vmul.f32 %v1553_v60, %v794_v34 }
 0x25e   :  { %v837_v21 = vmul.f32 %v1553_v60, %v795_v52  ;;  %v838_v48 = vmul.f32 %v1553_v60, %v796_v35  ;;  %v839_v22 = vmul.f32 %v1553_v60, %v797_v42  ;;  %v840_v44 = vmul.f32 %v1553_v60, %v798_v41 }
 0x25f   :  { %v841_v37 = vmul.f32 %v1553_v60, %v799_v47  ;;  %v842_v27 = vmul.f32 %v1553_v60, %v800_v53  ;;  %v843_v50 = vmul.f32 %v1553_v60, %v801_v29  ;;  %v844_v43 = vmul.f32 %v1553_v60, %v802_v30 }
 0x260   :  { %v845_v33 = vmul.f32 %v1553_v60, %v803_v10  ;;  %v846_v51 = vmul.f32 %v1553_v60, %v804_v45  ;;  %v847_v55 = vmul.f32 %v1553_v60, %v805_v23  ;;  %v848_v7 = vmul.f32 %v1553_v60, %v806_v56 }
 0x261   :  { %v875_v36 = vadd.f32 %v857_v57, %v833_v63  ;;  %v876_v62 = vadd.f32 %v857_v57, %v834_v4  ;;  %v877_v12 = vadd.f32 %v857_v57, %v835_v25  ;;  %v878_v13 = vadd.f32 %v857_v57, %v836_v8 }
 0x262   :  { %v879_v16 = vadd.f32 %v857_v57, %v837_v21  ;;  %v880_v5 = vadd.f32 %v857_v57, %v838_v48  ;;  %v881_v3 = vadd.f32 %v857_v57, %v839_v22  ;;  %v882_v31 = vadd.f32 %v857_v57, %v840_v44 }
 0x263   :  { %v883_v26 = vadd.f32 %v857_v57, %v841_v37  ;;  %v884_v32 = vadd.f32 %v857_v57, %v842_v27  ;;  %v885_v0 = vadd.f32 %v857_v57, %v843_v50  ;;  %v886_v40 = vadd.f32 %v857_v57, %v844_v43 }
 0x264   :  { %v887_v39 = vadd.f32 %v857_v57, %v845_v33  ;;  %v888_v49 = vadd.f32 %v857_v57, %v846_v51  ;;  %v889_v18 = vadd.f32 %v857_v57, %v847_v55  ;;  %v890_v38 = vadd.f32 %v857_v57, %v848_v7 }
 0x265   :  { %vm907_vm1 = vcmp.ge.f32.partialorder %v875_v36, 0.0  ;;  %vm908_vm2 = vcmp.ge.f32.partialorder %v876_v62, 0.0  ;;  %vm909_vm3 = vcmp.ge.f32.partialorder %v877_v12, 0.0  ;;  %vm910_vm4 = vcmp.ge.f32.partialorder %v878_v13, 0.0 }
 0x266   :  { %vm911_vm5 = vcmp.ge.f32.partialorder %v879_v16, 0.0  ;;  %vm912_vm6 = vcmp.ge.f32.partialorder %v880_v5, 0.0  ;;  %vm913_vm7 = vcmp.ge.f32.partialorder %v881_v3, 0.0  ;;  %vm914_vm8 = vcmp.ge.f32.partialorder %v882_v31, 0.0 }
 0x267   :  { %vm915_vm9 = vcmp.ge.f32.partialorder %v883_v26, 0.0  ;;  %vm916_vm10 = vcmp.ge.f32.partialorder %v884_v32, 0.0  ;;  %vm917_vm11 = vcmp.ge.f32.partialorder %v885_v0, 0.0  ;;  %vm918_vm12 = vcmp.ge.f32.partialorder %v886_v40, 0.0 }
 0x268   :  { %vm919_vm13 = vcmp.ge.f32.partialorder %v887_v39, 0.0  ;;  %vm920_vm14 = vcmp.ge.f32.partialorder %v888_v49, 0.0  ;;  %vm921_vm15 = vcmp.ge.f32.partialorder %v889_v18, 0.0  ;;  %vm922_vm0 = vcmp.ge.f32.partialorder %v890_v38, 0.0 }
 0x269   :  { %v939_v60 = vmul.f32 0.2, %v875_v36  ;;  %v940_v34 = vmul.f32 0.2, %v876_v62  ;;  %v941_v52 = vmul.f32 0.2, %v877_v12  ;;  %v1642_v35 = vadd.f32 %v1555_v24, %v1572_v54 }
 0x26a   :  { %v942_v42 = vmul.f32 0.2, %v878_v13  ;;  %v943_v41 = vmul.f32 0.2, %v879_v16  ;;  %v944_v47 = vmul.f32 0.2, %v880_v5  ;;  %v1646_v53 = vadd.f32 %v1555_v24, %v1574_v11 }
 0x26b   :  { %v945_v29 = vmul.f32 0.2, %v881_v3  ;;  %v946_v30 = vmul.f32 0.2, %v882_v31  ;;  %v947_v10 = vmul.f32 0.2, %v883_v26  ;;  %v971_v45 = vsel %vm907_vm1, %v875_v36, %v939_v60 }
 0x26c   :  { %v948_v23 = vmul.f32 0.2, %v884_v32  ;;  %v949_v56 = vmul.f32 0.2, %v885_v0  ;;  %v950_v63 = vmul.f32 0.2, %v886_v40  ;;  %v972_v4 = vsel %vm908_vm2, %v876_v62, %v940_v34 }
 0x26d   :  { %1035 = vst [vmem:[%s1824_s4 + $0x80] sm:$0xff] %v971_v45  ;;  %v951_v54 = vmul.f32 0.2, %v887_v39  ;;  %v952_v25 = vmul.f32 0.2, %v888_v49  ;;  %v973_v11 = vsel %vm909_vm3, %v877_v12, %v941_v52  ;;  %1036 = vst [vmem:[%s1824_s4 + $0x88] sm:$0xff] %v972_v4  ;;  %v974_v48 = vsel %vm910_vm4, %v878_v13, %v942_v42 }
 0x26e   :  { %v953_v8 = vmul.f32 0.2, %v889_v18  ;;  %v954_v21 = vmul.f32 0.2, %v890_v38  ;;  %v975_v22 = vsel %vm911_vm5, %v879_v16, %v943_v41  ;;  %v976_v44 = vsel %vm912_vm6, %v880_v5, %v944_v47  ;;  %1037 = vst [vmem:[%s1824_s4 + $0x90] sm:$0xff] %v973_v11  ;;  %1038 = vst [vmem:[%s1824_s4 + $0x98] sm:$0xff] %v974_v48 }
 0x26f   :  { %v977_v37 = vsel %vm913_vm7, %v881_v3, %v945_v29  ;;  %v978_v27 = vsel %vm914_vm8, %v882_v31, %v946_v30  ;;  %v979_v50 = vsel %vm915_vm9, %v883_v26, %v947_v10  ;;  %v980_v43 = vsel %vm916_vm10, %v884_v32, %v948_v23  ;;  %1039 = vst [vmem:[%s1824_s4 + $0xa0] sm:$0xff] %v975_v22 }
 0x270   :  { %1040 = vst [vmem:[%s1824_s4 + $0xa8] sm:$0xff] %v976_v44  ;;  %v981_v33 = vsel %vm917_vm11, %v885_v0, %v949_v56  ;;  %v982_v51 = vsel %vm918_vm12, %v886_v40, %v950_v63  ;;  %v983_v55 = vsel %vm919_vm13, %v887_v39, %v951_v54  ;;  %v984_v7 = vsel %vm920_vm14, %v888_v49, %v952_v25 }
 0x271   :  { %1041 = vst [vmem:[%s1824_s4 + $0xb0] sm:$0xff] %v977_v37  ;;  %1042 = vst [vmem:[%s1824_s4 + $0xb8] sm:$0xff] %v978_v27  ;;  %v985_v57 = vsel %vm921_vm15, %v889_v18, %v953_v8  ;;  %v986_v36 = vsel %vm922_vm0, %v890_v38, %v954_v21  ;;  %v865_v62 = vadd.f32 %v1555_v24, %v1576_v14  ;;  %vm891_vm1 = vcmp.ge.f32.partialorder %v1597_v19, 0.0 }
 0x272   :  { %1043 = vst [vmem:[%s1824_s4 + $0xc0] sm:$0xff] %v979_v50  ;;  %1044 = vst [vmem:[%s1824_s4 + $0xc8] sm:$0xff] %v980_v43  ;;  %v866_v12 = vadd.f32 %v1555_v24, %v1578_v61  ;;  %v867_v13 = vadd.f32 %v1555_v24, %v1580_v1  ;;  %v868_v16 = vadd.f32 %v1555_v24, %v1582_v17  ;;  %vm892_vm2 = vcmp.ge.f32.partialorder %v1600_v59, 0.0 }
 0x273   :  { %1045 = vst [vmem:[%s1824_s4 + $0xd0] sm:$0xff] %v981_v33  ;;  %1046 = vst [vmem:[%s1824_s4 + $0xd8] sm:$0xff] %v982_v51  ;;  %v869_v14 = vadd.f32 %v1555_v24, %v1584_v9  ;;  %v870_v61 = vadd.f32 %v1555_v24, %v1586_v20  ;;  %v871_v5 = vadd.f32 %v1555_v24, %v1588_v46  ;;  %vm893_vm3 = vcmp.ge.f32.partialorder %v1603_v28, 0.0 }
 0x274   :  { %1047 = vst [vmem:[%s1824_s4 + $0xe0] sm:$0xff] %v983_v55  ;;  %1048 = vst [vmem:[%s1824_s4 + $0xe8] sm:$0xff] %v984_v7  ;;  %v872_v3 = vadd.f32 %v1555_v24, %v1590_v2  ;;  %v873_v31 = vadd.f32 %v1555_v24, %v1592_v58  ;;  %v874_v1 = vadd.f32 %v1555_v24, %v1594_v15  ;;  %vm894_vm4 = vcmp.ge.f32.partialorder %v1606_v6, 0.0 }
 0x275   :  { %1049 = vst [vmem:[%s1824_s4 + $0xf0] sm:$0xff] %v985_v57  ;;  %1050 = vst [vmem:[%s1824_s4 + $0xf8] sm:$0xff] %v986_v36  ;;  %vm895_vm5 = vcmp.ge.f32.partialorder %v1642_v35, 0.0  ;;  %vm896_vm6 = vcmp.ge.f32.partialorder %v1646_v53, 0.0  ;;  %vm897_vm7 = vcmp.ge.f32.partialorder %v865_v62, 0.0  ;;  %vm898_vm8 = vcmp.ge.f32.partialorder %v866_v12, 0.0 }
 0x276   :  { %vm899_vm9 = vcmp.ge.f32.partialorder %v867_v13, 0.0  ;;  %vm900_vm10 = vcmp.ge.f32.partialorder %v868_v16, 0.0  ;;  %vm901_vm11 = vcmp.ge.f32.partialorder %v869_v14, 0.0  ;;  %vm902_vm12 = vcmp.ge.f32.partialorder %v870_v61, 0.0 }
 0x277   :  { %vm903_vm13 = vcmp.ge.f32.partialorder %v871_v5, 0.0  ;;  %vm904_vm14 = vcmp.ge.f32.partialorder %v872_v3, 0.0  ;;  %vm905_vm15 = vcmp.ge.f32.partialorder %v873_v31, 0.0  ;;  %vm906_vm0 = vcmp.ge.f32.partialorder %v874_v1, 0.0 }
 0x278   :  { %v923_v24 = vmul.f32 0.2, %v1597_v19  ;;  %v924_v17 = vmul.f32 0.2, %v1600_v59  ;;  %v925_v9 = vmul.f32 0.2, %v1603_v28 }
 0x279   :  { %v926_v20 = vmul.f32 0.2, %v1606_v6  ;;  %v927_v46 = vmul.f32 0.2, %v1642_v35  ;;  %v928_v2 = vmul.f32 0.2, %v1646_v53 }
 0x27a   :  { %v929_v58 = vmul.f32 0.2, %v865_v62  ;;  %v930_v15 = vmul.f32 0.2, %v866_v12  ;;  %v931_v26 = vmul.f32 0.2, %v867_v13  ;;  %v955_v32 = vsel %vm891_vm1, %v1597_v19, %v923_v24 }
 0x27b   :  { %v932_v0 = vmul.f32 0.2, %v868_v16  ;;  %v933_v40 = vmul.f32 0.2, %v869_v14  ;;  %v934_v39 = vmul.f32 0.2, %v870_v61  ;;  %v956_v49 = vsel %vm892_vm2, %v1600_v59, %v924_v17  ;;  %1019 = vst [vmem:[%s1824_s4] sm:$0xff] %v955_v32 }
 0x27c   :  { %v935_v18 = vmul.f32 0.2, %v871_v5  ;;  %v936_v38 = vmul.f32 0.2, %v872_v3  ;;  %v937_v60 = vmul.f32 0.2, %v873_v31  ;;  %v957_v34 = vsel %vm893_vm3, %v1603_v28, %v925_v9 }
 0x27d   :  { %1020 = vst [vmem:[%s1824_s4 + $0x8] sm:$0xff] %v956_v49  ;;  %v938_v19 = vmul.f32 0.2, %v874_v1  ;;  %v958_v59 = vsel %vm894_vm4, %v1606_v6, %v926_v20  ;;  %v959_v52 = vsel %vm895_vm5, %v1642_v35, %v927_v46  ;;  %v960_v42 = vsel %vm896_vm6, %v1646_v53, %v928_v2  ;;  %1021 = vst [vmem:[%s1824_s4 + $0x10] sm:$0xff] %v957_v34 }
 0x27e   :  { %v961_v28 = vsel %vm897_vm7, %v865_v62, %v929_v58  ;;  %v962_v41 = vsel %vm898_vm8, %v866_v12, %v930_v15  ;;  %v963_v47 = vsel %vm899_vm9, %v867_v13, %v931_v26  ;;  %v964_v6 = vsel %vm900_vm10, %v868_v16, %v932_v0  ;;  %1022 = vst [vmem:[%s1824_s4 + $0x18] sm:$0xff] %v958_v59 }
 0x27f   :  { %1023 = vst [vmem:[%s1824_s4 + $0x20] sm:$0xff] %v959_v52  ;;  %1024 = vst [vmem:[%s1824_s4 + $0x28] sm:$0xff] %v960_v42  ;;  %v965_v35 = vsel %vm901_vm11, %v869_v14, %v933_v40  ;;  %v966_v53 = vsel %vm902_vm12, %v870_v61, %v934_v39  ;;  %v967_v29 = vsel %vm903_vm13, %v871_v5, %v935_v18 }
 0x280   :  { %v968_v30 = vsel %vm904_vm14, %v872_v3, %v936_v38  ;;  %1025 = vst [vmem:[%s1824_s4 + $0x30] sm:$0xff] %v961_v28  ;;  %1026 = vst [vmem:[%s1824_s4 + $0x38] sm:$0xff] %v962_v41  ;;  %v969_v10 = vsel %vm905_vm15, %v873_v31, %v937_v60  ;;  %v970_v45 = vsel %vm906_vm0, %v874_v1, %v938_v19 }
 0x281   :  { %1027 = vst [vmem:[%s1824_s4 + $0x40] sm:$0xff] %v963_v47  ;;  %1028 = vst [vmem:[%s1824_s4 + $0x48] sm:$0xff] %v964_v6 }
 0x282   :  { %1029 = vst [vmem:[%s1824_s4 + $0x50] sm:$0xff] %v965_v35  ;;  %1030 = vst [vmem:[%s1824_s4 + $0x58] sm:$0xff] %v966_v53 }
 0x283   :  { %1031 = vst [vmem:[%s1824_s4 + $0x60] sm:$0xff] %v967_v29  ;;  %1032 = vst [vmem:[%s1824_s4 + $0x68] sm:$0xff] %v968_v30 }
 0x284   :  { %1033 = vst [vmem:[%s1824_s4 + $0x70] sm:$0xff] %v969_v10  ;;  %1034 = vst [vmem:[%s1824_s4 + $0x78] sm:$0xff] %v970_v45 }

// kernel: _lambda_.17
= control target key start
LH: loop header
LB: loop body
LE: loop exit
PB: predicated region body
PF: predicated region fallthrough
CT: control target
= control target key end

     0   :  { %v382_v1 = vmov 0   ;;  %vm97_vm0 = vcmask 392192   ;;  %s487_s1 = inlined_call_operand.vmem [shape: bf16[48,512], index: 1, kind: input, shape index: {}]   ;;  %s488_s0 = inlined_call_operand.vmem [shape: bf16[16,48], index: 0, kind: input, shape index: {}]   ;;  %s489_s2 = inlined_call_operand.vmem [shape: f32[16,1], index: 2, kind: input, shape index: {}]   ;;  %s490_s3 = inlined_call_operand.vmem [shape: f32[16,1], index: 3, kind: input, shape index: {}]   ;;  %s491_s4 = inlined_call_operand.vmem [shape: f32[16,512], index: 4, kind: output, shape index: {}]  }
   0x1   :  { %v359_v0 = vld [vmem:[%s487_s1 + $0x4] ss:$16 sps:$4 sm:$0xff]   ;;  %133 = vmatprep.mubr.bf16.mxu0 %v382_v1  ;;  %176 = vmatprep.mubr.bf16.mxu1 %v382_v1  ;;  %v361_v2 = vld [vmem:[%s487_s1 + $0xc] ss:$16 sps:$4 sm:$0xff]   ;;  %v363_v3 = vld [vmem:[%s487_s1] ss:$16 sps:$4 sm:$0xff]  }
   0x2   :  { %358 = vset.pattern.permute.xlu1 %v382_v1  ;;  %357 = vset.pattern.permute.xlu0 %v382_v1  ;;  %v364_v4 = vld [vmem:[%s487_s1 + $0x8] ss:$16 sps:$4 sm:$0xff]   ;;  %v365_v5 = vld [vmem:[%s487_s1 + $0x24] ss:$16 sps:$4 sm:$0xff]   ;;  %v367_v6 = vld [vmem:[%s487_s1 + $0x2c] ss:$16 sps:$4 sm:$0xff]  }
   0x3   :  { %101 = vmatprep.subr.bf16.mxu0 %v359_v0  ;;  %144 = vmatprep.subr.bf16.mxu1 %v361_v2  ;;  %v369_v7 = vld [vmem:[%s487_s1 + $0x20] ss:$16 sps:$4 sm:$0xff]   ;;  %v370_v8 = vld [vmem:[%s487_s1 + $0x28] ss:$16 sps:$4 sm:$0xff]   ;;  %v371_v9 = vld [vmem:[%s487_s1 + $0x44] ss:$16 sps:$4 sm:$0xff]  }
   0x4   :  { %102 = vmatpush1.bf16.msra.mxu0 %v363_v3  ;;  %145 = vmatpush1.bf16.msra.mxu1 %v364_v4  ;;  %v373_v10 = vld [vmem:[%s487_s1 + $0x4c] ss:$16 sps:$4 sm:$0xff]   ;;  %v375_v11 = vld [vmem:[%s487_s1 + $0x40] ss:$16 sps:$4 sm:$0xff]   ;;  %v376_v12 = vld [vmem:[%s487_s1 + $0x48] ss:$16 sps:$4 sm:$0xff]  }
   0x5   :  { %103 = vmatprep.subr.bf16.mxu0 %v365_v5  ;;  %146 = vmatprep.subr.bf16.mxu1 %v367_v6  ;;  %v377_v13 = vld [vmem:[%s488_s0] sm:$0xff]   ;;  %v188_v14 = vld [vmem:[%s489_s2 + $0x8] sm:$0xff] }
   0x6   :  { %268 = vperm.xlu1 %358, %v188_v14   ;;  %v189_v15 = vld [vmem:[%s490_s3] sm:$0xff]  ;;  %v190_v57 = vld [vmem:[%s490_s3 + $0x8] sm:$0xff] }
   0x7   :  { %v187_v30 = vld [vmem:[%s489_s2] sm:$0xff] }
   0x8   :  { %104 = vmatpush1.bf16.msra.mxu0 %v369_v7  ;;  %147 = vmatpush1.bf16.msra.mxu1 %v370_v8 }
   0x9   :  { %105 = vmatprep.subr.bf16.mxu0 %v371_v9  ;;  %148 = vmatprep.subr.bf16.mxu1 %v373_v10 }
   0xa   :  { %281 = vperm.xlu1 %358, %v189_v15  }
   0xc   :  { %106 = vmatpush1.bf16.msra.mxu0 %v375_v11  ;;  %149 = vmatpush1.bf16.msra.mxu1 %v376_v12 }
   0xf   :  { %354 = vmatmul.mubr.msk.bf16.vlgmr.msra.gmra.mrb[0].mxu0 %vm97_vm0, %v377_v13  ;;  %355 = vmatmul.mubr.msk.bf16.vlgmr.msra.gmra.mrb[0].mxu1 %vm97_vm0, %v377_v13 }
  0x85   :  { %v269_v58 = vpop.permute.xlu1 %268 }
  0x89   :  { %v282_v59 = vpop.permute.xlu1 %281 }
  0xe2   :  { %v135_v16 = vpop.f32.mrb[0].mxu0  ;;  %v178_v17 = vpop.f32.mrb[0].mxu1 }
  0xe3   :  { %v137_v18 = vpop.f32.mrb[1].mxu0  ;;  %v180_v19 = vpop.f32.mrb[1].mxu1 }
  0xe4   :  { %v191_v20 = vadd.f32 %v137_v18, %v135_v16  ;;  %v139_v21 = vpop.f32.mrb[2].mxu0  ;;  %v182_v22 = vpop.f32.mrb[2].mxu1 }
  0xe5   :  { %v141_v23 = vpop.f32.mrb[3].mxu0  ;;  %v184_v24 = vpop.f32.mrb[3].mxu1 }
  0xe6   :  { %v196_v25 = vadd.f32 %v141_v23, %v139_v21  ;;  %v192_v26 = vadd.f32 %v191_v20, %v178_v17 }
  0xe8   :  { %v197_v27 = vadd.f32 %v196_v25, %v182_v22  ;;  %v193_v28 = vadd.f32 %v192_v26, %v180_v19 }
  0xea   :  { %v198_v29 = vadd.f32 %v197_v27, %v184_v24  ;;  %194 = vadd.xlane.f32.xlu0 %v193_v28 }
  0xee   :  { %199 = vadd.xlane.f32.xlu0 %v198_v29 }
 0x104   :  { %263 = vperm.xlu0 %357, %v187_v30  }
 0x177   :  { %v195_v31 = vpop.xlane.xlu0 %194 }
 0x178   :  { %v202_v32 = vmul.f32 0.001953125, %v195_v31 }
 0x17a   :  { %v213_v33 = vsub.f32 %v135_v16, %v202_v32  ;;  %v214_v34 = vsub.f32 %v137_v18, %v202_v32  ;;  %v215_v35 = vsub.f32 %v178_v17, %v202_v32  ;;  %v216_v37 = vsub.f32 %v180_v19, %v202_v32 }
 0x17b   :  { %v200_v36 = vpop.xlane.xlu0 %199 }
 0x17c   :  { %v203_v38 = vmul.f32 0.001953125, %v200_v36  ;;  %v229_v39 = vmul.f32 %v213_v33, %v213_v33  ;;  %v230_v40 = vmul.f32 %v214_v34, %v214_v34  ;;  %v231_v41 = vmul.f32 %v215_v35, %v215_v35 }
 0x17d   :  { %v232_v46 = vmul.f32 %v216_v37, %v216_v37 }
 0x17e   :  { %v217_v42 = vsub.f32 %v139_v21, %v203_v38  ;;  %v218_v43 = vsub.f32 %v141_v23, %v203_v38  ;;  %v237_v44 = vadd.f32 %v230_v40, %v229_v39  ;;  %v219_v45 = vsub.f32 %v182_v22, %v203_v38 }
 0x17f   :  { %v220_v48 = vsub.f32 %v184_v24, %v203_v38 }
 0x180   :  { %v238_v47 = vadd.f32 %v237_v44, %v231_v41  ;;  %v233_v49 = vmul.f32 %v217_v42, %v217_v42  ;;  %v234_v50 = vmul.f32 %v218_v43, %v218_v43  ;;  %v235_v52 = vmul.f32 %v219_v45, %v219_v45 }
 0x181   :  { %v236_v54 = vmul.f32 %v220_v48, %v220_v48 }
 0x182   :  { %v239_v51 = vadd.f32 %v238_v47, %v232_v46  ;;  %v242_v53 = vadd.f32 %v234_v50, %v233_v49 }
 0x183   :  { %v264_v3 = vpop.permute.xlu0 %263 }
 0x184   :  { %240 = vadd.xlane.f32.xlu1 %v239_v51  ;;  %v243_v55 = vadd.f32 %v242_v53, %v235_v52 }
 0x186   :  { %v244_v56 = vadd.f32 %v243_v55, %v236_v54 }
 0x188   :  { %245 = vadd.xlane.f32.xlu1 %v244_v56 }
 0x199   :  { %286 = vperm.xlu1 %358, %v190_v57  }
 0x211   :  { %v241_v60 = vpop.xlane.xlu1 %240 }
 0x212   :  { %v247_v61 = vmul.f32 0.001953125, %v241_v60 }
 0x214   :  { %v249_v62 = vadd.f32 1e-05, %v247_v61 }
 0x215   :  { %v246_v63 = vpop.xlane.xlu1 %245 }
 0x216   :  { %378 = vrsqrt.f32 %v249_v62  ;;  %v248_v0 = vmul.f32 0.001953125, %v246_v63 }
 0x218   :  { %v250_v1 = vadd.f32 1e-05, %v248_v0 }
 0x219   :  { %v287_v25 = vpop.permute.xlu1 %286 }
 0x21a   :  { %380 = vrsqrt.f32 %v250_v1 }
 0x220   :  { %v379_v2 = vpop.eup %378 }
 0x221   :  { %v253_v4 = vmul.f32 %v379_v2, %v213_v33  ;;  %v254_v5 = vmul.f32 %v379_v2, %v214_v34  ;;  %v255_v6 = vmul.f32 %v379_v2, %v215_v35  ;;  %v256_v7 = vmul.f32 %v379_v2, %v216_v37 }
 0x223   :  { %v271_v8 = vmul.f32 %v264_v3, %v253_v4  ;;  %v272_v9 = vmul.f32 %v264_v3, %v254_v5  ;;  %v273_v10 = vmul.f32 %v264_v3, %v255_v6  ;;  %v274_v11 = vmul.f32 %v264_v3, %v256_v7 }
 0x224   :  { %v381_v12 = vpop.eup %380 }
 0x225   :  { %v257_v13 = vmul.f32 %v381_v12, %v217_v42  ;;  %v258_v14 = vmul.f32 %v381_v12, %v218_v43  ;;  %v259_v15 = vmul.f32 %v381_v12, %v219_v45  ;;  %v260_v16 = vmul.f32 %v381_v12, %v220_v48 }
 0x226   :  { %v289_v17 = vadd.f32 %v282_v59, %v271_v8  ;;  %v290_v18 = vadd.f32 %v282_v59, %v272_v9  ;;  %v291_v19 = vadd.f32 %v282_v59, %v273_v10  ;;  %v292_v20 = vadd.f32 %v282_v59, %v274_v11 }
 0x227   :  { %v275_v21 = vmul.f32 %v269_v58, %v257_v13  ;;  %v276_v22 = vmul.f32 %v269_v58, %v258_v14  ;;  %v277_v23 = vmul.f32 %v269_v58, %v259_v15  ;;  %v278_v24 = vmul.f32 %v269_v58, %v260_v16 }
 0x228   :  { %vm297_vm1 = vcmp.ge.f32.partialorder %v289_v17, 0.0  ;;  %vm298_vm2 = vcmp.ge.f32.partialorder %v290_v18, 0.0  ;;  %vm299_vm3 = vcmp.ge.f32.partialorder %v291_v19, 0.0  ;;  %vm300_vm4 = vcmp.ge.f32.partialorder %v292_v20, 0.0 }
 0x229   :  { %v293_v26 = vadd.f32 %v287_v25, %v275_v21  ;;  %v294_v27 = vadd.f32 %v287_v25, %v276_v22  ;;  %v295_v28 = vadd.f32 %v287_v25, %v277_v23  ;;  %v296_v29 = vadd.f32 %v287_v25, %v278_v24 }
 0x22a   :  { %v305_v30 = vmul.f32 0.2, %v289_v17  ;;  %v306_v31 = vmul.f32 0.2, %v290_v18  ;;  %v307_v32 = vmul.f32 0.2, %v291_v19 }
 0x22b   :  { %vm301_vm5 = vcmp.ge.f32.partialorder %v293_v26, 0.0  ;;  %vm302_vm6 = vcmp.ge.f32.partialorder %v294_v27, 0.0  ;;  %vm303_vm7 = vcmp.ge.f32.partialorder %v295_v28, 0.0  ;;  %vm304_vm8 = vcmp.ge.f32.partialorder %v296_v29, 0.0 }
 0x22c   :  { %v309_v33 = vmul.f32 0.2, %v293_v26  ;;  %v310_v34 = vmul.f32 0.2, %v294_v27  ;;  %v311_v35 = vmul.f32 0.2, %v295_v28  ;;  %v313_v36 = vsel %vm297_vm1, %v289_v17, %v305_v30 }
 0x22d   :  { %v312_v37 = vmul.f32 0.2, %v296_v29  ;;  %v308_v38 = vmul.f32 0.2, %v292_v20  ;;  %v314_v39 = vsel %vm298_vm2, %v290_v18, %v306_v31  ;;  %v315_v40 = vsel %vm299_vm3, %v291_v19, %v307_v32  ;;  %329 = vst [vmem:[%s491_s4] sm:$0xff] %v313_v36 }
 0x22e   :  { %v317_v41 = vsel %vm301_vm5, %v293_v26, %v309_v33  ;;  %v318_v42 = vsel %vm302_vm6, %v294_v27, %v310_v34  ;;  %v319_v43 = vsel %vm303_vm7, %v295_v28, %v311_v35  ;;  %330 = vst [vmem:[%s491_s4 + $0x8] sm:$0xff] %v314_v39  ;;  %331 = vst [vmem:[%s491_s4 + $0x10] sm:$0xff] %v315_v40 }
 0x22f   :  { %v320_v44 = vsel %vm304_vm8, %v296_v29, %v312_v37  ;;  %333 = vst [vmem:[%s491_s4 + $0x20] sm:$0xff] %v317_v41  ;;  %334 = vst [vmem:[%s491_s4 + $0x28] sm:$0xff] %v318_v42  ;;  %v316_v45 = vsel %vm300_vm4, %v292_v20, %v308_v38 }
 0x230   :  { %335 = vst [vmem:[%s491_s4 + $0x30] sm:$0xff] %v319_v43  ;;  %336 = vst [vmem:[%s491_s4 + $0x38] sm:$0xff] %v320_v44 }
 0x231   :  { %332 = vst [vmem:[%s491_s4 + $0x18] sm:$0xff] %v316_v45 }

// kernel: _lambda_.19
= control target key start
LH: loop header
LB: loop body
LE: loop exit
PB: predicated region body
PF: predicated region fallthrough
CT: control target
= control target key end

     0   :  { %v469_v1 = vmov 0   ;;  %vm148_vm0 = vcmask 654336   ;;  %s627_s1 = inlined_call_operand.vmem [shape: bf16[80,512], index: 1, kind: input, shape index: {}]   ;;  %s628_s0 = inlined_call_operand.vmem [shape: bf16[16,80], index: 0, kind: input, shape index: {}]   ;;  %s629_s2 = inlined_call_operand.vmem [shape: f32[16,1], index: 2, kind: input, shape index: {}]   ;;  %s630_s3 = inlined_call_operand.vmem [shape: f32[16,1], index: 3, kind: input, shape index: {}]   ;;  %s631_s4 = inlined_call_operand.vmem [shape: f32[16,512], index: 4, kind: input, shape index: {}]   ;;  %s632_s5 = inlined_call_operand.vmem [shape: f32[16,512], index: 5, kind: output, shape index: {}]  }
   0x1   :  { %v434_v0 = vld [vmem:[%s627_s1 + $0x4] ss:$16 sps:$4 sm:$0xff]   ;;  %184 = vmatprep.mubr.bf16.mxu0 %v469_v1  ;;  %227 = vmatprep.mubr.bf16.mxu1 %v469_v1  ;;  %v436_v2 = vld [vmem:[%s627_s1 + $0xc] ss:$16 sps:$4 sm:$0xff]   ;;  %v438_v3 = vld [vmem:[%s627_s1] ss:$16 sps:$4 sm:$0xff]  }
   0x2   :  { %433 = vset.pattern.permute.xlu1 %v469_v1  ;;  %432 = vset.pattern.permute.xlu0 %v469_v1  ;;  %v439_v4 = vld [vmem:[%s627_s1 + $0x8] ss:$16 sps:$4 sm:$0xff]   ;;  %v440_v5 = vld [vmem:[%s627_s1 + $0x24] ss:$16 sps:$4 sm:$0xff]   ;;  %v442_v6 = vld [vmem:[%s627_s1 + $0x2c] ss:$16 sps:$4 sm:$0xff]  }
   0x3   :  { %152 = vmatprep.subr.bf16.mxu0 %v434_v0  ;;  %195 = vmatprep.subr.bf16.mxu1 %v436_v2  ;;  %v444_v7 = vld [vmem:[%s627_s1 + $0x20] ss:$16 sps:$4 sm:$0xff]   ;;  %v445_v8 = vld [vmem:[%s627_s1 + $0x28] ss:$16 sps:$4 sm:$0xff]   ;;  %v446_v9 = vld [vmem:[%s627_s1 + $0x44] ss:$16 sps:$4 sm:$0xff]  }
   0x4   :  { %153 = vmatpush1.bf16.msra.mxu0 %v438_v3  ;;  %196 = vmatpush1.bf16.msra.mxu1 %v439_v4  ;;  %v448_v10 = vld [vmem:[%s627_s1 + $0x4c] ss:$16 sps:$4 sm:$0xff]   ;;  %v450_v11 = vld [vmem:[%s627_s1 + $0x40] ss:$16 sps:$4 sm:$0xff]   ;;  %v451_v12 = vld [vmem:[%s627_s1 + $0x48] ss:$16 sps:$4 sm:$0xff]  }
   0x5   :  { %154 = vmatprep.subr.bf16.mxu0 %v440_v5  ;;  %197 = vmatprep.subr.bf16.mxu1 %v442_v6  ;;  %v452_v13 = vld [vmem:[%s627_s1 + $0x64] ss:$16 sps:$4 sm:$0xff]   ;;  %v454_v14 = vld [vmem:[%s627_s1 + $0x6c] ss:$16 sps:$4 sm:$0xff]   ;;  %v456_v15 = vld [vmem:[%s627_s1 + $0x60] ss:$16 sps:$4 sm:$0xff]  }
   0x6   :  { %v457_v16 = vld [vmem:[%s627_s1 + $0x68] ss:$16 sps:$4 sm:$0xff]   ;;  %v458_v17 = vld [vmem:[%s627_s1 + $0x84] ss:$16 sps:$4 sm:$0xff]   ;;  %v460_v18 = vld [vmem:[%s627_s1 + $0x8c] ss:$16 sps:$4 sm:$0xff]  }
   0x7   :  { %v462_v19 = vld [vmem:[%s627_s1 + $0x80] ss:$16 sps:$4 sm:$0xff]   ;;  %v463_v20 = vld [vmem:[%s627_s1 + $0x88] ss:$16 sps:$4 sm:$0xff]  }
   0x8   :  { %155 = vmatpush1.bf16.msra.mxu0 %v444_v7  ;;  %198 = vmatpush1.bf16.msra.mxu1 %v445_v8  ;;  %v464_v21 = vld [vmem:[%s628_s0] sm:$0xff]   ;;  %v239_v22 = vld [vmem:[%s629_s2 + $0x8] sm:$0xff] }
   0x9   :  { %156 = vmatprep.subr.bf16.mxu0 %v446_v9  ;;  %199 = vmatprep.subr.bf16.mxu1 %v448_v10  ;;  %v240_v23 = vld [vmem:[%s630_s3] sm:$0xff]  ;;  %v241_v1 = vld [vmem:[%s630_s3 + $0x8] sm:$0xff] }
   0xa   :  { %327 = vperm.xlu1 %433, %v239_v22   ;;  %v238_v38 = vld [vmem:[%s629_s2] sm:$0xff] }
   0xc   :  { %157 = vmatpush1.bf16.msra.mxu0 %v450_v11  ;;  %200 = vmatpush1.bf16.msra.mxu1 %v451_v12 }
   0xd   :  { %158 = vmatprep.subr.bf16.mxu0 %v452_v13  ;;  %201 = vmatprep.subr.bf16.mxu1 %v454_v14 }
   0xe   :  { %340 = vperm.xlu1 %433, %v240_v23  }
  0x10   :  { %159 = vmatpush1.bf16.msra.mxu0 %v456_v15  ;;  %202 = vmatpush1.bf16.msra.mxu1 %v457_v16 }
  0x11   :  { %160 = vmatprep.subr.bf16.mxu0 %v458_v17  ;;  %203 = vmatprep.subr.bf16.mxu1 %v460_v18 }
  0x14   :  { %161 = vmatpush1.bf16.msra.mxu0 %v462_v19  ;;  %204 = vmatpush1.bf16.msra.mxu1 %v463_v20 }
  0x17   :  { %429 = vmatmul.mubr.msk.bf16.vlgmr.msra.gmra.mrb[0].mxu0 %vm148_vm0, %v464_v21  ;;  %430 = vmatmul.mubr.msk.bf16.vlgmr.msra.gmra.mrb[0].mxu1 %vm148_vm0, %v464_v21  ;;  %v242_v21 = vld [vmem:[%s631_s4] sm:$0xff] }
  0x89   :  { %v328_v2 = vpop.permute.xlu1 %327 }
  0x8d   :  { %v341_v3 = vpop.permute.xlu1 %340 }
  0xea   :  { %v186_v24 = vpop.f32.mrb[0].mxu0  ;;  %v229_v25 = vpop.f32.mrb[0].mxu1 }
  0xeb   :  { %v188_v26 = vpop.f32.mrb[1].mxu0  ;;  %v231_v27 = vpop.f32.mrb[1].mxu1 }
  0xec   :  { %v250_v28 = vadd.f32 %v188_v26, %v186_v24  ;;  %v190_v29 = vpop.f32.mrb[2].mxu0  ;;  %v233_v30 = vpop.f32.mrb[2].mxu1 }
  0xed   :  { %v192_v31 = vpop.f32.mrb[3].mxu0  ;;  %v235_v32 = vpop.f32.mrb[3].mxu1 }
  0xee   :  { %v255_v33 = vadd.f32 %v192_v31, %v190_v29  ;;  %v251_v34 = vadd.f32 %v250_v28, %v229_v25  ;;  %v245_v28 = vld [vmem:[%s631_s4 + $0x18] sm:$0xff] }
  0xf0   :  { %v256_v35 = vadd.f32 %v255_v33, %v233_v30  ;;  %v252_v36 = vadd.f32 %v251_v34, %v231_v27  ;;  %v246_v33 = vld [vmem:[%s631_s4 + $0x20] sm:$0xff] }
  0xf2   :  { %v257_v37 = vadd.f32 %v256_v35, %v235_v32  ;;  %253 = vadd.xlane.f32.xlu0 %v252_v36 }
  0xf6   :  { %258 = vadd.xlane.f32.xlu0 %v257_v37 }
 0x10c   :  { %322 = vperm.xlu0 %432, %v238_v38   ;;  %v247_v38 = vld [vmem:[%s631_s4 + $0x28] sm:$0xff] }
 0x17f   :  { %v254_v39 = vpop.xlane.xlu0 %253 }
 0x180   :  { %v261_v40 = vmul.f32 0.001953125, %v254_v39  ;;  %v248_v39 = vld [vmem:[%s631_s4 + $0x30] sm:$0xff] }
 0x182   :  { %v272_v41 = vsub.f32 %v186_v24, %v261_v40  ;;  %v273_v42 = vsub.f32 %v188_v26, %v261_v40  ;;  %v274_v43 = vsub.f32 %v229_v25, %v261_v40  ;;  %v275_v45 = vsub.f32 %v231_v27, %v261_v40  ;;  %v243_v26 = vld [vmem:[%s631_s4 + $0x8] sm:$0xff]  ;;  %v244_v27 = vld [vmem:[%s631_s4 + $0x10] sm:$0xff]  ;;  %v249_v40 = vld [vmem:[%s631_s4 + $0x38] sm:$0xff] }
 0x183   :  { %v259_v44 = vpop.xlane.xlu0 %258 }
 0x184   :  { %v262_v46 = vmul.f32 0.001953125, %v259_v44  ;;  %v288_v47 = vmul.f32 %v272_v41, %v272_v41  ;;  %v289_v48 = vmul.f32 %v273_v42, %v273_v42  ;;  %v290_v49 = vmul.f32 %v274_v43, %v274_v43 }
 0x185   :  { %v291_v54 = vmul.f32 %v275_v45, %v275_v45 }
 0x186   :  { %v276_v50 = vsub.f32 %v190_v29, %v262_v46  ;;  %v277_v51 = vsub.f32 %v192_v31, %v262_v46  ;;  %v296_v52 = vadd.f32 %v289_v48, %v288_v47  ;;  %v278_v53 = vsub.f32 %v233_v30, %v262_v46 }
 0x187   :  { %v279_v56 = vsub.f32 %v235_v32, %v262_v46 }
 0x188   :  { %v297_v55 = vadd.f32 %v296_v52, %v290_v49  ;;  %v292_v57 = vmul.f32 %v276_v50, %v276_v50  ;;  %v293_v58 = vmul.f32 %v277_v51, %v277_v51  ;;  %v294_v60 = vmul.f32 %v278_v53, %v278_v53 }
 0x189   :  { %v295_v62 = vmul.f32 %v279_v56, %v279_v56 }
 0x18a   :  { %v298_v59 = vadd.f32 %v297_v55, %v291_v54  ;;  %v301_v61 = vadd.f32 %v293_v58, %v292_v57 }
 0x18b   :  { %v323_v11 = vpop.permute.xlu0 %322 }
 0x18c   :  { %299 = vadd.xlane.f32.xlu1 %v298_v59  ;;  %v302_v63 = vadd.f32 %v301_v61, %v294_v60 }
 0x18e   :  { %v303_v0 = vadd.f32 %v302_v63, %v295_v62 }
 0x190   :  { %304 = vadd.xlane.f32.xlu1 %v303_v0 }
 0x1a1   :  { %345 = vperm.xlu1 %433, %v241_v1  }
 0x219   :  { %v300_v4 = vpop.xlane.xlu1 %299 }
 0x21a   :  { %v306_v5 = vmul.f32 0.001953125, %v300_v4 }
 0x21c   :  { %v308_v6 = vadd.f32 1e-05, %v306_v5 }
 0x21d   :  { %v305_v7 = vpop.xlane.xlu1 %304 }
 0x21e   :  { %465 = vrsqrt.f32 %v308_v6  ;;  %v307_v8 = vmul.f32 0.001953125, %v305_v7 }
 0x220   :  { %v309_v9 = vadd.f32 1e-05, %v307_v8 }
 0x222   :  { %467 = vrsqrt.f32 %v309_v9 }
 0x228   :  { %v466_v10 = vpop.eup %465 }
 0x229   :  { %v312_v12 = vmul.f32 %v466_v10, %v272_v41  ;;  %v313_v13 = vmul.f32 %v466_v10, %v273_v42  ;;  %v314_v14 = vmul.f32 %v466_v10, %v274_v43  ;;  %v315_v15 = vmul.f32 %v466_v10, %v275_v45  ;;  %v346_v41 = vpop.permute.xlu1 %345 }
 0x22b   :  { %v330_v16 = vmul.f32 %v323_v11, %v312_v12  ;;  %v331_v17 = vmul.f32 %v323_v11, %v313_v13  ;;  %v332_v18 = vmul.f32 %v323_v11, %v314_v14  ;;  %v333_v19 = vmul.f32 %v323_v11, %v315_v15 }
 0x22c   :  { %v468_v20 = vpop.eup %467 }
 0x22d   :  { %v316_v22 = vmul.f32 %v468_v20, %v276_v50  ;;  %v317_v23 = vmul.f32 %v468_v20, %v277_v51  ;;  %v318_v24 = vmul.f32 %v468_v20, %v278_v53  ;;  %v319_v25 = vmul.f32 %v468_v20, %v279_v56 }
 0x22e   :  { %v348_v29 = vadd.f32 %v341_v3, %v330_v16  ;;  %v349_v30 = vadd.f32 %v341_v3, %v331_v17  ;;  %v350_v31 = vadd.f32 %v341_v3, %v332_v18  ;;  %v351_v32 = vadd.f32 %v341_v3, %v333_v19 }
 0x22f   :  { %v334_v34 = vmul.f32 %v328_v2, %v316_v22  ;;  %v335_v35 = vmul.f32 %v328_v2, %v317_v23  ;;  %v336_v36 = vmul.f32 %v328_v2, %v318_v24  ;;  %v337_v37 = vmul.f32 %v328_v2, %v319_v25 }
 0x230   :  { %v356_v42 = vadd.f32 %v348_v29, %v242_v21  ;;  %v357_v43 = vadd.f32 %v349_v30, %v243_v26  ;;  %v358_v44 = vadd.f32 %v350_v31, %v244_v27  ;;  %v359_v45 = vadd.f32 %v351_v32, %v245_v28 }
 0x231   :  { %v352_v46 = vadd.f32 %v346_v41, %v334_v34  ;;  %v353_v47 = vadd.f32 %v346_v41, %v335_v35  ;;  %v354_v48 = vadd.f32 %v346_v41, %v336_v36  ;;  %v355_v49 = vadd.f32 %v346_v41, %v337_v37 }
 0x232   :  { %vm364_vm1 = vcmp.ge.f32.partialorder %v356_v42, 0.0  ;;  %vm365_vm2 = vcmp.ge.f32.partialorder %v357_v43, 0.0  ;;  %vm366_vm3 = vcmp.ge.f32.partialorder %v358_v44, 0.0  ;;  %vm367_vm4 = vcmp.ge.f32.partialorder %v359_v45, 0.0 }
 0x233   :  { %v360_v50 = vadd.f32 %v352_v46, %v246_v33  ;;  %v361_v51 = vadd.f32 %v353_v47, %v247_v38  ;;  %v362_v52 = vadd.f32 %v354_v48, %v248_v39  ;;  %v363_v53 = vadd.f32 %v355_v49, %v249_v40 }
 0x234   :  { %v372_v54 = vmul.f32 0.2, %v356_v42  ;;  %v373_v55 = vmul.f32 0.2, %v357_v43  ;;  %v374_v56 = vmul.f32 0.2, %v358_v44 }
 0x235   :  { %vm368_vm5 = vcmp.ge.f32.partialorder %v360_v50, 0.0  ;;  %vm369_vm6 = vcmp.ge.f32.partialorder %v361_v51, 0.0  ;;  %vm370_vm7 = vcmp.ge.f32.partialorder %v362_v52, 0.0  ;;  %vm371_vm8 = vcmp.ge.f32.partialorder %v363_v53, 0.0 }
 0x236   :  { %v376_v57 = vmul.f32 0.2, %v360_v50  ;;  %v377_v58 = vmul.f32 0.2, %v361_v51  ;;  %v378_v59 = vmul.f32 0.2, %v362_v52  ;;  %v380_v60 = vsel %vm364_vm1, %v356_v42, %v372_v54 }
 0x237   :  { %v379_v61 = vmul.f32 0.2, %v363_v53  ;;  %v375_v62 = vmul.f32 0.2, %v359_v45  ;;  %v381_v63 = vsel %vm365_vm2, %v357_v43, %v373_v55  ;;  %v382_v0 = vsel %vm366_vm3, %v358_v44, %v374_v56  ;;  %396 = vst [vmem:[%s632_s5] sm:$0xff] %v380_v60 }
 0x238   :  { %v384_v1 = vsel %vm368_vm5, %v360_v50, %v376_v57  ;;  %v385_v2 = vsel %vm369_vm6, %v361_v51, %v377_v58  ;;  %v386_v3 = vsel %vm370_vm7, %v362_v52, %v378_v59  ;;  %397 = vst [vmem:[%s632_s5 + $0x8] sm:$0xff] %v381_v63  ;;  %398 = vst [vmem:[%s632_s5 + $0x10] sm:$0xff] %v382_v0 }
 0x239   :  { %v387_v4 = vsel %vm371_vm8, %v363_v53, %v379_v61  ;;  %400 = vst [vmem:[%s632_s5 + $0x20] sm:$0xff] %v384_v1  ;;  %401 = vst [vmem:[%s632_s5 + $0x28] sm:$0xff] %v385_v2  ;;  %v383_v5 = vsel %vm367_vm4, %v359_v45, %v375_v62 }
 0x23a   :  { %402 = vst [vmem:[%s632_s5 + $0x30] sm:$0xff] %v386_v3  ;;  %403 = vst [vmem:[%s632_s5 + $0x38] sm:$0xff] %v387_v4 }
 0x23b   :  { %399 = vst [vmem:[%s632_s5 + $0x18] sm:$0xff] %v383_v5 }

// kernel: _lambda_.18
= control target key start
LH: loop header
LB: loop body
LE: loop exit
PB: predicated region body
PF: predicated region fallthrough
CT: control target
= control target key end

     0   :  { %v450_v1 = vmov 0   ;;  %vm145_vm0 = vcmask 654336   ;;  %s579_s1 = inlined_call_operand.vmem [shape: bf16[80,512], index: 1, kind: input, shape index: {}]   ;;  %s580_s0 = inlined_call_operand.vmem [shape: bf16[16,80], index: 0, kind: input, shape index: {}]   ;;  %s581_s2 = inlined_call_operand.vmem [shape: f32[16,1], index: 2, kind: input, shape index: {}]   ;;  %s582_s3 = inlined_call_operand.vmem [shape: f32[16,1], index: 3, kind: input, shape index: {}]   ;;  %s583_s4 = inlined_call_operand.vmem [shape: f32[16,512], index: 4, kind: output, shape index: {}]  }
   0x1   :  { %v415_v0 = vld [vmem:[%s579_s1 + $0x4] ss:$16 sps:$4 sm:$0xff]   ;;  %181 = vmatprep.mubr.bf16.mxu0 %v450_v1  ;;  %224 = vmatprep.mubr.bf16.mxu1 %v450_v1  ;;  %v417_v2 = vld [vmem:[%s579_s1 + $0xc] ss:$16 sps:$4 sm:$0xff]   ;;  %v419_v3 = vld [vmem:[%s579_s1] ss:$16 sps:$4 sm:$0xff]  }
   0x2   :  { %414 = vset.pattern.permute.xlu1 %v450_v1  ;;  %413 = vset.pattern.permute.xlu0 %v450_v1  ;;  %v420_v4 = vld [vmem:[%s579_s1 + $0x8] ss:$16 sps:$4 sm:$0xff]   ;;  %v421_v5 = vld [vmem:[%s579_s1 + $0x24] ss:$16 sps:$4 sm:$0xff]   ;;  %v423_v6 = vld [vmem:[%s579_s1 + $0x2c] ss:$16 sps:$4 sm:$0xff]  }
   0x3   :  { %149 = vmatprep.subr.bf16.mxu0 %v415_v0  ;;  %192 = vmatprep.subr.bf16.mxu1 %v417_v2  ;;  %v425_v7 = vld [vmem:[%s579_s1 + $0x20] ss:$16 sps:$4 sm:$0xff]   ;;  %v426_v8 = vld [vmem:[%s579_s1 + $0x28] ss:$16 sps:$4 sm:$0xff]   ;;  %v427_v9 = vld [vmem:[%s579_s1 + $0x44] ss:$16 sps:$4 sm:$0xff]  }
   0x4   :  { %150 = vmatpush1.bf16.msra.mxu0 %v419_v3  ;;  %193 = vmatpush1.bf16.msra.mxu1 %v420_v4  ;;  %v429_v10 = vld [vmem:[%s579_s1 + $0x4c] ss:$16 sps:$4 sm:$0xff]   ;;  %v431_v11 = vld [vmem:[%s579_s1 + $0x40] ss:$16 sps:$4 sm:$0xff]   ;;  %v432_v12 = vld [vmem:[%s579_s1 + $0x48] ss:$16 sps:$4 sm:$0xff]  }
   0x5   :  { %151 = vmatprep.subr.bf16.mxu0 %v421_v5  ;;  %194 = vmatprep.subr.bf16.mxu1 %v423_v6  ;;  %v433_v13 = vld [vmem:[%s579_s1 + $0x64] ss:$16 sps:$4 sm:$0xff]   ;;  %v435_v14 = vld [vmem:[%s579_s1 + $0x6c] ss:$16 sps:$4 sm:$0xff]   ;;  %v437_v15 = vld [vmem:[%s579_s1 + $0x60] ss:$16 sps:$4 sm:$0xff]  }
   0x6   :  { %v438_v16 = vld [vmem:[%s579_s1 + $0x68] ss:$16 sps:$4 sm:$0xff]   ;;  %v439_v17 = vld [vmem:[%s579_s1 + $0x84] ss:$16 sps:$4 sm:$0xff]   ;;  %v441_v18 = vld [vmem:[%s579_s1 + $0x8c] ss:$16 sps:$4 sm:$0xff]  }
   0x7   :  { %v443_v19 = vld [vmem:[%s579_s1 + $0x80] ss:$16 sps:$4 sm:$0xff]   ;;  %v444_v20 = vld [vmem:[%s579_s1 + $0x88] ss:$16 sps:$4 sm:$0xff]  }
   0x8   :  { %152 = vmatpush1.bf16.msra.mxu0 %v425_v7  ;;  %195 = vmatpush1.bf16.msra.mxu1 %v426_v8  ;;  %v445_v21 = vld [vmem:[%s580_s0] sm:$0xff]   ;;  %v236_v22 = vld [vmem:[%s581_s2 + $0x8] sm:$0xff] }
   0x9   :  { %153 = vmatprep.subr.bf16.mxu0 %v427_v9  ;;  %196 = vmatprep.subr.bf16.mxu1 %v429_v10  ;;  %v237_v23 = vld [vmem:[%s582_s3] sm:$0xff]  ;;  %v238_v1 = vld [vmem:[%s582_s3 + $0x8] sm:$0xff] }
   0xa   :  { %316 = vperm.xlu1 %414, %v236_v22   ;;  %v235_v38 = vld [vmem:[%s581_s2] sm:$0xff] }
   0xc   :  { %154 = vmatpush1.bf16.msra.mxu0 %v431_v11  ;;  %197 = vmatpush1.bf16.msra.mxu1 %v432_v12 }
   0xd   :  { %155 = vmatprep.subr.bf16.mxu0 %v433_v13  ;;  %198 = vmatprep.subr.bf16.mxu1 %v435_v14 }
   0xe   :  { %329 = vperm.xlu1 %414, %v237_v23  }
  0x10   :  { %156 = vmatpush1.bf16.msra.mxu0 %v437_v15  ;;  %199 = vmatpush1.bf16.msra.mxu1 %v438_v16 }
  0x11   :  { %157 = vmatprep.subr.bf16.mxu0 %v439_v17  ;;  %200 = vmatprep.subr.bf16.mxu1 %v441_v18 }
  0x14   :  { %158 = vmatpush1.bf16.msra.mxu0 %v443_v19  ;;  %201 = vmatpush1.bf16.msra.mxu1 %v444_v20 }
  0x17   :  { %410 = vmatmul.mubr.msk.bf16.vlgmr.msra.gmra.mrb[0].mxu0 %vm145_vm0, %v445_v21  ;;  %411 = vmatmul.mubr.msk.bf16.vlgmr.msra.gmra.mrb[0].mxu1 %vm145_vm0, %v445_v21 }
  0x89   :  { %v317_v2 = vpop.permute.xlu1 %316 }
  0x8d   :  { %v330_v3 = vpop.permute.xlu1 %329 }
  0xea   :  { %v183_v24 = vpop.f32.mrb[0].mxu0  ;;  %v226_v25 = vpop.f32.mrb[0].mxu1 }
  0xeb   :  { %v185_v26 = vpop.f32.mrb[1].mxu0  ;;  %v228_v27 = vpop.f32.mrb[1].mxu1 }
  0xec   :  { %v239_v28 = vadd.f32 %v185_v26, %v183_v24  ;;  %v187_v29 = vpop.f32.mrb[2].mxu0  ;;  %v230_v30 = vpop.f32.mrb[2].mxu1 }
  0xed   :  { %v189_v31 = vpop.f32.mrb[3].mxu0  ;;  %v232_v32 = vpop.f32.mrb[3].mxu1 }
  0xee   :  { %v244_v33 = vadd.f32 %v189_v31, %v187_v29  ;;  %v240_v34 = vadd.f32 %v239_v28, %v226_v25 }
  0xf0   :  { %v245_v35 = vadd.f32 %v244_v33, %v230_v30  ;;  %v241_v36 = vadd.f32 %v240_v34, %v228_v27 }
  0xf2   :  { %v246_v37 = vadd.f32 %v245_v35, %v232_v32  ;;  %242 = vadd.xlane.f32.xlu0 %v241_v36 }
  0xf6   :  { %247 = vadd.xlane.f32.xlu0 %v246_v37 }
 0x10c   :  { %311 = vperm.xlu0 %413, %v235_v38  }
 0x17f   :  { %v243_v39 = vpop.xlane.xlu0 %242 }
 0x180   :  { %v250_v40 = vmul.f32 0.001953125, %v243_v39 }
 0x182   :  { %v261_v41 = vsub.f32 %v183_v24, %v250_v40  ;;  %v262_v42 = vsub.f32 %v185_v26, %v250_v40  ;;  %v263_v43 = vsub.f32 %v226_v25, %v250_v40  ;;  %v264_v45 = vsub.f32 %v228_v27, %v250_v40 }
 0x183   :  { %v248_v44 = vpop.xlane.xlu0 %247 }
 0x184   :  { %v251_v46 = vmul.f32 0.001953125, %v248_v44  ;;  %v277_v47 = vmul.f32 %v261_v41, %v261_v41  ;;  %v278_v48 = vmul.f32 %v262_v42, %v262_v42  ;;  %v279_v49 = vmul.f32 %v263_v43, %v263_v43 }
 0x185   :  { %v280_v54 = vmul.f32 %v264_v45, %v264_v45 }
 0x186   :  { %v265_v50 = vsub.f32 %v187_v29, %v251_v46  ;;  %v266_v51 = vsub.f32 %v189_v31, %v251_v46  ;;  %v285_v52 = vadd.f32 %v278_v48, %v277_v47  ;;  %v267_v53 = vsub.f32 %v230_v30, %v251_v46 }
 0x187   :  { %v268_v56 = vsub.f32 %v232_v32, %v251_v46 }
 0x188   :  { %v286_v55 = vadd.f32 %v285_v52, %v279_v49  ;;  %v281_v57 = vmul.f32 %v265_v50, %v265_v50  ;;  %v282_v58 = vmul.f32 %v266_v51, %v266_v51  ;;  %v283_v60 = vmul.f32 %v267_v53, %v267_v53 }
 0x189   :  { %v284_v62 = vmul.f32 %v268_v56, %v268_v56 }
 0x18a   :  { %v287_v59 = vadd.f32 %v286_v55, %v280_v54  ;;  %v290_v61 = vadd.f32 %v282_v58, %v281_v57 }
 0x18b   :  { %v312_v11 = vpop.permute.xlu0 %311 }
 0x18c   :  { %288 = vadd.xlane.f32.xlu1 %v287_v59  ;;  %v291_v63 = vadd.f32 %v290_v61, %v283_v60 }
 0x18e   :  { %v292_v0 = vadd.f32 %v291_v63, %v284_v62 }
 0x190   :  { %293 = vadd.xlane.f32.xlu1 %v292_v0 }
 0x1a1   :  { %334 = vperm.xlu1 %414, %v238_v1  }
 0x219   :  { %v289_v4 = vpop.xlane.xlu1 %288 }
 0x21a   :  { %v295_v5 = vmul.f32 0.001953125, %v289_v4 }
 0x21c   :  { %v297_v6 = vadd.f32 1e-05, %v295_v5 }
 0x21d   :  { %v294_v7 = vpop.xlane.xlu1 %293 }
 0x21e   :  { %446 = vrsqrt.f32 %v297_v6  ;;  %v296_v8 = vmul.f32 0.001953125, %v294_v7 }
 0x220   :  { %v298_v9 = vadd.f32 1e-05, %v296_v8 }
 0x221   :  { %v335_v33 = vpop.permute.xlu1 %334 }
 0x222   :  { %448 = vrsqrt.f32 %v298_v9 }
 0x228   :  { %v447_v10 = vpop.eup %446 }
 0x229   :  { %v301_v12 = vmul.f32 %v447_v10, %v261_v41  ;;  %v302_v13 = vmul.f32 %v447_v10, %v262_v42  ;;  %v303_v14 = vmul.f32 %v447_v10, %v263_v43  ;;  %v304_v15 = vmul.f32 %v447_v10, %v264_v45 }
 0x22b   :  { %v319_v16 = vmul.f32 %v312_v11, %v301_v12  ;;  %v320_v17 = vmul.f32 %v312_v11, %v302_v13  ;;  %v321_v18 = vmul.f32 %v312_v11, %v303_v14  ;;  %v322_v19 = vmul.f32 %v312_v11, %v304_v15 }
 0x22c   :  { %v449_v20 = vpop.eup %448 }
 0x22d   :  { %v305_v21 = vmul.f32 %v449_v20, %v265_v50  ;;  %v306_v22 = vmul.f32 %v449_v20, %v266_v51  ;;  %v307_v23 = vmul.f32 %v449_v20, %v267_v53  ;;  %v308_v24 = vmul.f32 %v449_v20, %v268_v56 }
 0x22e   :  { %v337_v25 = vadd.f32 %v330_v3, %v319_v16  ;;  %v338_v26 = vadd.f32 %v330_v3, %v320_v17  ;;  %v339_v27 = vadd.f32 %v330_v3, %v321_v18  ;;  %v340_v28 = vadd.f32 %v330_v3, %v322_v19 }
 0x22f   :  { %v323_v29 = vmul.f32 %v317_v2, %v305_v21  ;;  %v324_v30 = vmul.f32 %v317_v2, %v306_v22  ;;  %v325_v31 = vmul.f32 %v317_v2, %v307_v23  ;;  %v326_v32 = vmul.f32 %v317_v2, %v308_v24 }
 0x230   :  { %vm345_vm1 = vcmp.ge.f32.partialorder %v337_v25, 0.0  ;;  %vm346_vm2 = vcmp.ge.f32.partialorder %v338_v26, 0.0  ;;  %vm347_vm3 = vcmp.ge.f32.partialorder %v339_v27, 0.0  ;;  %vm348_vm4 = vcmp.ge.f32.partialorder %v340_v28, 0.0 }
 0x231   :  { %v341_v34 = vadd.f32 %v335_v33, %v323_v29  ;;  %v342_v35 = vadd.f32 %v335_v33, %v324_v30  ;;  %v343_v36 = vadd.f32 %v335_v33, %v325_v31  ;;  %v344_v37 = vadd.f32 %v335_v33, %v326_v32 }
 0x232   :  { %v353_v38 = vmul.f32 0.2, %v337_v25  ;;  %v354_v39 = vmul.f32 0.2, %v338_v26  ;;  %v355_v40 = vmul.f32 0.2, %v339_v27 }
 0x233   :  { %vm349_vm5 = vcmp.ge.f32.partialorder %v341_v34, 0.0  ;;  %vm350_vm6 = vcmp.ge.f32.partialorder %v342_v35, 0.0  ;;  %vm351_vm7 = vcmp.ge.f32.partialorder %v343_v36, 0.0  ;;  %vm352_vm8 = vcmp.ge.f32.partialorder %v344_v37, 0.0 }
 0x234   :  { %v357_v41 = vmul.f32 0.2, %v341_v34  ;;  %v358_v42 = vmul.f32 0.2, %v342_v35  ;;  %v359_v43 = vmul.f32 0.2, %v343_v36  ;;  %v361_v44 = vsel %vm345_vm1, %v337_v25, %v353_v38 }
 0x235   :  { %v360_v45 = vmul.f32 0.2, %v344_v37  ;;  %v356_v46 = vmul.f32 0.2, %v340_v28  ;;  %v362_v47 = vsel %vm346_vm2, %v338_v26, %v354_v39  ;;  %v363_v48 = vsel %vm347_vm3, %v339_v27, %v355_v40  ;;  %377 = vst [vmem:[%s583_s4] sm:$0xff] %v361_v44 }
 0x236   :  { %v365_v49 = vsel %vm349_vm5, %v341_v34, %v357_v41  ;;  %v366_v50 = vsel %vm350_vm6, %v342_v35, %v358_v42  ;;  %v367_v51 = vsel %vm351_vm7, %v343_v36, %v359_v43  ;;  %378 = vst [vmem:[%s583_s4 + $0x8] sm:$0xff] %v362_v47  ;;  %379 = vst [vmem:[%s583_s4 + $0x10] sm:$0xff] %v363_v48 }
 0x237   :  { %v368_v52 = vsel %vm352_vm8, %v344_v37, %v360_v45  ;;  %381 = vst [vmem:[%s583_s4 + $0x20] sm:$0xff] %v365_v49  ;;  %382 = vst [vmem:[%s583_s4 + $0x28] sm:$0xff] %v366_v50  ;;  %v364_v53 = vsel %vm348_vm4, %v340_v28, %v356_v46 }
 0x238   :  { %383 = vst [vmem:[%s583_s4 + $0x30] sm:$0xff] %v367_v51  ;;  %384 = vst [vmem:[%s583_s4 + $0x38] sm:$0xff] %v368_v52 }
 0x239   :  { %380 = vst [vmem:[%s583_s4 + $0x18] sm:$0xff] %v364_v53 }

// kernel: _lambda_.22
= control target key start
LH: loop header
LB: loop body
LE: loop exit
PB: predicated region body
PF: predicated region fallthrough
CT: control target
= control target key end

     0   :  { %v222_v0 = vmov 0.0   ;;  %vm223_vm0 = vmmov 0   ;;  %vm65_vm1 = vcmask 654336   ;;  %v224_v7 = vmov 0   ;;  %s286_s1 = inlined_call_operand.vmem [shape: bf16[80,128], index: 1, kind: input, shape index: {}]   ;;  %s287_s0 = inlined_call_operand.vmem [shape: bf16[16,80], index: 0, kind: input, shape index: {}]   ;;  %s288_s2 = inlined_call_operand.vmem [shape: f32[16,1], index: 2, kind: input, shape index: {}]   ;;  %s289_s3 = inlined_call_operand.vmem [shape: f32[16,1], index: 3, kind: input, shape index: {}]   ;;  %s290_s4 = inlined_call_operand.vmem [shape: f32[16,128], index: 4, kind: output, shape index: {}]  }
   0x1   :  { %193 = vmatprep.subr.bf16.mxu0 %v222_v0  ;;  %v212_v1 = vld [vmem:[%s286_s1] sm:$0xff]   ;;  %203 = vmatprep.mubr.msk.bf16.mxu0 %vm223_vm0, %v222_v0  ;;  %v213_v2 = vld [vmem:[%s286_s1 + $0x8] sm:$0xff]   ;;  %v214_v3 = vld [vmem:[%s286_s1 + $0x10] sm:$0xff]  }
   0x2   :  { %194 = vmatpush3.bf16.msra.mxu0 %v212_v1  ;;  %v215_v4 = vld [vmem:[%s286_s1 + $0x18] sm:$0xff]   ;;  %v216_v5 = vld [vmem:[%s286_s1 + $0x20] sm:$0xff]   ;;  %211 = vset.pattern.permute.xlu1 %v224_v7  ;;  %v111_v8 = vld [vmem:[%s288_s2 + $0x8] sm:$0xff] }
   0x3   :  { %195 = vmatprep.subr.bf16.mxu0 %v222_v0  ;;  %v217_v6 = vld [vmem:[%s287_s0] sm:$0xff]   ;;  %210 = vset.pattern.permute.xlu0 %v224_v7  ;;  %v113_v23 = vld [vmem:[%s289_s3 + $0x8] sm:$0xff] }
   0x4   :  { %149 = vperm.xlu1 %211, %v111_v8   ;;  %v112_v9 = vld [vmem:[%s289_s3] sm:$0xff] }
   0x5   :  { %v110_v14 = vld [vmem:[%s288_s2] sm:$0xff] }
   0x6   :  { %196 = vmatpush3.bf16.msra.mxu0 %v213_v2 }
   0x7   :  { %197 = vmatprep.subr.bf16.mxu0 %v222_v0 }
   0x8   :  { %156 = vperm.xlu1 %211, %v112_v9  }
   0xa   :  { %198 = vmatpush3.bf16.msra.mxu0 %v214_v3 }
   0xb   :  { %199 = vmatprep.subr.bf16.mxu0 %v222_v0 }
   0xe   :  { %200 = vmatpush3.bf16.msra.mxu0 %v215_v4 }
   0xf   :  { %201 = vmatprep.subr.bf16.mxu0 %v222_v0 }
  0x12   :  { %202 = vmatpush3.bf16.msra.mxu0 %v216_v5 }
  0x15   :  { %204 = vmatmul.mubr.msk.bf16.vlgmr.msra.gmra.mrb[0].mxu0 %vm65_vm1, %v217_v6 }
  0x83   :  { %v150_v24 = vpop.permute.xlu1 %149 }
  0x87   :  { %v157_v25 = vpop.permute.xlu1 %156 }
  0xe8   :  { %v103_v10 = vpop.f32.mrb[0].mxu0 }
  0xe9   :  { %114 = vadd.xlane.f32.xlu0 %v103_v10  ;;  %v205_v11 = vpop.f32.mrb[1].mxu0 }
  0xea   :  { %v106_v12 = vpop.f32.mrb[2].mxu0 }
  0xeb   :  { %v206_v13 = vpop.f32.mrb[3].mxu0 }
  0xed   :  { %116 = vadd.xlane.f32.xlu0 %v106_v12 }
 0x103   :  { %144 = vperm.xlu0 %210, %v110_v14  }
 0x176   :  { %v115_v15 = vpop.xlane.xlu0 %114 }
 0x177   :  { %v119_v16 = vmul.f32 0.0078125, %v115_v15 }
 0x179   :  { %v124_v17 = vsub.f32 %v103_v10, %v119_v16 }
 0x17a   :  { %v117_v18 = vpop.xlane.xlu0 %116 }
 0x17b   :  { %v120_v19 = vmul.f32 0.0078125, %v117_v18  ;;  %v128_v20 = vmul.f32 %v124_v17, %v124_v17 }
 0x17d   :  { %v125_v21 = vsub.f32 %v106_v12, %v120_v19  ;;  %130 = vadd.xlane.f32.xlu1 %v128_v20 }
 0x17f   :  { %v129_v22 = vmul.f32 %v125_v21, %v125_v21 }
 0x181   :  { %132 = vadd.xlane.f32.xlu1 %v129_v22 }
 0x182   :  { %v145_v33 = vpop.permute.xlu0 %144 }
 0x192   :  { %161 = vperm.xlu1 %211, %v113_v23  }
 0x20a   :  { %v131_v26 = vpop.xlane.xlu1 %130 }
 0x20b   :  { %v134_v27 = vmul.f32 0.0078125, %v131_v26 }
 0x20d   :  { %v136_v28 = vadd.f32 1e-05, %v134_v27 }
 0x20e   :  { %v133_v29 = vpop.xlane.xlu1 %132 }
 0x20f   :  { %218 = vrsqrt.f32 %v136_v28  ;;  %v135_v30 = vmul.f32 0.0078125, %v133_v29 }
 0x211   :  { %v137_v31 = vadd.f32 1e-05, %v135_v30 }
 0x212   :  { %v162_v41 = vpop.permute.xlu1 %161 }
 0x213   :  { %220 = vrsqrt.f32 %v137_v31 }
 0x219   :  { %v219_v32 = vpop.eup %218 }
 0x21a   :  { %v140_v34 = vmul.f32 %v219_v32, %v124_v17 }
 0x21c   :  { %v152_v35 = vmul.f32 %v145_v33, %v140_v34 }
 0x21d   :  { %v221_v36 = vpop.eup %220 }
 0x21e   :  { %v141_v37 = vmul.f32 %v221_v36, %v125_v21  ;;  %v164_v38 = vadd.f32 %v157_v25, %v152_v35 }
 0x220   :  { %v153_v39 = vmul.f32 %v150_v24, %v141_v37  ;;  %vm166_vm2 = vcmp.ge.f32.partialorder %v164_v38, 0.0  ;;  %v168_v40 = vmul.f32 0.2, %v164_v38 }
 0x222   :  { %v165_v42 = vadd.f32 %v162_v41, %v153_v39  ;;  %v170_v43 = vsel %vm166_vm2, %v164_v38, %v168_v40 }
 0x223   :  { %174 = vst [vmem:[%s290_s4] sm:$0xff] %v170_v43 }
 0x224   :  { %vm167_vm3 = vcmp.ge.f32.partialorder %v165_v42, 0.0  ;;  %v169_v44 = vmul.f32 0.2, %v165_v42 }
 0x226   :  { %v171_v45 = vsel %vm167_vm3, %v165_v42, %v169_v44 }
 0x227   :  { %175 = vst [vmem:[%s290_s4 + $0x8] sm:$0xff] %v171_v45 }

// kernel: _lambda_.23
= control target key start
LH: loop header
LB: loop body
LE: loop exit
PB: predicated region body
PF: predicated region fallthrough
CT: control target
= control target key end

     0   :  { %v247_v0 = vmov 0   ;;  %vm101_vm0 = vcmask 130048   ;;  %s324_s1 = inlined_call_operand.vmem [shape: bf16[144,128], index: 1, kind: input, shape index: {}]   ;;  %s325_s0 = inlined_call_operand.vmem [shape: bf16[16,144], index: 0, kind: input, shape index: {}]   ;;  %s326_s2 = inlined_call_operand.vmem [shape: f32[16,1], index: 2, kind: input, shape index: {}]   ;;  %s327_s3 = inlined_call_operand.vmem [shape: f32[16,1], index: 3, kind: input, shape index: {}]   ;;  %s328_s4 = inlined_call_operand.vmem [shape: f32[16,128], index: 4, kind: output, shape index: {}]  }
   0x1   :  { %105 = vmatprep.subr.bf16.mxu0 %v247_v0  ;;  %v231_v1 = vld [vmem:[%s324_s1] sm:$0xff]   ;;  %230 = vset.pattern.permute.xlu1 %v247_v0  ;;  %v232_v2 = vld [vmem:[%s324_s1 + $0x8] sm:$0xff]   ;;  %v233_v3 = vld [vmem:[%s324_s1 + $0x10] sm:$0xff]  }
   0x2   :  { %229 = vset.pattern.permute.xlu0 %v247_v0  ;;  %106 = vmatpush1.bf16.msra.mxu0 %v231_v1  ;;  %v234_v4 = vld [vmem:[%s324_s1 + $0x18] sm:$0xff]   ;;  %v242_v5 = vld [vmem:[%s325_s0 + $0x4] ss:$8 sps:$4 sm:$0xff]   ;;  %v237_v8 = vld [vmem:[%s324_s1 + $0x30] sm:$0xff]  }
   0x3   :  { %107 = vmatprep.subr.bf16.mxu0 %v247_v0  ;;  %227 = vmatprep.mubr.msk.bf16.mxu0 %vm101_vm0, %v242_v5  ;;  %v235_v6 = vld [vmem:[%s324_s1 + $0x20] sm:$0xff]   ;;  %v236_v7 = vld [vmem:[%s324_s1 + $0x28] sm:$0xff]   ;;  %v238_v9 = vld [vmem:[%s324_s1 + $0x38] sm:$0xff]  }
   0x4   :  { %v239_v10 = vld [vmem:[%s324_s1 + $0x40] sm:$0xff]   ;;  %v147_v12 = vld [vmem:[%s326_s2 + $0x8] sm:$0xff] }
   0x5   :  { %v240_v11 = vld [vmem:[%s325_s0] ss:$8 sps:$4 sm:$0xff]   ;;  %185 = vperm.xlu1 %230, %v147_v12  }
   0x6   :  { %108 = vmatpush1.bf16.msra.mxu0 %v232_v2  ;;  %v148_v13 = vld [vmem:[%s327_s3] sm:$0xff]  ;;  %v149_v27 = vld [vmem:[%s327_s3 + $0x8] sm:$0xff] }
   0x7   :  { %109 = vmatprep.subr.bf16.mxu0 %v247_v0  ;;  %v146_v18 = vld [vmem:[%s326_s2] sm:$0xff] }
   0x9   :  { %192 = vperm.xlu1 %230, %v148_v13  }
   0xa   :  { %110 = vmatpush1.bf16.msra.mxu0 %v233_v3 }
   0xb   :  { %111 = vmatprep.subr.bf16.mxu0 %v247_v0 }
   0xe   :  { %112 = vmatpush1.bf16.msra.mxu0 %v234_v4 }
   0xf   :  { %113 = vmatprep.subr.bf16.mxu0 %v247_v0 }
  0x12   :  { %114 = vmatpush1.bf16.msra.mxu0 %v235_v6 }
  0x13   :  { %115 = vmatprep.subr.bf16.mxu0 %v247_v0 }
  0x16   :  { %116 = vmatpush1.bf16.msra.mxu0 %v236_v7 }
  0x17   :  { %117 = vmatprep.subr.bf16.mxu0 %v247_v0 }
  0x1a   :  { %118 = vmatpush1.bf16.msra.mxu0 %v237_v8 }
  0x1b   :  { %119 = vmatprep.subr.bf16.mxu0 %v247_v0 }
  0x1e   :  { %120 = vmatpush1.bf16.msra.mxu0 %v238_v9 }
  0x1f   :  { %121 = vmatprep.subr.bf16.mxu0 %v247_v0 }
  0x22   :  { %122 = vmatpush1.bf16.msra.mxu0 %v239_v10 }
  0x25   :  { %138 = vmatmul.mubr.bf16.vlgmr.msra.gmra.mrb[0].mxu0 %v240_v11 }
  0x84   :  { %v186_v28 = vpop.permute.xlu1 %185 }
  0x88   :  { %v193_v29 = vpop.permute.xlu1 %192 }
  0xf8   :  { %v139_v14 = vpop.f32.mrb[0].mxu0 }
  0xf9   :  { %150 = vadd.xlane.f32.xlu0 %v139_v14  ;;  %v141_v15 = vpop.f32.mrb[1].mxu0 }
  0xfa   :  { %v142_v16 = vpop.f32.mrb[2].mxu0 }
  0xfb   :  { %v144_v17 = vpop.f32.mrb[3].mxu0 }
  0xfd   :  { %152 = vadd.xlane.f32.xlu0 %v142_v16 }
 0x113   :  { %180 = vperm.xlu0 %229, %v146_v18  }
 0x186   :  { %v151_v19 = vpop.xlane.xlu0 %150 }
 0x187   :  { %v155_v20 = vmul.f32 0.0078125, %v151_v19 }
 0x189   :  { %v160_v21 = vsub.f32 %v139_v14, %v155_v20 }
 0x18a   :  { %v153_v22 = vpop.xlane.xlu0 %152 }
 0x18b   :  { %v156_v23 = vmul.f32 0.0078125, %v153_v22  ;;  %v164_v24 = vmul.f32 %v160_v21, %v160_v21 }
 0x18d   :  { %v161_v25 = vsub.f32 %v142_v16, %v156_v23  ;;  %166 = vadd.xlane.f32.xlu1 %v164_v24 }
 0x18f   :  { %v165_v26 = vmul.f32 %v161_v25, %v161_v25 }
 0x191   :  { %168 = vadd.xlane.f32.xlu1 %v165_v26 }
 0x192   :  { %v181_v37 = vpop.permute.xlu0 %180 }
 0x1a2   :  { %197 = vperm.xlu1 %230, %v149_v27  }
 0x21a   :  { %v167_v30 = vpop.xlane.xlu1 %166 }
 0x21b   :  { %v170_v31 = vmul.f32 0.0078125, %v167_v30 }
 0x21d   :  { %v172_v32 = vadd.f32 1e-05, %v170_v31 }
 0x21e   :  { %v169_v33 = vpop.xlane.xlu1 %168 }
 0x21f   :  { %243 = vrsqrt.f32 %v172_v32  ;;  %v171_v34 = vmul.f32 0.0078125, %v169_v33 }
 0x221   :  { %v173_v35 = vadd.f32 1e-05, %v171_v34 }
 0x222   :  { %v198_v45 = vpop.permute.xlu1 %197 }
 0x223   :  { %245 = vrsqrt.f32 %v173_v35 }
 0x229   :  { %v244_v36 = vpop.eup %243 }
 0x22a   :  { %v176_v38 = vmul.f32 %v244_v36, %v160_v21 }
 0x22c   :  { %v188_v39 = vmul.f32 %v181_v37, %v176_v38 }
 0x22d   :  { %v246_v40 = vpop.eup %245 }
 0x22e   :  { %v177_v41 = vmul.f32 %v246_v40, %v161_v25  ;;  %v200_v42 = vadd.f32 %v193_v29, %v188_v39 }
 0x230   :  { %v189_v43 = vmul.f32 %v186_v28, %v177_v41  ;;  %vm202_vm1 = vcmp.ge.f32.partialorder %v200_v42, 0.0  ;;  %v204_v44 = vmul.f32 0.2, %v200_v42 }
 0x232   :  { %v201_v46 = vadd.f32 %v198_v45, %v189_v43  ;;  %v206_v47 = vsel %vm202_vm1, %v200_v42, %v204_v44 }
 0x233   :  { %210 = vst [vmem:[%s328_s4] sm:$0xff] %v206_v47 }
 0x234   :  { %vm203_vm2 = vcmp.ge.f32.partialorder %v201_v46, 0.0  ;;  %v205_v48 = vmul.f32 0.2, %v201_v46 }
 0x236   :  { %v207_v49 = vsel %vm203_vm2, %v201_v46, %v205_v48 }
 0x237   :  { %211 = vst [vmem:[%s328_s4 + $0x8] sm:$0xff] %v207_v49 }

// kernel: _lambda_.24
= control target key start
LH: loop header
LB: loop body
LE: loop exit
PB: predicated region body
PF: predicated region fallthrough
CT: control target
= control target key end

     0   :  { %v254_v0 = vmov 0   ;;  %vm104_vm0 = vcmask 130048   ;;  %s342_s1 = inlined_call_operand.vmem [shape: bf16[144,128], index: 1, kind: input, shape index: {}]   ;;  %s343_s0 = inlined_call_operand.vmem [shape: bf16[16,144], index: 0, kind: input, shape index: {}]   ;;  %s344_s2 = inlined_call_operand.vmem [shape: f32[16,1], index: 2, kind: input, shape index: {}]   ;;  %s345_s3 = inlined_call_operand.vmem [shape: f32[16,1], index: 3, kind: input, shape index: {}]   ;;  %s346_s4 = inlined_call_operand.vmem [shape: f32[16,128], index: 4, kind: input, shape index: {}]   ;;  %s347_s5 = inlined_call_operand.vmem [shape: f32[16,128], index: 5, kind: output, shape index: {}]  }
   0x1   :  { %108 = vmatprep.subr.bf16.mxu0 %v254_v0  ;;  %v238_v1 = vld [vmem:[%s342_s1] sm:$0xff]   ;;  %237 = vset.pattern.permute.xlu1 %v254_v0  ;;  %v239_v2 = vld [vmem:[%s342_s1 + $0x8] sm:$0xff]   ;;  %v240_v3 = vld [vmem:[%s342_s1 + $0x10] sm:$0xff]  }
   0x2   :  { %236 = vset.pattern.permute.xlu0 %v254_v0  ;;  %109 = vmatpush1.bf16.msra.mxu0 %v238_v1  ;;  %v241_v4 = vld [vmem:[%s342_s1 + $0x18] sm:$0xff]   ;;  %v249_v5 = vld [vmem:[%s343_s0 + $0x4] ss:$8 sps:$4 sm:$0xff]   ;;  %v244_v8 = vld [vmem:[%s342_s1 + $0x30] sm:$0xff]  }
   0x3   :  { %110 = vmatprep.subr.bf16.mxu0 %v254_v0  ;;  %234 = vmatprep.mubr.msk.bf16.mxu0 %vm104_vm0, %v249_v5  ;;  %v242_v6 = vld [vmem:[%s342_s1 + $0x20] sm:$0xff]   ;;  %v243_v7 = vld [vmem:[%s342_s1 + $0x28] sm:$0xff]   ;;  %v245_v9 = vld [vmem:[%s342_s1 + $0x38] sm:$0xff]  }
   0x4   :  { %v246_v10 = vld [vmem:[%s342_s1 + $0x40] sm:$0xff]   ;;  %v150_v12 = vld [vmem:[%s344_s2 + $0x8] sm:$0xff] }
   0x5   :  { %v247_v11 = vld [vmem:[%s343_s0] ss:$8 sps:$4 sm:$0xff]   ;;  %190 = vperm.xlu1 %237, %v150_v12  }
   0x6   :  { %111 = vmatpush1.bf16.msra.mxu0 %v239_v2  ;;  %v151_v13 = vld [vmem:[%s345_s3] sm:$0xff]  ;;  %v152_v27 = vld [vmem:[%s345_s3 + $0x8] sm:$0xff] }
   0x7   :  { %112 = vmatprep.subr.bf16.mxu0 %v254_v0  ;;  %v149_v18 = vld [vmem:[%s344_s2] sm:$0xff]  ;;  %v154_v46 = vld [vmem:[%s346_s4 + $0x8] sm:$0xff] }
   0x8   :  { %v153_v41 = vld [vmem:[%s346_s4] sm:$0xff] }
   0x9   :  { %197 = vperm.xlu1 %237, %v151_v13  }
   0xa   :  { %113 = vmatpush1.bf16.msra.mxu0 %v240_v3 }
   0xb   :  { %114 = vmatprep.subr.bf16.mxu0 %v254_v0 }
   0xe   :  { %115 = vmatpush1.bf16.msra.mxu0 %v241_v4 }
   0xf   :  { %116 = vmatprep.subr.bf16.mxu0 %v254_v0 }
  0x12   :  { %117 = vmatpush1.bf16.msra.mxu0 %v242_v6 }
  0x13   :  { %118 = vmatprep.subr.bf16.mxu0 %v254_v0 }
  0x16   :  { %119 = vmatpush1.bf16.msra.mxu0 %v243_v7 }
  0x17   :  { %120 = vmatprep.subr.bf16.mxu0 %v254_v0 }
  0x1a   :  { %121 = vmatpush1.bf16.msra.mxu0 %v244_v8 }
  0x1b   :  { %122 = vmatprep.subr.bf16.mxu0 %v254_v0 }
  0x1e   :  { %123 = vmatpush1.bf16.msra.mxu0 %v245_v9 }
  0x1f   :  { %124 = vmatprep.subr.bf16.mxu0 %v254_v0 }
  0x22   :  { %125 = vmatpush1.bf16.msra.mxu0 %v246_v10 }
  0x25   :  { %141 = vmatmul.mubr.bf16.vlgmr.msra.gmra.mrb[0].mxu0 %v247_v11 }
  0x84   :  { %v191_v28 = vpop.permute.xlu1 %190 }
  0x88   :  { %v198_v29 = vpop.permute.xlu1 %197 }
  0xf8   :  { %v142_v14 = vpop.f32.mrb[0].mxu0 }
  0xf9   :  { %155 = vadd.xlane.f32.xlu0 %v142_v14  ;;  %v144_v15 = vpop.f32.mrb[1].mxu0 }
  0xfa   :  { %v145_v16 = vpop.f32.mrb[2].mxu0 }
  0xfb   :  { %v147_v17 = vpop.f32.mrb[3].mxu0 }
  0xfd   :  { %157 = vadd.xlane.f32.xlu0 %v145_v16 }
 0x113   :  { %185 = vperm.xlu0 %236, %v149_v18  }
 0x186   :  { %v156_v19 = vpop.xlane.xlu0 %155 }
 0x187   :  { %v160_v20 = vmul.f32 0.0078125, %v156_v19 }
 0x189   :  { %v165_v21 = vsub.f32 %v142_v14, %v160_v20 }
 0x18a   :  { %v158_v22 = vpop.xlane.xlu0 %157 }
 0x18b   :  { %v161_v23 = vmul.f32 0.0078125, %v158_v22  ;;  %v169_v24 = vmul.f32 %v165_v21, %v165_v21 }
 0x18d   :  { %v166_v25 = vsub.f32 %v145_v16, %v161_v23  ;;  %171 = vadd.xlane.f32.xlu1 %v169_v24 }
 0x18f   :  { %v170_v26 = vmul.f32 %v166_v25, %v166_v25 }
 0x191   :  { %173 = vadd.xlane.f32.xlu1 %v170_v26 }
 0x192   :  { %v186_v37 = vpop.permute.xlu0 %185 }
 0x1a2   :  { %202 = vperm.xlu1 %237, %v152_v27  }
 0x21a   :  { %v172_v30 = vpop.xlane.xlu1 %171 }
 0x21b   :  { %v175_v31 = vmul.f32 0.0078125, %v172_v30 }
 0x21d   :  { %v177_v32 = vadd.f32 1e-05, %v175_v31 }
 0x21e   :  { %v174_v33 = vpop.xlane.xlu1 %173 }
 0x21f   :  { %250 = vrsqrt.f32 %v177_v32  ;;  %v176_v34 = vmul.f32 0.0078125, %v174_v33 }
 0x221   :  { %v178_v35 = vadd.f32 1e-05, %v176_v34 }
 0x222   :  { %v203_v47 = vpop.permute.xlu1 %202 }
 0x223   :  { %252 = vrsqrt.f32 %v178_v35 }
 0x229   :  { %v251_v36 = vpop.eup %250 }
 0x22a   :  { %v181_v38 = vmul.f32 %v251_v36, %v165_v21 }
 0x22c   :  { %v193_v39 = vmul.f32 %v186_v37, %v181_v38 }
 0x22d   :  { %v253_v40 = vpop.eup %252 }
 0x22e   :  { %v182_v42 = vmul.f32 %v253_v40, %v166_v25  ;;  %v205_v43 = vadd.f32 %v198_v29, %v193_v39 }
 0x230   :  { %v194_v44 = vmul.f32 %v191_v28, %v182_v42  ;;  %v207_v45 = vadd.f32 %v205_v43, %v153_v41 }
 0x232   :  { %v206_v48 = vadd.f32 %v203_v47, %v194_v44  ;;  %vm209_vm1 = vcmp.ge.f32.partialorder %v207_v45, 0.0  ;;  %v211_v49 = vmul.f32 0.2, %v207_v45 }
 0x234   :  { %v208_v50 = vadd.f32 %v206_v48, %v154_v46  ;;  %v213_v51 = vsel %vm209_vm1, %v207_v45, %v211_v49 }
 0x235   :  { %217 = vst [vmem:[%s347_s5] sm:$0xff] %v213_v51 }
 0x236   :  { %vm210_vm2 = vcmp.ge.f32.partialorder %v208_v50, 0.0  ;;  %v212_v52 = vmul.f32 0.2, %v208_v50 }
 0x238   :  { %v214_v53 = vsel %vm210_vm2, %v208_v50, %v212_v52 }
 0x239   :  { %218 = vst [vmem:[%s347_s5 + $0x8] sm:$0xff] %v214_v53 }

// kernel: _lambda_.27
= control target key start
LH: loop header
LB: loop body
LE: loop exit
PB: predicated region body
PF: predicated region fallthrough
CT: control target
= control target key end

     0   :  { %v359_v0 = vmov 0   ;;  %vm112_vm0 = vcmask 130048   ;;  %v189_v28 = vlaneseq  ;;  %s479_s1 = inlined_call_operand.vmem [shape: bf16[144,128], index: 1, kind: input, shape index: {}]   ;;  %s480_s0 = inlined_call_operand.vmem [shape: bf16[32,144], index: 0, kind: input, shape index: {}]   ;;  %s481_s2 = inlined_call_operand.vmem [shape: f32[32,1], index: 2, kind: input, shape index: {}]   ;;  %s482_s3 = inlined_call_operand.vmem [shape: f32[32,1], index: 3, kind: input, shape index: {}]   ;;  %s483_s4 = inlined_call_operand.vmem [shape: f32[32,128], index: 4, kind: output, shape index: {}]  }
   0x1   :  { %119 = vmatprep.subr.bf16.mxu0 %v359_v0  ;;  %315 = vmatprep.subr.bf16.mxu1 %v359_v0  ;;  %v336_v1 = vld [vmem:[%s479_s1] sm:$0xff]   ;;  %v337_v2 = vld [vmem:[%s479_s1 + $0x8] sm:$0xff]   ;;  %v338_v3 = vld [vmem:[%s479_s1 + $0x10] sm:$0xff]  }
   0x2   :  { %335 = vset.pattern.permute.xlu1 %v359_v0  ;;  %334 = vset.pattern.permute.xlu0 %v359_v0  ;;  %v339_v4 = vld [vmem:[%s479_s1 + $0x18] sm:$0xff]   ;;  %v347_v5 = vld [vmem:[%s480_s0 + $0x4] ss:$8 sps:$4 sm:$0xff]   ;;  %v342_v9 = vld [vmem:[%s479_s1 + $0x30] sm:$0xff]   ;;  %v442_v29 = vand.u32 127, %v189_v28 }
   0x3   :  { %120 = vmatpush1.bf16.msra.mxu0 %v336_v1  ;;  %324 = vmatpush1.bf16.msra.mxu1 %v336_v1  ;;  %v350_v6 = vld [vmem:[%s480_s0 + $0x14] ss:$8 sps:$4 sm:$0xff]   ;;  %v340_v7 = vld [vmem:[%s479_s1 + $0x20] sm:$0xff]   ;;  %v341_v8 = vld [vmem:[%s479_s1 + $0x28] sm:$0xff]  }
   0x4   :  { %121 = vmatprep.subr.bf16.mxu0 %v359_v0  ;;  %316 = vmatprep.subr.bf16.mxu1 %v359_v0  ;;  %v343_v10 = vld [vmem:[%s479_s1 + $0x38] sm:$0xff]   ;;  %v344_v11 = vld [vmem:[%s479_s1 + $0x40] sm:$0xff]   ;;  %v169_v22 = vld [vmem:[%s481_s2 + $0x8] sm:$0xff]  ;;  %vm191_vm1 = vcmp.lt.s32.totalorder %v442_v29, 32 }
   0x5   :  { %313 = vmatprep.mubr.msk.bf16.mxu0 %vm112_vm0, %v347_v5  ;;  %314 = vmatprep.mubr.msk.bf16.mxu1 %vm112_vm0, %v350_v6  ;;  %v345_v12 = vld [vmem:[%s480_s0] ss:$8 sps:$4 sm:$0xff]   ;;  %v348_v13 = vld [vmem:[%s480_s0 + $0x10] ss:$8 sps:$4 sm:$0xff]  }
   0x6   :  { %v170_v23 = vld [vmem:[%s481_s2 + $0x10] sm:$0xff]  ;;  %v171_v24 = vld [vmem:[%s481_s2 + $0x18] sm:$0xff]  ;;  %v172_v25 = vld [vmem:[%s482_s3] sm:$0xff] }
   0x7   :  { %122 = vmatpush1.bf16.msra.mxu0 %v337_v2  ;;  %325 = vmatpush1.bf16.msra.mxu1 %v337_v2  ;;  %v173_v26 = vld [vmem:[%s482_s3 + $0x8] sm:$0xff]  ;;  %v174_v27 = vld [vmem:[%s482_s3 + $0x10] sm:$0xff]  ;;  %v175_v50 = vld [vmem:[%s482_s3 + $0x18] sm:$0xff] }
   0x8   :  { %123 = vmatprep.subr.bf16.mxu0 %v359_v0  ;;  %317 = vmatprep.subr.bf16.mxu1 %v359_v0  ;;  %v168_v51 = vld [vmem:[%s481_s2] sm:$0xff] }
   0xb   :  { %124 = vmatpush1.bf16.msra.mxu0 %v338_v3  ;;  %326 = vmatpush1.bf16.msra.mxu1 %v338_v3 }
   0xc   :  { %125 = vmatprep.subr.bf16.mxu0 %v359_v0  ;;  %318 = vmatprep.subr.bf16.mxu1 %v359_v0 }
   0xf   :  { %126 = vmatpush1.bf16.msra.mxu0 %v339_v4  ;;  %327 = vmatpush1.bf16.msra.mxu1 %v339_v4 }
  0x10   :  { %127 = vmatprep.subr.bf16.mxu0 %v359_v0  ;;  %319 = vmatprep.subr.bf16.mxu1 %v359_v0 }
  0x13   :  { %128 = vmatpush1.bf16.msra.mxu0 %v340_v7  ;;  %328 = vmatpush1.bf16.msra.mxu1 %v340_v7 }
  0x14   :  { %129 = vmatprep.subr.bf16.mxu0 %v359_v0  ;;  %320 = vmatprep.subr.bf16.mxu1 %v359_v0 }
  0x17   :  { %130 = vmatpush1.bf16.msra.mxu0 %v341_v8  ;;  %329 = vmatpush1.bf16.msra.mxu1 %v341_v8 }
  0x18   :  { %131 = vmatprep.subr.bf16.mxu0 %v359_v0  ;;  %321 = vmatprep.subr.bf16.mxu1 %v359_v0 }
  0x1b   :  { %132 = vmatpush1.bf16.msra.mxu0 %v342_v9  ;;  %330 = vmatpush1.bf16.msra.mxu1 %v342_v9 }
  0x1c   :  { %133 = vmatprep.subr.bf16.mxu0 %v359_v0  ;;  %322 = vmatprep.subr.bf16.mxu1 %v359_v0 }
  0x1f   :  { %134 = vmatpush1.bf16.msra.mxu0 %v343_v10  ;;  %331 = vmatpush1.bf16.msra.mxu1 %v343_v10 }
  0x20   :  { %135 = vmatprep.subr.bf16.mxu0 %v359_v0  ;;  %323 = vmatprep.subr.bf16.mxu1 %v359_v0 }
  0x23   :  { %136 = vmatpush1.bf16.msra.mxu0 %v344_v11  ;;  %332 = vmatpush1.bf16.msra.mxu1 %v344_v11 }
  0x26   :  { %152 = vmatmul.mubr.bf16.vlgmr.msra.gmra.mrb[0].mxu0 %v345_v12  ;;  %160 = vmatmul.mubr.bf16.vlgmr.msra.gmra.mrb[0].mxu1 %v348_v13 }
  0xf9   :  { %v153_v14 = vpop.f32.mrb[0].mxu0  ;;  %v161_v15 = vpop.f32.mrb[0].mxu1 }
  0xfa   :  { %180 = vadd.xlane.f32.xlu1 %v161_v15  ;;  %176 = vadd.xlane.f32.xlu0 %v153_v14  ;;  %v155_v16 = vpop.f32.mrb[1].mxu0  ;;  %v163_v17 = vpop.f32.mrb[1].mxu1 }
  0xfb   :  { %v156_v18 = vpop.f32.mrb[2].mxu0  ;;  %v164_v19 = vpop.f32.mrb[2].mxu1 }
  0xfc   :  { %v158_v20 = vpop.f32.mrb[3].mxu0  ;;  %v166_v21 = vpop.f32.mrb[3].mxu1 }
  0xfe   :  { %182 = vadd.xlane.f32.xlu1 %v164_v19  ;;  %178 = vadd.xlane.f32.xlu0 %v156_v18 }
 0x10f   :  { %235 = vperm.xlu1 %335, %v169_v22  }
 0x113   :  { %240 = vperm.xlu1 %335, %v170_v23  }
 0x117   :  { %245 = vperm.xlu1 %335, %v171_v24  }
 0x11b   :  { %254 = vperm.xlu1 %335, %v172_v25  }
 0x11f   :  { %259 = vperm.xlu1 %335, %v173_v26  }
 0x123   :  { %264 = vperm.xlu1 %335, %v174_v27  }
 0x187   :  { %v181_v30 = vpop.xlane.xlu1 %180  ;;  %v177_v31 = vpop.xlane.xlu0 %176 }
 0x188   :  { %v187_v32 = vmul.f32 0.03125, %v181_v30  ;;  %v185_v33 = vmul.f32 0.03125, %v177_v31 }
 0x18a   :  { %v194_v34 = vsub.f32 %v161_v15, %v187_v32  ;;  %v192_v35 = vsub.f32 %v153_v14, %v185_v33 }
 0x18b   :  { %v183_v36 = vpop.xlane.xlu1 %182  ;;  %v179_v37 = vpop.xlane.xlu0 %178 }
 0x18c   :  { %v188_v38 = vmul.f32 0.03125, %v183_v36  ;;  %v186_v39 = vmul.f32 0.03125, %v179_v37  ;;  %v196_v40 = vsel %vm191_vm1, %v192_v35, 0.0  ;;  %v198_v44 = vsel %vm191_vm1, %v194_v34, 0.0 }
 0x18d   :  { %v200_v41 = vmul.f32 %v196_v40, %v196_v40  ;;  %v202_v46 = vmul.f32 %v198_v44, %v198_v44 }
 0x18e   :  { %v195_v42 = vsub.f32 %v164_v19, %v188_v38  ;;  %v193_v43 = vsub.f32 %v156_v18, %v186_v39 }
 0x18f   :  { %204 = vadd.xlane.f32.xlu0 %v200_v41  ;;  %v236_v52 = vpop.permute.xlu1 %235 }
 0x190   :  { %v197_v45 = vsel %vm191_vm1, %v193_v43, 0.0  ;;  %v199_v48 = vsel %vm191_vm1, %v195_v42, 0.0 }
 0x191   :  { %v201_v47 = vmul.f32 %v197_v45, %v197_v45  ;;  %v203_v49 = vmul.f32 %v199_v48, %v199_v48 }
 0x193   :  { %208 = vadd.xlane.f32.xlu0 %v202_v46  ;;  %206 = vadd.xlane.f32.xlu1 %v201_v47  ;;  %v241_v53 = vpop.permute.xlu1 %240 }
 0x197   :  { %210 = vadd.xlane.f32.xlu1 %v203_v49  ;;  %v246_v54 = vpop.permute.xlu1 %245 }
 0x19b   :  { %v255_v55 = vpop.permute.xlu1 %254 }
 0x19f   :  { %v260_v56 = vpop.permute.xlu1 %259 }
 0x1a3   :  { %v265_v57 = vpop.permute.xlu1 %264 }
 0x1a8   :  { %269 = vperm.xlu1 %335, %v175_v50  }
 0x1a9   :  { %230 = vperm.xlu0 %334, %v168_v51  }
 0x21c   :  { %v205_v58 = vpop.xlane.xlu0 %204 }
 0x21d   :  { %v212_v59 = vmul.f32 0.03125, %v205_v58 }
 0x21f   :  { %v216_v60 = vadd.f32 1e-05, %v212_v59 }
 0x220   :  { %v207_v61 = vpop.xlane.xlu1 %206  ;;  %v209_v62 = vpop.xlane.xlu0 %208 }
 0x221   :  { %351 = vrsqrt.f32 %v216_v60  ;;  %v213_v63 = vmul.f32 0.03125, %v207_v61  ;;  %v214_v0 = vmul.f32 0.03125, %v209_v62 }
 0x223   :  { %v217_v1 = vadd.f32 1e-05, %v213_v63  ;;  %v218_v2 = vadd.f32 1e-05, %v214_v0 }
 0x224   :  { %v211_v3 = vpop.xlane.xlu1 %210 }
 0x225   :  { %353 = vrsqrt.f32 %v217_v1  ;;  %v215_v4 = vmul.f32 0.03125, %v211_v3 }
 0x226   :  { %355 = vrsqrt.f32 %v218_v2 }
 0x227   :  { %v219_v5 = vadd.f32 1e-05, %v215_v4 }
 0x228   :  { %v231_v7 = vpop.permute.xlu0 %230  ;;  %v270_v27 = vpop.permute.xlu1 %269 }
 0x229   :  { %357 = vrsqrt.f32 %v219_v5 }
 0x22b   :  { %v352_v6 = vpop.eup %351 }
 0x22c   :  { %v224_v8 = vmul.f32 %v352_v6, %v192_v35 }
 0x22e   :  { %v248_v9 = vmul.f32 %v231_v7, %v224_v8 }
 0x22f   :  { %v354_v10 = vpop.eup %353 }
 0x230   :  { %v356_v11 = vpop.eup %355  ;;  %v225_v12 = vmul.f32 %v354_v10, %v193_v43  ;;  %v272_v13 = vadd.f32 %v255_v55, %v248_v9 }
 0x231   :  { %v226_v14 = vmul.f32 %v356_v11, %v194_v34 }
 0x232   :  { %v249_v15 = vmul.f32 %v236_v52, %v225_v12  ;;  %vm276_vm2 = vcmp.ge.f32.partialorder %v272_v13, 0.0  ;;  %v280_v16 = vmul.f32 0.2, %v272_v13 }
 0x233   :  { %v358_v17 = vpop.eup %357  ;;  %v250_v18 = vmul.f32 %v241_v53, %v226_v14 }
 0x234   :  { %v273_v19 = vadd.f32 %v260_v56, %v249_v15  ;;  %v227_v20 = vmul.f32 %v358_v17, %v195_v42  ;;  %v284_v21 = vsel %vm276_vm2, %v272_v13, %v280_v16 }
 0x235   :  { %v274_v22 = vadd.f32 %v265_v57, %v250_v18  ;;  %v288_v23 = vsel %vm191_vm1, %v284_v21, 0.0 }
 0x236   :  { %v281_v24 = vmul.f32 0.2, %v273_v19  ;;  %v251_v25 = vmul.f32 %v246_v54, %v227_v20  ;;  %vm277_vm3 = vcmp.ge.f32.partialorder %v273_v19, 0.0  ;;  %292 = vst [vmem:[%s483_s4] sm:$0xff] %v288_v23 }
 0x237   :  { %v282_v26 = vmul.f32 0.2, %v274_v22  ;;  %vm278_vm4 = vcmp.ge.f32.partialorder %v274_v22, 0.0 }
 0x238   :  { %v285_v28 = vsel %vm277_vm3, %v273_v19, %v281_v24  ;;  %v275_v30 = vadd.f32 %v270_v27, %v251_v25 }
 0x239   :  { %v289_v31 = vsel %vm191_vm1, %v285_v28, 0.0  ;;  %v286_v32 = vsel %vm278_vm4, %v274_v22, %v282_v26 }
 0x23a   :  { %293 = vst [vmem:[%s483_s4 + $0x8] sm:$0xff] %v289_v31  ;;  %vm279_vm5 = vcmp.ge.f32.partialorder %v275_v30, 0.0  ;;  %v283_v33 = vmul.f32 0.2, %v275_v30  ;;  %v290_v34 = vsel %vm191_vm1, %v286_v32, 0.0 }
 0x23b   :  { %294 = vst [vmem:[%s483_s4 + $0x10] sm:$0xff] %v290_v34 }
 0x23c   :  { %v287_v35 = vsel %vm279_vm5, %v275_v30, %v283_v33 }
 0x23d   :  { %v291_v36 = vsel %vm191_vm1, %v287_v35, 0.0 }
 0x23e   :  { %295 = vst [vmem:[%s483_s4 + $0x18] sm:$0xff] %v291_v36 }

// kernel: _lambda_.28
= control target key start
LH: loop header
LB: loop body
LE: loop exit
PB: predicated region body
PF: predicated region fallthrough
CT: control target
= control target key end

     0   :  { %vm200_vm0 = vcmask 261120   ;;  %v540_v44 = vmov 0   ;;  %v326_v45 = vlaneseq  ;;  %s693_s1 = inlined_call_operand.vmem [shape: bf16[288,128], index: 1, kind: input, shape index: {}]   ;;  %s694_s0 = inlined_call_operand.vmem [shape: bf16[32,288], index: 0, kind: input, shape index: {}]   ;;  %s695_s2 = inlined_call_operand.vmem [shape: f32[32,1], index: 2, kind: input, shape index: {}]   ;;  %s696_s3 = inlined_call_operand.vmem [shape: f32[32,1], index: 3, kind: input, shape index: {}]   ;;  %s697_s4 = inlined_call_operand.vmem [shape: f32[32,128], index: 4, kind: output, shape index: {}]  }
   0x1   :  { %v506_v0 = vld [vmem:[%s693_s1 + $0x40] sm:$0xff]   ;;  %v508_v2 = vld [vmem:[%s693_s1 + $0x48] sm:$0xff]   ;;  %v510_v4 = vld [vmem:[%s693_s1 + $0x50] sm:$0xff]   ;;  %505 = vset.pattern.permute.xlu1 %v540_v44  ;;  %504 = vset.pattern.permute.xlu0 %v540_v44 }
   0x2   :  { %v507_v1 = vld [vmem:[%s693_s1] sm:$0xff]   ;;  %463 = vmatprep.subr.bf16.mxu0 %v506_v0  ;;  %v509_v3 = vld [vmem:[%s693_s1 + $0x8] sm:$0xff]   ;;  %v511_v5 = vld [vmem:[%s693_s1 + $0x10] sm:$0xff]   ;;  %v638_v46 = vand.u32 127, %v326_v45 }
   0x3   :  { %464 = vmatpush3.bf16.msra.mxu0 %v507_v1  ;;  %v512_v6 = vld [vmem:[%s693_s1 + $0x58] sm:$0xff]   ;;  %v514_v8 = vld [vmem:[%s693_s1 + $0x60] sm:$0xff]   ;;  %v521_v11 = vld [vmem:[%s693_s1 + $0x88] sm:$0xff]  }
   0x4   :  { %465 = vmatprep.subr.bf16.mxu0 %v508_v2  ;;  %v513_v7 = vld [vmem:[%s693_s1 + $0x18] sm:$0xff]   ;;  %v518_v9 = vld [vmem:[%s693_s1 + $0x80] sm:$0xff]   ;;  %v516_v12 = vld [vmem:[%s693_s1 + $0x68] sm:$0xff]   ;;  %vm328_vm1 = vcmp.lt.s32.totalorder %v638_v46, 32 }
   0x5   :  { %v515_v10 = vld [vmem:[%s693_s1 + $0x20] sm:$0xff]   ;;  %495 = vmatprep.subr.bf16.mxu1 %v518_v9  ;;  %v517_v13 = vld [vmem:[%s693_s1 + $0x28] sm:$0xff]   ;;  %v519_v15 = vld [vmem:[%s693_s1 + $0x70] sm:$0xff]  }
   0x6   :  { %496 = vmatpush3.bf16.msra.mxu1 %v518_v9  ;;  %v524_v14 = vld [vmem:[%s694_s0 + $0x8] ss:$12 sps:$4 sm:$0xff]   ;;  %v527_v16 = vld [vmem:[%s694_s0 + $0x4] ss:$12 sps:$4 sm:$0xff]   ;;  %v528_v17 = vld [vmem:[%s694_s0 + $0x20] ss:$12 sps:$4 sm:$0xff]  }
   0x7   :  { %466 = vmatpush3.bf16.msra.mxu0 %v509_v3  ;;  %497 = vmatprep.subr.bf16.mxu1 %v521_v11  ;;  %v520_v18 = vld [vmem:[%s693_s1 + $0x30] sm:$0xff]   ;;  %v522_v19 = vld [vmem:[%s693_s1 + $0x78] sm:$0xff]   ;;  %v525_v21 = vld [vmem:[%s694_s0] ss:$12 sps:$4 sm:$0xff]  }
   0x8   :  { %467 = vmatprep.subr.bf16.mxu0 %v510_v4  ;;  %499 = vmatprep.mubr.msk.bf16.mxu1 %vm200_vm0, %v524_v14  ;;  %v523_v20 = vld [vmem:[%s693_s1 + $0x38] sm:$0xff]   ;;  %v306_v62 = vld [vmem:[%s695_s2 + $0x8] sm:$0xff]  ;;  %v307_v63 = vld [vmem:[%s695_s2 + $0x10] sm:$0xff] }
   0x9   :  { %239 = vmatprep.mubr.bf16.mxu0 %v527_v16  ;;  %v529_v22 = vld [vmem:[%s694_s0 + $0x1c] ss:$12 sps:$4 sm:$0xff]   ;;  %v531_v23 = vld [vmem:[%s694_s0 + $0x18] ss:$12 sps:$4 sm:$0xff]   ;;  %v311_v4 = vld [vmem:[%s696_s3 + $0x10] sm:$0xff] }
   0xa   :  { %498 = vmatpush3.bf16.msra.mxu1 %v521_v11  ;;  %v308_v0 = vld [vmem:[%s695_s2 + $0x18] sm:$0xff]  ;;  %v305_v1 = vld [vmem:[%s695_s2] sm:$0xff]  ;;  %v310_v3 = vld [vmem:[%s696_s3 + $0x8] sm:$0xff] }
   0xb   :  { %468 = vmatpush3.bf16.msra.mxu0 %v511_v5  ;;  %v309_v2 = vld [vmem:[%s696_s3] sm:$0xff] }
   0xc   :  { %469 = vmatprep.subr.bf16.mxu0 %v512_v6 }
   0xd   :  { %500 = vmatmul.mubr.msk.bf16.vlgmr.msra.gmra.mrb[0].mxu1 %vm200_vm0, %v528_v17 }
   0xf   :  { %470 = vmatpush3.bf16.msra.mxu0 %v513_v7 }
  0x10   :  { %471 = vmatprep.subr.bf16.mxu0 %v514_v8 }
  0x13   :  { %472 = vmatpush3.bf16.msra.mxu0 %v515_v10  ;;  %v312_v10 = vld [vmem:[%s696_s3 + $0x18] sm:$0xff] }
  0x14   :  { %473 = vmatprep.subr.bf16.mxu0 %v516_v12 }
  0x17   :  { %474 = vmatpush3.bf16.msra.mxu0 %v517_v13 }
  0x18   :  { %475 = vmatprep.subr.bf16.mxu0 %v519_v15 }
  0x1b   :  { %476 = vmatpush3.bf16.msra.mxu0 %v520_v18 }
  0x1c   :  { %477 = vmatprep.subr.bf16.mxu0 %v522_v19 }
  0x1f   :  { %478 = vmatpush3.bf16.msra.mxu0 %v523_v20 }
  0x22   :  { %240 = vmatmul.mubr.bf16.vlgmr.msra.gmra.mrb[0].mxu0 %v525_v21 }
  0x23   :  { %247 = vmatprep.mubr.bf16.mxu0 %v529_v22 }
  0x2a   :  { %248 = vmatmul.mubr.bf16.gmra.mrb[4].mxu0 %v531_v23 }
  0xe0   :  { %v501_v24 = vpop.f32.mrb[0].mxu1 }
  0xe1   :  { %v290_v25 = vpop.f32.mrb[1].mxu1 }
  0xe2   :  { %v502_v26 = vpop.f32.mrb[2].mxu1 }
  0xe3   :  { %v293_v27 = vpop.f32.mrb[3].mxu1 }
  0xf5   :  { %v479_v28 = vpop.f32.mrb[0].mxu0 }
  0xf6   :  { %v480_v29 = vpop.f32.mrb[1].mxu0 }
  0xf7   :  { %v481_v30 = vadd.f32 %v480_v29, %v479_v28  ;;  %v482_v31 = vpop.f32.mrb[2].mxu0 }
  0xf8   :  { %v483_v32 = vpop.f32.mrb[3].mxu0 }
  0xf9   :  { %v484_v33 = vadd.f32 %v483_v32, %v482_v31  ;;  %v291_v34 = vadd.f32 %v481_v30, %v290_v25 }
  0xfb   :  { %313 = vadd.xlane.f32.xlu0 %v291_v34  ;;  %v294_v35 = vadd.f32 %v484_v33, %v293_v27 }
  0xfd   :  { %v485_v36 = vpop.f32.mrb[4].mxu0 }
  0xfe   :  { %v486_v37 = vpop.f32.mrb[5].mxu0 }
  0xff   :  { %v487_v38 = vadd.f32 %v486_v37, %v485_v36  ;;  %v488_v39 = vpop.f32.mrb[6].mxu0  ;;  %315 = vadd.xlane.f32.xlu0 %v294_v35 }
 0x100   :  { %v489_v40 = vpop.f32.mrb[7].mxu0 }
 0x101   :  { %v490_v41 = vadd.f32 %v489_v40, %v488_v39  ;;  %v299_v42 = vadd.f32 %v501_v24, %v487_v38 }
 0x103   :  { %317 = vadd.xlane.f32.xlu1 %v299_v42  ;;  %v302_v43 = vadd.f32 %v502_v26, %v490_v41 }
 0x107   :  { %319 = vadd.xlane.f32.xlu1 %v302_v43 }
 0x188   :  { %v314_v47 = vpop.xlane.xlu0 %313 }
 0x189   :  { %v322_v48 = vmul.f32 0.03125, %v314_v47 }
 0x18b   :  { %v329_v49 = vsub.f32 %v291_v34, %v322_v48 }
 0x18c   :  { %v316_v50 = vpop.xlane.xlu0 %315 }
 0x18d   :  { %v323_v51 = vmul.f32 0.03125, %v316_v50  ;;  %v333_v52 = vsel %vm328_vm1, %v329_v49, 0.0 }
 0x18e   :  { %v337_v53 = vmul.f32 %v333_v52, %v333_v52 }
 0x18f   :  { %v330_v54 = vsub.f32 %v294_v35, %v323_v51 }
 0x190   :  { %v318_v55 = vpop.xlane.xlu1 %317  ;;  %341 = vadd.xlane.f32.xlu0 %v337_v53 }
 0x191   :  { %v324_v56 = vmul.f32 0.03125, %v318_v55  ;;  %v334_v57 = vsel %vm328_vm1, %v330_v54, 0.0 }
 0x192   :  { %v338_v58 = vmul.f32 %v334_v57, %v334_v57 }
 0x193   :  { %v331_v59 = vsub.f32 %v299_v42, %v324_v56 }
 0x194   :  { %343 = vadd.xlane.f32.xlu1 %v338_v58  ;;  %v320_v5 = vpop.xlane.xlu1 %319 }
 0x195   :  { %v335_v60 = vsel %vm328_vm1, %v331_v59, 0.0  ;;  %v325_v6 = vmul.f32 0.03125, %v320_v5 }
 0x196   :  { %v339_v61 = vmul.f32 %v335_v60, %v335_v60 }
 0x197   :  { %v332_v7 = vsub.f32 %v302_v43, %v325_v6 }
 0x198   :  { %345 = vadd.xlane.f32.xlu0 %v339_v61 }
 0x199   :  { %v336_v8 = vsel %vm328_vm1, %v332_v7, 0.0 }
 0x19a   :  { %v340_v9 = vmul.f32 %v336_v8, %v336_v8 }
 0x1a5   :  { %372 = vperm.xlu1 %505, %v306_v62  }
 0x1a9   :  { %377 = vperm.xlu1 %505, %v307_v63  }
 0x1ad   :  { %382 = vperm.xlu1 %505, %v308_v0  }
 0x1ae   :  { %367 = vperm.xlu0 %504, %v305_v1  }
 0x1b1   :  { %391 = vperm.xlu1 %505, %v309_v2  }
 0x1b5   :  { %396 = vperm.xlu1 %505, %v310_v3  }
 0x1b9   :  { %401 = vperm.xlu1 %505, %v311_v4  }
 0x1dd   :  { %347 = vadd.xlane.f32.xlu1 %v340_v9 }
 0x1ee   :  { %406 = vperm.xlu1 %505, %v312_v10  }
 0x21d   :  { %v342_v11 = vpop.xlane.xlu0 %341 }
 0x21e   :  { %v349_v12 = vmul.f32 0.03125, %v342_v11 }
 0x220   :  { %v353_v13 = vadd.f32 1e-05, %v349_v12 }
 0x221   :  { %v344_v14 = vpop.xlane.xlu1 %343 }
 0x222   :  { %532 = vrsqrt.f32 %v353_v13  ;;  %v350_v15 = vmul.f32 0.03125, %v344_v14 }
 0x224   :  { %v354_v16 = vadd.f32 1e-05, %v350_v15 }
 0x225   :  { %v373_v17 = vpop.permute.xlu1 %372  ;;  %v346_v18 = vpop.xlane.xlu0 %345 }
 0x226   :  { %534 = vrsqrt.f32 %v354_v16  ;;  %v351_v19 = vmul.f32 0.03125, %v346_v18 }
 0x228   :  { %v355_v20 = vadd.f32 1e-05, %v351_v19 }
 0x229   :  { %v378_v21 = vpop.permute.xlu1 %377 }
 0x22a   :  { %536 = vrsqrt.f32 %v355_v20 }
 0x22c   :  { %v533_v22 = vpop.eup %532 }
 0x22d   :  { %v383_v23 = vpop.permute.xlu1 %382  ;;  %v361_v24 = vmul.f32 %v533_v22, %v329_v49  ;;  %v368_v25 = vpop.permute.xlu0 %367 }
 0x22f   :  { %v385_v26 = vmul.f32 %v368_v25, %v361_v24 }
 0x230   :  { %v535_v27 = vpop.eup %534 }
 0x231   :  { %v362_v28 = vmul.f32 %v535_v27, %v330_v54  ;;  %v392_v29 = vpop.permute.xlu1 %391 }
 0x232   :  { %v409_v30 = vadd.f32 %v392_v29, %v385_v26 }
 0x233   :  { %v386_v31 = vmul.f32 %v373_v17, %v362_v28 }
 0x234   :  { %v537_v32 = vpop.eup %536  ;;  %vm413_vm2 = vcmp.ge.f32.partialorder %v409_v30, 0.0  ;;  %v417_v33 = vmul.f32 0.2, %v409_v30 }
 0x235   :  { %v363_v34 = vmul.f32 %v537_v32, %v331_v59  ;;  %v397_v35 = vpop.permute.xlu1 %396 }
 0x236   :  { %v421_v36 = vsel %vm413_vm2, %v409_v30, %v417_v33  ;;  %v410_v37 = vadd.f32 %v397_v35, %v386_v31 }
 0x237   :  { %v387_v38 = vmul.f32 %v378_v21, %v363_v34  ;;  %v425_v39 = vsel %vm328_vm1, %v421_v36, 0.0 }
 0x238   :  { %429 = vst [vmem:[%s697_s4] sm:$0xff] %v425_v39  ;;  %vm414_vm3 = vcmp.ge.f32.partialorder %v410_v37, 0.0  ;;  %v418_v40 = vmul.f32 0.2, %v410_v37 }
 0x239   :  { %v402_v41 = vpop.permute.xlu1 %401 }
 0x23a   :  { %v422_v42 = vsel %vm414_vm3, %v410_v37, %v418_v40  ;;  %v411_v43 = vadd.f32 %v402_v41, %v387_v38 }
 0x23b   :  { %v426_v44 = vsel %vm328_vm1, %v422_v42, 0.0 }
 0x23c   :  { %430 = vst [vmem:[%s697_s4 + $0x8] sm:$0xff] %v426_v44  ;;  %vm415_vm4 = vcmp.ge.f32.partialorder %v411_v43, 0.0  ;;  %v419_v45 = vmul.f32 0.2, %v411_v43 }
 0x23e   :  { %v423_v47 = vsel %vm415_vm4, %v411_v43, %v419_v45 }
 0x23f   :  { %v427_v48 = vsel %vm328_vm1, %v423_v47, 0.0 }
 0x240   :  { %431 = vst [vmem:[%s697_s4 + $0x10] sm:$0xff] %v427_v48 }
 0x26a   :  { %v348_v49 = vpop.xlane.xlu1 %347 }
 0x26b   :  { %v352_v50 = vmul.f32 0.03125, %v348_v49 }
 0x26d   :  { %v356_v51 = vadd.f32 1e-05, %v352_v50 }
 0x26e   :  { %v407_v55 = vpop.permute.xlu1 %406 }
 0x26f   :  { %538 = vrsqrt.f32 %v356_v51 }
 0x279   :  { %v539_v52 = vpop.eup %538 }
 0x27a   :  { %v364_v53 = vmul.f32 %v539_v52, %v332_v7 }
 0x27c   :  { %v388_v54 = vmul.f32 %v383_v23, %v364_v53 }
 0x27e   :  { %v412_v56 = vadd.f32 %v407_v55, %v388_v54 }
 0x280   :  { %vm416_vm5 = vcmp.ge.f32.partialorder %v412_v56, 0.0  ;;  %v420_v57 = vmul.f32 0.2, %v412_v56 }
 0x282   :  { %v424_v58 = vsel %vm416_vm5, %v412_v56, %v420_v57 }
 0x283   :  { %v428_v59 = vsel %vm328_vm1, %v424_v58, 0.0 }
 0x284   :  { %432 = vst [vmem:[%s697_s4 + $0x18] sm:$0xff] %v428_v59 }

// kernel: _lambda_.29
= control target key start
LH: loop header
LB: loop body
LE: loop exit
PB: predicated region body
PF: predicated region fallthrough
CT: control target
= control target key end

     0   :  { %vm203_vm0 = vcmask 261120   ;;  %v551_v44 = vmov 0   ;;  %v333_v45 = vlaneseq  ;;  %s725_s1 = inlined_call_operand.vmem [shape: bf16[288,128], index: 1, kind: input, shape index: {}]   ;;  %s726_s0 = inlined_call_operand.vmem [shape: bf16[32,288], index: 0, kind: input, shape index: {}]   ;;  %s727_s2 = inlined_call_operand.vmem [shape: f32[32,1], index: 2, kind: input, shape index: {}]   ;;  %s728_s3 = inlined_call_operand.vmem [shape: f32[32,1], index: 3, kind: input, shape index: {}]   ;;  %s729_s4 = inlined_call_operand.vmem [shape: f32[32,128], index: 4, kind: input, shape index: {}]   ;;  %s730_s5 = inlined_call_operand.vmem [shape: f32[32,128], index: 5, kind: output, shape index: {}]  }
   0x1   :  { %v517_v0 = vld [vmem:[%s725_s1 + $0x40] sm:$0xff]   ;;  %v519_v2 = vld [vmem:[%s725_s1 + $0x48] sm:$0xff]   ;;  %v521_v4 = vld [vmem:[%s725_s1 + $0x50] sm:$0xff]   ;;  %516 = vset.pattern.permute.xlu1 %v551_v44  ;;  %515 = vset.pattern.permute.xlu0 %v551_v44 }
   0x2   :  { %v518_v1 = vld [vmem:[%s725_s1] sm:$0xff]   ;;  %474 = vmatprep.subr.bf16.mxu0 %v517_v0  ;;  %v520_v3 = vld [vmem:[%s725_s1 + $0x8] sm:$0xff]   ;;  %v522_v5 = vld [vmem:[%s725_s1 + $0x10] sm:$0xff]   ;;  %v654_v46 = vand.u32 127, %v333_v45 }
   0x3   :  { %475 = vmatpush3.bf16.msra.mxu0 %v518_v1  ;;  %v523_v6 = vld [vmem:[%s725_s1 + $0x58] sm:$0xff]   ;;  %v525_v8 = vld [vmem:[%s725_s1 + $0x60] sm:$0xff]   ;;  %v532_v11 = vld [vmem:[%s725_s1 + $0x88] sm:$0xff]  }
   0x4   :  { %476 = vmatprep.subr.bf16.mxu0 %v519_v2  ;;  %v524_v7 = vld [vmem:[%s725_s1 + $0x18] sm:$0xff]   ;;  %v529_v9 = vld [vmem:[%s725_s1 + $0x80] sm:$0xff]   ;;  %v527_v12 = vld [vmem:[%s725_s1 + $0x68] sm:$0xff]   ;;  %vm335_vm1 = vcmp.lt.s32.totalorder %v654_v46, 32 }
   0x5   :  { %v526_v10 = vld [vmem:[%s725_s1 + $0x20] sm:$0xff]   ;;  %506 = vmatprep.subr.bf16.mxu1 %v529_v9  ;;  %v528_v13 = vld [vmem:[%s725_s1 + $0x28] sm:$0xff]   ;;  %v530_v15 = vld [vmem:[%s725_s1 + $0x70] sm:$0xff]  }
   0x6   :  { %507 = vmatpush3.bf16.msra.mxu1 %v529_v9  ;;  %v535_v14 = vld [vmem:[%s726_s0 + $0x8] ss:$12 sps:$4 sm:$0xff]   ;;  %v538_v16 = vld [vmem:[%s726_s0 + $0x4] ss:$12 sps:$4 sm:$0xff]   ;;  %v539_v17 = vld [vmem:[%s726_s0 + $0x20] ss:$12 sps:$4 sm:$0xff]  }
   0x7   :  { %477 = vmatpush3.bf16.msra.mxu0 %v520_v3  ;;  %508 = vmatprep.subr.bf16.mxu1 %v532_v11  ;;  %v531_v18 = vld [vmem:[%s725_s1 + $0x30] sm:$0xff]   ;;  %v533_v19 = vld [vmem:[%s725_s1 + $0x78] sm:$0xff]   ;;  %v536_v21 = vld [vmem:[%s726_s0] ss:$12 sps:$4 sm:$0xff]  }
   0x8   :  { %478 = vmatprep.subr.bf16.mxu0 %v521_v4  ;;  %510 = vmatprep.mubr.msk.bf16.mxu1 %vm203_vm0, %v535_v14  ;;  %v534_v20 = vld [vmem:[%s725_s1 + $0x38] sm:$0xff]   ;;  %v309_v62 = vld [vmem:[%s727_s2 + $0x8] sm:$0xff]  ;;  %v310_v63 = vld [vmem:[%s727_s2 + $0x10] sm:$0xff] }
   0x9   :  { %242 = vmatprep.mubr.bf16.mxu0 %v538_v16  ;;  %v540_v22 = vld [vmem:[%s726_s0 + $0x1c] ss:$12 sps:$4 sm:$0xff]   ;;  %v542_v23 = vld [vmem:[%s726_s0 + $0x18] ss:$12 sps:$4 sm:$0xff]   ;;  %v314_v4 = vld [vmem:[%s728_s3 + $0x10] sm:$0xff] }
   0xa   :  { %509 = vmatpush3.bf16.msra.mxu1 %v532_v11  ;;  %v311_v0 = vld [vmem:[%s727_s2 + $0x18] sm:$0xff]  ;;  %v308_v1 = vld [vmem:[%s727_s2] sm:$0xff]  ;;  %v313_v3 = vld [vmem:[%s728_s3 + $0x8] sm:$0xff] }
   0xb   :  { %479 = vmatpush3.bf16.msra.mxu0 %v522_v5  ;;  %v312_v2 = vld [vmem:[%s728_s3] sm:$0xff]  ;;  %v318_v44 = vld [vmem:[%s729_s4 + $0x10] sm:$0xff] }
   0xc   :  { %480 = vmatprep.subr.bf16.mxu0 %v523_v6 }
   0xd   :  { %511 = vmatmul.mubr.msk.bf16.vlgmr.msra.gmra.mrb[0].mxu1 %vm203_vm0, %v539_v17 }
   0xf   :  { %481 = vmatpush3.bf16.msra.mxu0 %v524_v7 }
  0x10   :  { %482 = vmatprep.subr.bf16.mxu0 %v525_v8 }
  0x13   :  { %483 = vmatpush3.bf16.msra.mxu0 %v526_v10  ;;  %v315_v10 = vld [vmem:[%s728_s3 + $0x18] sm:$0xff] }
  0x14   :  { %484 = vmatprep.subr.bf16.mxu0 %v527_v12 }
  0x17   :  { %485 = vmatpush3.bf16.msra.mxu0 %v528_v13 }
  0x18   :  { %486 = vmatprep.subr.bf16.mxu0 %v530_v15 }
  0x1b   :  { %487 = vmatpush3.bf16.msra.mxu0 %v531_v18 }
  0x1c   :  { %488 = vmatprep.subr.bf16.mxu0 %v533_v19 }
  0x1f   :  { %489 = vmatpush3.bf16.msra.mxu0 %v534_v20 }
  0x22   :  { %243 = vmatmul.mubr.bf16.vlgmr.msra.gmra.mrb[0].mxu0 %v536_v21 }
  0x23   :  { %250 = vmatprep.mubr.bf16.mxu0 %v540_v22 }
  0x2a   :  { %251 = vmatmul.mubr.bf16.gmra.mrb[4].mxu0 %v542_v23 }
  0xe0   :  { %v512_v24 = vpop.f32.mrb[0].mxu1 }
  0xe1   :  { %v293_v25 = vpop.f32.mrb[1].mxu1 }
  0xe2   :  { %v513_v26 = vpop.f32.mrb[2].mxu1 }
  0xe3   :  { %v296_v27 = vpop.f32.mrb[3].mxu1 }
  0xf5   :  { %v490_v28 = vpop.f32.mrb[0].mxu0 }
  0xf6   :  { %v491_v29 = vpop.f32.mrb[1].mxu0 }
  0xf7   :  { %v492_v30 = vadd.f32 %v491_v29, %v490_v28  ;;  %v493_v31 = vpop.f32.mrb[2].mxu0  ;;  %v316_v29 = vld [vmem:[%s729_s4] sm:$0xff] }
  0xf8   :  { %v494_v32 = vpop.f32.mrb[3].mxu0 }
  0xf9   :  { %v495_v33 = vadd.f32 %v494_v32, %v493_v31  ;;  %v294_v34 = vadd.f32 %v492_v30, %v293_v25 }
  0xfb   :  { %320 = vadd.xlane.f32.xlu0 %v294_v34  ;;  %v297_v35 = vadd.f32 %v495_v33, %v296_v27 }
  0xfd   :  { %v496_v36 = vpop.f32.mrb[4].mxu0 }
  0xfe   :  { %v497_v37 = vpop.f32.mrb[5].mxu0 }
  0xff   :  { %v498_v38 = vadd.f32 %v497_v37, %v496_v36  ;;  %v499_v39 = vpop.f32.mrb[6].mxu0  ;;  %322 = vadd.xlane.f32.xlu0 %v297_v35  ;;  %v317_v36 = vld [vmem:[%s729_s4 + $0x8] sm:$0xff] }
 0x100   :  { %v500_v40 = vpop.f32.mrb[7].mxu0 }
 0x101   :  { %v501_v41 = vadd.f32 %v500_v40, %v499_v39  ;;  %v302_v42 = vadd.f32 %v512_v24, %v498_v38 }
 0x103   :  { %324 = vadd.xlane.f32.xlu1 %v302_v42  ;;  %v305_v43 = vadd.f32 %v513_v26, %v501_v41 }
 0x107   :  { %326 = vadd.xlane.f32.xlu1 %v305_v43 }
 0x188   :  { %v321_v47 = vpop.xlane.xlu0 %320 }
 0x189   :  { %v329_v48 = vmul.f32 0.03125, %v321_v47 }
 0x18b   :  { %v336_v49 = vsub.f32 %v294_v34, %v329_v48 }
 0x18c   :  { %v323_v50 = vpop.xlane.xlu0 %322 }
 0x18d   :  { %v330_v51 = vmul.f32 0.03125, %v323_v50  ;;  %v340_v52 = vsel %vm335_vm1, %v336_v49, 0.0 }
 0x18e   :  { %v344_v53 = vmul.f32 %v340_v52, %v340_v52 }
 0x18f   :  { %v337_v54 = vsub.f32 %v297_v35, %v330_v51 }
 0x190   :  { %v325_v55 = vpop.xlane.xlu1 %324  ;;  %348 = vadd.xlane.f32.xlu0 %v344_v53 }
 0x191   :  { %v331_v56 = vmul.f32 0.03125, %v325_v55  ;;  %v341_v57 = vsel %vm335_vm1, %v337_v54, 0.0 }
 0x192   :  { %v345_v58 = vmul.f32 %v341_v57, %v341_v57 }
 0x193   :  { %v338_v59 = vsub.f32 %v302_v42, %v331_v56 }
 0x194   :  { %350 = vadd.xlane.f32.xlu1 %v345_v58  ;;  %v327_v5 = vpop.xlane.xlu1 %326 }
 0x195   :  { %v342_v60 = vsel %vm335_vm1, %v338_v59, 0.0  ;;  %v332_v6 = vmul.f32 0.03125, %v327_v5 }
 0x196   :  { %v346_v61 = vmul.f32 %v342_v60, %v342_v60 }
 0x197   :  { %v684_v7 = vsub.f32 %v305_v43, %v332_v6 }
 0x198   :  { %352 = vadd.xlane.f32.xlu0 %v346_v61  ;;  %v319_v61 = vld [vmem:[%s729_s4 + $0x18] sm:$0xff] }
 0x199   :  { %v343_v8 = vsel %vm335_vm1, %v684_v7, 0.0 }
 0x19a   :  { %v347_v9 = vmul.f32 %v343_v8, %v343_v8 }
 0x1a5   :  { %379 = vperm.xlu1 %516, %v309_v62  }
 0x1a9   :  { %384 = vperm.xlu1 %516, %v310_v63  }
 0x1ad   :  { %389 = vperm.xlu1 %516, %v311_v0  }
 0x1ae   :  { %374 = vperm.xlu0 %515, %v308_v1  }
 0x1b1   :  { %398 = vperm.xlu1 %516, %v312_v2  }
 0x1b5   :  { %403 = vperm.xlu1 %516, %v313_v3  }
 0x1b9   :  { %408 = vperm.xlu1 %516, %v314_v4  }
 0x1dd   :  { %354 = vadd.xlane.f32.xlu1 %v347_v9 }
 0x1ee   :  { %413 = vperm.xlu1 %516, %v315_v10  }
 0x21d   :  { %v349_v11 = vpop.xlane.xlu0 %348 }
 0x21e   :  { %v356_v12 = vmul.f32 0.03125, %v349_v11 }
 0x220   :  { %v360_v13 = vadd.f32 1e-05, %v356_v12 }
 0x221   :  { %v351_v14 = vpop.xlane.xlu1 %350 }
 0x222   :  { %543 = vrsqrt.f32 %v360_v13  ;;  %v357_v15 = vmul.f32 0.03125, %v351_v14 }
 0x224   :  { %v361_v16 = vadd.f32 1e-05, %v357_v15 }
 0x225   :  { %v380_v17 = vpop.permute.xlu1 %379  ;;  %v353_v18 = vpop.xlane.xlu0 %352 }
 0x226   :  { %545 = vrsqrt.f32 %v361_v16  ;;  %v358_v19 = vmul.f32 0.03125, %v353_v18 }
 0x228   :  { %v362_v20 = vadd.f32 1e-05, %v358_v19 }
 0x229   :  { %v385_v21 = vpop.permute.xlu1 %384 }
 0x22a   :  { %547 = vrsqrt.f32 %v362_v20 }
 0x22c   :  { %v544_v22 = vpop.eup %543 }
 0x22d   :  { %v390_v23 = vpop.permute.xlu1 %389  ;;  %v368_v24 = vmul.f32 %v544_v22, %v336_v49  ;;  %v375_v25 = vpop.permute.xlu0 %374 }
 0x22f   :  { %v392_v26 = vmul.f32 %v375_v25, %v368_v24 }
 0x230   :  { %v546_v27 = vpop.eup %545 }
 0x231   :  { %v369_v28 = vmul.f32 %v546_v27, %v337_v54  ;;  %v399_v30 = vpop.permute.xlu1 %398 }
 0x232   :  { %v416_v31 = vadd.f32 %v399_v30, %v392_v26 }
 0x233   :  { %v393_v32 = vmul.f32 %v380_v17, %v369_v28 }
 0x234   :  { %v548_v33 = vpop.eup %547  ;;  %v420_v34 = vadd.f32 %v416_v31, %v316_v29 }
 0x235   :  { %v370_v35 = vmul.f32 %v548_v33, %v338_v59  ;;  %v404_v37 = vpop.permute.xlu1 %403 }
 0x236   :  { %vm424_vm2 = vcmp.ge.f32.partialorder %v420_v34, 0.0  ;;  %v428_v38 = vmul.f32 0.2, %v420_v34  ;;  %v417_v39 = vadd.f32 %v404_v37, %v393_v32 }
 0x237   :  { %v394_v40 = vmul.f32 %v385_v21, %v370_v35 }
 0x238   :  { %v432_v41 = vsel %vm424_vm2, %v420_v34, %v428_v38  ;;  %v421_v42 = vadd.f32 %v417_v39, %v317_v36 }
 0x239   :  { %v436_v43 = vsel %vm335_vm1, %v432_v41, 0.0  ;;  %v409_v45 = vpop.permute.xlu1 %408 }
 0x23a   :  { %440 = vst [vmem:[%s730_s5] sm:$0xff] %v436_v43  ;;  %vm425_vm3 = vcmp.ge.f32.partialorder %v421_v42, 0.0  ;;  %v429_v47 = vmul.f32 0.2, %v421_v42  ;;  %v418_v48 = vadd.f32 %v409_v45, %v394_v40 }
 0x23c   :  { %v433_v49 = vsel %vm425_vm3, %v421_v42, %v429_v47  ;;  %v422_v50 = vadd.f32 %v418_v48, %v318_v44 }
 0x23d   :  { %v437_v51 = vsel %vm335_vm1, %v433_v49, 0.0 }
 0x23e   :  { %441 = vst [vmem:[%s730_s5 + $0x8] sm:$0xff] %v437_v51  ;;  %vm426_vm4 = vcmp.ge.f32.partialorder %v422_v50, 0.0  ;;  %v430_v52 = vmul.f32 0.2, %v422_v50 }
 0x240   :  { %v434_v53 = vsel %vm426_vm4, %v422_v50, %v430_v52 }
 0x241   :  { %v438_v54 = vsel %vm335_vm1, %v434_v53, 0.0 }
 0x242   :  { %442 = vst [vmem:[%s730_s5 + $0x10] sm:$0xff] %v438_v54 }
 0x26a   :  { %v355_v55 = vpop.xlane.xlu1 %354 }
 0x26b   :  { %v359_v56 = vmul.f32 0.03125, %v355_v55 }
 0x26d   :  { %v363_v57 = vadd.f32 1e-05, %v359_v56 }
 0x26e   :  { %v414_v62 = vpop.permute.xlu1 %413 }
 0x26f   :  { %549 = vrsqrt.f32 %v363_v57 }
 0x279   :  { %v550_v58 = vpop.eup %549 }
 0x27a   :  { %v371_v59 = vmul.f32 %v550_v58, %v684_v7 }
 0x27c   :  { %v395_v60 = vmul.f32 %v390_v23, %v371_v59 }
 0x27e   :  { %v419_v63 = vadd.f32 %v414_v62, %v395_v60 }
 0x280   :  { %v423_v0 = vadd.f32 %v419_v63, %v319_v61 }
 0x282   :  { %vm427_vm5 = vcmp.ge.f32.partialorder %v423_v0, 0.0  ;;  %v431_v1 = vmul.f32 0.2, %v423_v0 }
 0x284   :  { %v435_v2 = vsel %vm427_vm5, %v423_v0, %v431_v1 }
 0x285   :  { %v439_v3 = vsel %vm335_vm1, %v435_v2, 0.0 }
 0x286   :  { %443 = vst [vmem:[%s730_s5 + $0x18] sm:$0xff] %v439_v3 }

</bundles_post_ra>
